<compile_context>
chip_gen: v6e
topology: v6e:2x2x1
jax: 0.10.0
libtpu: 0.0.40
codegen_flags: <defaults>
</compile_context>

<pallas_src>
import functools

import numpy as np

import jax
import jax.numpy as jnp
from jax import lax
from jax.experimental import pallas as pl
from jax.experimental.pallas import tpu as pltpu


def _round_up(x, m):
    return (x + m - 1) // m * m


def _dpdp_kernel(feat_ref, code_ref, units_ref, p_ref, alphas_ref, betas_sm,
                 *, lmbda, T, K, TS, T1, TL, Kp, dp_unroll, bt_unroll):
    BIG = jnp.float32(1e30)

    feats = feat_ref[...]          # (TS, Dp) f32, zero padded
    code = code_ref[...]           # (Kp, Dp) f32, zero padded

    # ---- squared euclidean distances (TS, Kp) via one MXU matmul ------------
    # (for large T/K/D the gram matmul inputs could be cast to bf16 on
    #  v5e/v6e/v7x; kept f32 here to stay numerically close to torch cdist**2)
    gram = lax.dot_general(feats, code, (((1,), (1,)), ((), ())),
                           preferred_element_type=jnp.float32)         # (TS, Kp)
    fnorm = jnp.sum(feats * feats, axis=1, keepdims=True)              # (TS, 1)
    cnorm = jnp.sum(code * code, axis=1, keepdims=True).T              # (1, Kp)
    k_row = lax.broadcasted_iota(jnp.int32, (1, Kp), 1)
    cnorm = jnp.where(k_row < K, cnorm, BIG)      # padded codes can never win
    dist = jnp.maximum(fnorm + cnorm - 2.0 * gram, 0.0)                # (TS, Kp)

    # ---- prefix sums over time: P[t, k] = sum_{s<t} dist[s, k]  (MXU) -------
    t_col1 = lax.broadcasted_iota(jnp.int32, (T1, 1), 0)
    s_row = lax.broadcasted_iota(jnp.int32, (1, TS), 1)
    ltri = (s_row < t_col1).astype(jnp.float32)                        # (T1, TS)
    p_ref[...] = jnp.dot(ltri, dist, preferred_element_type=jnp.float32)

    # ---- DP state ------------------------------------------------------------
    alphas_ref[...] = jnp.zeros((T1, 1), jnp.float32)   # alphas[0] = 0
    betas_sm[0] = jnp.int32(0)                          # safe read when inactive

    # hoisted loop invariants
    s_col = lax.broadcasted_iota(jnp.int32, (TS, 1), 0)                # (TS, 1)
    lmbda_s = jnp.float32(lmbda) * s_col.astype(jnp.float32)           # (TS, 1)

    # ---- forward DP: alphas[t], betas[t] for t = 1..T ------------------------
    def dp_body(t, carry):
        row_t = p_ref[pl.ds(t, 1), :]                                  # (1, Kp)
        p_head = p_ref[0:TS, :]                                        # (TS, Kp)
        # best per-start segment cost: m[s] = min_k (P[t,k] - P[s,k])
        m = jnp.min(row_t - p_head, axis=1, keepdims=True)             # (TS, 1)
        a_head = alphas_ref[0:TS, :]                                   # (TS, 1)
        pen_base = jnp.float32(lmbda) * (1.0 - t.astype(jnp.float32))  # scalar
        costs = jnp.where(s_col < t, a_head + m + (lmbda_s + pen_base), BIG)
        min_cost = jnp.min(costs)
        beta_t = jnp.min(jnp.where(costs == min_cost, s_col, T))       # first argmin
        alphas_ref[pl.ds(t, 1), :] = jnp.reshape(min_cost, (1, 1))
        betas_sm[t] = beta_t
        return carry

    lax.fori_loop(1, T + 1, dp_body, 0, unroll=dp_unroll)

    # ---- backtracking: scalar SMEM walk + deferred per-segment argmin --------
    lane_t = lax.broadcasted_iota(jnp.int32, (1, TL), 1)

    def bt_body(_, state):
        index, units = state
        beta_i = betas_sm[index]                                       # scalar i32
        seg = p_ref[pl.ds(index, 1), :] - p_ref[pl.ds(beta_i, 1), :]   # (1, Kp)
        seg_min = jnp.min(seg)
        gamma_i = jnp.min(jnp.where(seg == seg_min, k_row, K))         # first argmin
        active = index > 0
        fill = active & (lane_t >= beta_i) & (lane_t < index)
        units = jnp.where(fill, gamma_i, units)
        index = jnp.where(active, beta_i, index)
        return index, units

    units0 = jnp.zeros((1, TL), jnp.int32)
    _, units = lax.fori_loop(0, T, bt_body, (jnp.int32(T), units0),
                             unroll=bt_unroll)
    units_ref[...] = units                                             # lane-dense


def dpdp_quantize(features, codebook, lmbda, num_neighbors=None):
    """JAX/Pallas port of `dpdp` plus the gather / straight-through estimator."""
    if num_neighbors is not None:
        # TODO(synk): top-k neighbor masking (num_neighbors < K) not implemented in-kernel.
        raise NotImplementedError("num_neighbors is only supported as None")
    if features.ndim != 2:
        raise NotImplementedError("Only works for 2D input")
    T, D = features.shape
    K, Dc = codebook.shape
    assert D == Dc

    TS = _round_up(T, 8)            # time rows (sublane axis)
    T1 = _round_up(T + 1, 8)        # DP table rows (index T must exist)
    TL = _round_up(T, 128)          # lane-dense units output
    Kp = _round_up(K, 128)          # lane-dense codebook axis
    Dp = _round_up(D, 128)          # lane-dense matmul contraction axis

    feats_p = jnp.pad(features.astype(jnp.float32), ((0, TS - T), (0, Dp - D)))
    code_p = jnp.pad(codebook.astype(jnp.float32), ((0, Kp - K), (0, Dp - D)))

    # fully unroll the short fixed loops for small T (LLO scheduling visibility)
    dp_unroll = True if T <= 64 else 8
    bt_unroll = True if T <= 64 else 4

    kernel = functools.partial(
        _dpdp_kernel, lmbda=float(lmbda), T=T, K=K, TS=TS, T1=T1, TL=TL, Kp=Kp,
        dp_unroll=dp_unroll, bt_unroll=bt_unroll)

    # rough VMEM budget: padded inputs + prefix-sum scratch + dist/ltri temporaries.
    est_bytes = 4 * (TS * Dp + Kp * Dp + 2 * T1 * Kp + TS * Kp + T1 * TS + 4 * TL)
    vmem_limit = int(min(64 * 2**20, max(32 * 2**20, 2 * est_bytes)))

    units = pl.pallas_call(
        kernel,
        out_shape=jax.ShapeDtypeStruct((1, TL), jnp.int32),
        in_specs=[
            pl.BlockSpec(memory_space=pltpu.MemorySpace.VMEM),
            pl.BlockSpec(memory_space=pltpu.MemorySpace.VMEM),
        ],
        out_specs=pl.BlockSpec(memory_space=pltpu.MemorySpace.VMEM),
        scratch_shapes=[
            pltpu.VMEM((T1, Kp), jnp.float32),   # prefix-sum table P
            pltpu.VMEM((T1, 1), jnp.float32),    # alphas
            pltpu.SMEM((T1,), jnp.int32),        # betas
        ],
        compiler_params=pltpu.CompilerParams(vmem_limit_bytes=vmem_limit),
    )(feats_p, code_p)

    indices = units[0, :T]
    # gather + straight-through estimator in plain JAX (as in the torch module)
    quantized = jnp.take(codebook, indices, axis=0).astype(features.dtype)
    quantized_st = features - lax.stop_gradient(features - quantized)
    return quantized_st, indices


class DPDPQuantizer:
    """JAX/Pallas port of the PyTorch DPDPQuantizer module (forward pass)."""

    def __init__(self, codebook_size, codebook_dim, lmbda, num_neighbors=None, key=None):
        key = jax.random.PRNGKey(0) if key is None else key
        # deterministic synthetic init (stand-in for torch.randn parameter)
        self.codebook = jax.random.normal(key, (codebook_size, codebook_dim), jnp.float32)
        self.lmbda = float(lmbda)
        self.num_neighbors = num_neighbors

    def __call__(self, features):
        # TODO(synk): batch multiple sequences through one pallas_call with a leading
        # "parallel" grid axis so v7x's two TensorCores each take sequences.
        return dpdp_quantize(features, self.codebook, self.lmbda, self.num_neighbors)

    @classmethod
    def from_codebook(cls, codebook, lmbda, num_neighbors=None):
        q = cls(codebook.shape[0], codebook.shape[1], lmbda, num_neighbors)
        q.codebook = jnp.asarray(codebook, jnp.float32)
        return q


# ---------------------------------------------------------------------------
# float64 numpy reference (cost-based, tie-robust correctness checks)
# ---------------------------------------------------------------------------
def _reference_dpdp_objective(features, codebook, lmbda):
    """Optimal DPDP objective value, computed like the torch reference in float64."""
    f = np.asarray(features, np.float64)
    c = np.asarray(codebook, np.float64)
    T = f.shape[0]
    d = ((f[:, None, :] - c[None, :, :]) ** 2).sum(-1)          # (T, K)
    alphas = np.zeros(T + 1)
    for t in range(1, T + 1):
        seg = d[0:t][::-1].cumsum(0)[::-1]                      # (t, K)
        m = seg.min(1)                                          # (t,)
        pen = lmbda * (1.0 - (t - np.arange(t)))
        alphas[t] = (alphas[0:t] + m + pen).min()
    return alphas[T], d


def _objective_of_units(units, d, lmbda):
    """Objective of the segmentation implied by runs of equal codes."""
    units = np.asarray(units)
    T = units.shape[0]
    cost = float(d[np.arange(T), units].sum())
    n_segments = 1 + int(np.sum(units[1:] != units[:-1]))
    cost += lmbda * (n_segments - T)                            # sum lmbda*(1 - dur)
    return cost


if __name__ == "__main__":
    key = jax.random.PRNGKey(0)
    kf, kc = jax.random.split(key)

    T, D, K = 16, 8, 16
    features = jax.random.normal(kf, (T, D), jnp.float32)
    codebook = jax.random.normal(kc, (K, D), jnp.float32)

    lmbda = 1.0
    quantizer = DPDPQuantizer.from_codebook(codebook, lmbda=lmbda)
    quant_st, indices = quantizer(features)
    jax.block_until_ready((quant_st, indices))

    # ---- sanity checks ------------------------------------------------------
    assert quant_st.shape == (T, D) and quant_st.dtype == jnp.float32
    assert indices.shape == (T,) and indices.dtype == jnp.int32
    assert bool(jnp.all((indices >= 0) & (indices < K)))
    assert bool(jnp.all(jnp.isfinite(quant_st)))
    assert bool(jnp.allclose(quant_st, codebook[indices], atol=1e-5))

    # ---- kernel objective matches the float64 reference DP optimum ----------
    ref_opt, d64 = _reference_dpdp_objective(features, codebook, lmbda)
    kern_obj = _objective_of_units(indices, d64, lmbda)
    assert abs(kern_obj - ref_opt) < 5e-2, (kern_obj, ref_opt)

    # ---- lmbda = 0: degenerates to per-frame nearest-neighbour assignment ---
    _, idx0 = DPDPQuantizer.from_codebook(codebook, lmbda=0.0)(features)
    nn_cost = float(d64.min(axis=1).sum())
    got_cost = float(d64[np.arange(T), np.asarray(idx0)].sum())
    assert abs(got_cost - nn_cost) < 5e-2, (got_cost, nn_cost)

    # ---- huge lmbda: one segment labelled with the globally best code -------
    _, idxb = DPDPQuantizer.from_codebook(codebook, lmbda=1e4)(features)
    idxb_np = np.asarray(idxb)
    assert np.all(idxb_np == idxb_np[0])
    best_total = float(d64.sum(axis=0).min())
    got_total = float(d64.sum(axis=0)[idxb_np[0]])
    assert abs(got_total - best_total) < 5e-2, (got_total, best_total)

    print("KERNEL_OK")
</pallas_src>

<mosaic_0001>
module attributes {stable_mosaic.version = 11 : i64} {
  func.func @_dpdp_kernel(%arg0: memref<16x128xf32, #tpu.memory_space<vmem>>, %arg1: memref<128x128xf32, #tpu.memory_space<vmem>>, %arg2: memref<1x128xi32, #tpu.memory_space<vmem>>, %arg3: memref<24x128xf32, #tpu.memory_space<vmem>>, %arg4: memref<24x1xf32, #tpu.memory_space<vmem>>, %arg5: memref<24xi32, #tpu.memory_space<smem>>) attributes {dimension_semantics = [], scalar_prefetch = 0 : i64, scratch_operands = 3 : i64, tpu.core_type = #tpu.core_type<tc>} {
    %c0 = arith.constant 0 : index
    %c0_0 = arith.constant 0 : index
    %0 = vector.load %arg0[%c0, %c0_0] : memref<16x128xf32, #tpu.memory_space<vmem>>, vector<16x128xf32>
    %c0_1 = arith.constant 0 : index
    %c0_2 = arith.constant 0 : index
    %1 = vector.load %arg1[%c0_1, %c0_2] : memref<128x128xf32, #tpu.memory_space<vmem>>, vector<128x128xf32>
    %cst = arith.constant dense<0.000000e+00> : vector<16x128xf32>
    %2 = tpu.matmul %0, %1, %cst {dimension_numbers = #tpu.dot_dimension_numbers<[1], [1], [0], [0], [0, 0, 1, 0], [], []>} : vector<16x128xf32>, vector<128x128xf32>, vector<16x128xf32> -> vector<16x128xf32>
    %3 = arith.mulf %0, %0 : vector<16x128xf32>
    %cst_3 = arith.constant dense<0.000000e+00> : vector<16xf32>
    %4 = vector.multi_reduction <add>, %3, %cst_3 [1] : vector<16x128xf32> to vector<16xf32>
    %5 = vector.shape_cast %4 : vector<16xf32> to vector<16x1xf32>
    %6 = arith.mulf %1, %1 : vector<128x128xf32>
    %cst_4 = arith.constant dense<0.000000e+00> : vector<128xf32>
    %7 = vector.multi_reduction <add>, %6, %cst_4 [1] : vector<128x128xf32> to vector<128xf32>
    %8 = vector.shape_cast %7 : vector<128xf32> to vector<128x1xf32>
    %9 = tpu.transpose %8, [1, 0] : vector<128x1xf32> -> vector<1x128xf32>
    %10 = tpu.iota {dimensions = array<i32: 1>} : vector<1x128xi32>
    %c16_i32 = arith.constant 16 : i32
    %11 = vector.broadcast %c16_i32 : i32 to vector<1x128xi32>
    %12 = arith.cmpi slt, %10, %11 : vector<1x128xi32>
    %cst_5 = arith.constant 1.000000e+30 : f32
    %13 = vector.broadcast %cst_5 : f32 to vector<1x128xf32>
    %14 = arith.select %12, %9, %13 : vector<1x128xi1>, vector<1x128xf32>
    %15 = vector.broadcast %5 : vector<16x1xf32> to vector<16x128xf32>
    %16 = vector.broadcast %14 : vector<1x128xf32> to vector<16x128xf32>
    %17 = arith.addf %15, %16 : vector<16x128xf32>
    %cst_6 = arith.constant 2.000000e+00 : f32
    %18 = vector.broadcast %cst_6 : f32 to vector<16x128xf32>
    %19 = arith.mulf %18, %2 : vector<16x128xf32>
    %20 = arith.subf %17, %19 : vector<16x128xf32>
    %cst_7 = arith.constant 0.000000e+00 : f32
    %21 = vector.broadcast %cst_7 : f32 to vector<16x128xf32>
    %22 = arith.maximumf %20, %21 : vector<16x128xf32>
    %23 = tpu.iota {dimensions = array<i32: 0>} : vector<24x1xi32>
    %24 = tpu.iota {dimensions = array<i32: 1>} : vector<1x16xi32>
    %25 = vector.broadcast %24 : vector<1x16xi32> to vector<24x16xi32>
    %26 = vector.broadcast %23 : vector<24x1xi32> to vector<24x16xi32>
    %27 = arith.cmpi slt, %25, %26 : vector<24x16xi32>
    %28 = arith.extui %27 : vector<24x16xi1> to vector<24x16xi32>
    %29 = arith.sitofp %28 : vector<24x16xi32> to vector<24x16xf32>
    %cst_8 = arith.constant dense<0.000000e+00> : vector<24x128xf32>
    %30 = tpu.matmul %29, %22, %cst_8 {dimension_numbers = #tpu.dot_dimension_numbers<[1], [0], [0], [1], [0, 0, 1, 1], [], []>} : vector<24x16xf32>, vector<16x128xf32>, vector<24x128xf32> -> vector<24x128xf32>
    %c0_9 = arith.constant 0 : index
    %c0_10 = arith.constant 0 : index
    %31 = vector.load %arg3[%c0_9, %c0_10] : memref<24x128xf32, #tpu.memory_space<vmem>>, vector<24x128xf32>
    tpu.vector_store %arg3[%c0_9, %c0_10], %30 {strides = array<i32>} : memref<24x128xf32, #tpu.memory_space<vmem>>, vector<24x128xf32>,
    %cst_11 = arith.constant 0.000000e+00 : f32
    %32 = vector.broadcast %cst_11 : f32 to vector<24x1xf32>
    %c0_12 = arith.constant 0 : index
    %c0_13 = arith.constant 0 : index
    %33 = vector.load %arg4[%c0_12, %c0_13] : memref<24x1xf32, #tpu.memory_space<vmem>>, vector<24x1xf32>
    tpu.vector_store %arg4[%c0_12, %c0_13], %32 {strides = array<i32>} : memref<24x1xf32, #tpu.memory_space<vmem>>, vector<24x1xf32>,
    %c0_i32 = arith.constant 0 : i32
    %c0_14 = arith.constant 0 : index
    %34 = memref.load %arg5[%c0_14] : memref<24xi32, #tpu.memory_space<smem>>
    memref.store %c0_i32, %arg5[%c0_14] : memref<24xi32, #tpu.memory_space<smem>>
    %35 = tpu.iota {dimensions = array<i32: 0>} : vector<16x1xi32>
    %36 = arith.sitofp %35 : vector<16x1xi32> to vector<16x1xf32>
    %cst_15 = arith.constant 1.000000e+00 : f32
    %37 = vector.broadcast %cst_15 : f32 to vector<16x1xf32>
    %38 = arith.mulf %37, %36 : vector<16x1xf32>
    %cst_16 = arith.constant 1.000000e+30 : f32
    %c1_i32 = arith.constant 1 : i32
    %39 = arith.index_cast %c1_i32 : i32 to index
    %c0_17 = arith.constant 0 : index
    %40 = vector.load %arg3[%39, %c0_17] : memref<24x128xf32, #tpu.memory_space<vmem>>, vector<1x128xf32>
    %c0_18 = arith.constant 0 : index
    %c0_19 = arith.constant 0 : index
    %41 = vector.load %arg3[%c0_18, %c0_19] : memref<24x128xf32, #tpu.memory_space<vmem>>, vector<16x128xf32>
    %42 = vector.broadcast %40 : vector<1x128xf32> to vector<16x128xf32>
    %43 = arith.subf %42, %41 : vector<16x128xf32>
    %cst_20 = arith.constant dense<0x7F800000> : vector<16xf32>
    %44 = vector.multi_reduction <minimumf>, %43, %cst_20 [1] : vector<16x128xf32> to vector<16xf32>
    %45 = vector.shape_cast %44 : vector<16xf32> to vector<16x1xf32>
    %c0_21 = arith.constant 0 : index
    %c0_22 = arith.constant 0 : index
    %46 = vector.load %arg4[%c0_21, %c0_22] : memref<24x1xf32, #tpu.memory_space<vmem>>, vector<16x1xf32>
    %47 = arith.sitofp %c1_i32 : i32 to f32
    %cst_23 = arith.constant 1.000000e+00 : f32
    %48 = arith.subf %cst_23, %47 : f32
    %cst_24 = arith.constant 1.000000e+00 : f32
    %49 = arith.mulf %cst_24, %48 : f32
    %50 = vector.broadcast %c1_i32 : i32 to vector<16x1xi32>
    %51 = arith.cmpi slt, %35, %50 : vector<16x1xi32>
    %52 = arith.addf %46, %45 : vector<16x1xf32>
    %53 = vector.broadcast %49 : f32 to vector<16x1xf32>
    %54 = arith.addf %38, %53 : vector<16x1xf32>
    %55 = arith.addf %52, %54 : vector<16x1xf32>
    %56 = vector.broadcast %cst_16 : f32 to vector<16x1xf32>
    %57 = arith.select %51, %55, %56 : vector<16x1xi1>, vector<16x1xf32>
    %58 = vector.shape_cast %57 : vector<16x1xf32> to vector<1x16x1xf32>
    %cst_25 = arith.constant dense<0x7F800000> : vector<1xf32>
    %59 = vector.multi_reduction <minimumf>, %58, %cst_25 [1, 2] : vector<1x16x1xf32> to vector<1xf32>
    %60 = vector.shape_cast %59 : vector<1xf32> to vector<1x1x1xf32>
    %61 = vector.extract %60[0, 0, 0] : f32 from vector<1x1x1xf32>
    %62 = vector.broadcast %61 : f32 to vector<16x1xf32>
    %63 = arith.cmpf oeq, %57, %62 : vector<16x1xf32>
    %c16_i32_26 = arith.constant 16 : i32
    %64 = vector.broadcast %c16_i32_26 : i32 to vector<16x1xi32>
    %65 = arith.select %63, %35, %64 : vector<16x1xi1>, vector<16x1xi32>
    %66 = vector.shape_cast %65 : vector<16x1xi32> to vector<1x16x1xi32>
    %cst_27 = arith.constant dense<2147483647> : vector<1xi32>
    %67 = vector.multi_reduction <minsi>, %66, %cst_27 [1, 2] : vector<1x16x1xi32> to vector<1xi32>
    %68 = vector.shape_cast %67 : vector<1xi32> to vector<1x1x1xi32>
    %69 = vector.extract %68[0, 0, 0] : i32 from vector<1x1x1xi32>
    %70 = vector.broadcast %61 : f32 to vector<1x1xf32>
    %71 = arith.index_cast %c1_i32 : i32 to index
    %c0_28 = arith.constant 0 : index
    %72 = vector.load %arg4[%71, %c0_28] : memref<24x1xf32, #tpu.memory_space<vmem>>, vector<1x1xf32>
    tpu.vector_store %arg4[%71, %c0_28], %70 {strides = array<i32>} : memref<24x1xf32, #tpu.memory_space<vmem>>, vector<1x1xf32>,
    %73 = arith.index_cast %c1_i32 : i32 to index
    %74 = memref.load %arg5[%73] : memref<24xi32, #tpu.memory_space<smem>>
    memref.store %69, %arg5[%73] : memref<24xi32, #tpu.memory_space<smem>>
    %c2_i32 = arith.constant 2 : i32
    %75 = arith.index_cast %c2_i32 : i32 to index
    %c0_29 = arith.constant 0 : index
    %76 = vector.load %arg3[%75, %c0_29] : memref<24x128xf32, #tpu.memory_space<vmem>>, vector<1x128xf32>
    %c0_30 = arith.constant 0 : index
    %c0_31 = arith.constant 0 : index
    %77 = vector.load %arg3[%c0_30, %c0_31] : memref<24x128xf32, #tpu.memory_space<vmem>>, vector<16x128xf32>
    %78 = vector.broadcast %76 : vector<1x128xf32> to vector<16x128xf32>
    %79 = arith.subf %78, %77 : vector<16x128xf32>
    %cst_32 = arith.constant dense<0x7F800000> : vector<16xf32>
    %80 = vector.multi_reduction <minimumf>, %79, %cst_32 [1] : vector<16x128xf32> to vector<16xf32>
    %81 = vector.shape_cast %80 : vector<16xf32> to vector<16x1xf32>
    %c0_33 = arith.constant 0 : index
    %c0_34 = arith.constant 0 : index
    %82 = vector.load %arg4[%c0_33, %c0_34] : memref<24x1xf32, #tpu.memory_space<vmem>>, vector<16x1xf32>
    %83 = arith.sitofp %c2_i32 : i32 to f32
    %cst_35 = arith.constant 1.000000e+00 : f32
    %84 = arith.subf %cst_35, %83 : f32
    %cst_36 = arith.constant 1.000000e+00 : f32
    %85 = arith.mulf %cst_36, %84 : f32
    %86 = vector.broadcast %c2_i32 : i32 to vector<16x1xi32>
    %87 = arith.cmpi slt, %35, %86 : vector<16x1xi32>
    %88 = arith.addf %82, %81 : vector<16x1xf32>
    %89 = vector.broadcast %85 : f32 to vector<16x1xf32>
    %90 = arith.addf %38, %89 : vector<16x1xf32>
    %91 = arith.addf %88, %90 : vector<16x1xf32>
    %92 = vector.broadcast %cst_16 : f32 to vector<16x1xf32>
    %93 = arith.select %87, %91, %92 : vector<16x1xi1>, vector<16x1xf32>
    %94 = vector.shape_cast %93 : vector<16x1xf32> to vector<1x16x1xf32>
    %cst_37 = arith.constant dense<0x7F800000> : vector<1xf32>
    %95 = vector.multi_reduction <minimumf>, %94, %cst_37 [1, 2] : vector<1x16x1xf32> to vector<1xf32>
    %96 = vector.shape_cast %95 : vector<1xf32> to vector<1x1x1xf32>
    %97 = vector.extract %96[0, 0, 0] : f32 from vector<1x1x1xf32>
    %98 = vector.broadcast %97 : f32 to vector<16x1xf32>
    %99 = arith.cmpf oeq, %93, %98 : vector<16x1xf32>
    %c16_i32_38 = arith.constant 16 : i32
    %100 = vector.broadcast %c16_i32_38 : i32 to vector<16x1xi32>
    %101 = arith.select %99, %35, %100 : vector<16x1xi1>, vector<16x1xi32>
    %102 = vector.shape_cast %101 : vector<16x1xi32> to vector<1x16x1xi32>
    %cst_39 = arith.constant dense<2147483647> : vector<1xi32>
    %103 = vector.multi_reduction <minsi>, %102, %cst_39 [1, 2] : vector<1x16x1xi32> to vector<1xi32>
    %104 = vector.shape_cast %103 : vector<1xi32> to vector<1x1x1xi32>
    %105 = vector.extract %104[0, 0, 0] : i32 from vector<1x1x1xi32>
    %106 = vector.broadcast %97 : f32 to vector<1x1xf32>
    %107 = arith.index_cast %c2_i32 : i32 to index
    %c0_40 = arith.constant 0 : index
    %108 = vector.load %arg4[%107, %c0_40] : memref<24x1xf32, #tpu.memory_space<vmem>>, vector<1x1xf32>
    tpu.vector_store %arg4[%107, %c0_40], %106 {strides = array<i32>} : memref<24x1xf32, #tpu.memory_space<vmem>>, vector<1x1xf32>,
    %109 = arith.index_cast %c2_i32 : i32 to index
    %110 = memref.load %arg5[%109] : memref<24xi32, #tpu.memory_space<smem>>
    memref.store %105, %arg5[%109] : memref<24xi32, #tpu.memory_space<smem>>
    %c3_i32 = arith.constant 3 : i32
    %111 = arith.index_cast %c3_i32 : i32 to index
    %c0_41 = arith.constant 0 : index
    %112 = vector.load %arg3[%111, %c0_41] : memref<24x128xf32, #tpu.memory_space<vmem>>, vector<1x128xf32>
    %c0_42 = arith.constant 0 : index
    %c0_43 = arith.constant 0 : index
    %113 = vector.load %arg3[%c0_42, %c0_43] : memref<24x128xf32, #tpu.memory_space<vmem>>, vector<16x128xf32>
    %114 = vector.broadcast %112 : vector<1x128xf32> to vector<16x128xf32>
    %115 = arith.subf %114, %113 : vector<16x128xf32>
    %cst_44 = arith.constant dense<0x7F800000> : vector<16xf32>
    %116 = vector.multi_reduction <minimumf>, %115, %cst_44 [1] : vector<16x128xf32> to vector<16xf32>
    %117 = vector.shape_cast %116 : vector<16xf32> to vector<16x1xf32>
    %c0_45 = arith.constant 0 : index
    %c0_46 = arith.constant 0 : index
    %118 = vector.load %arg4[%c0_45, %c0_46] : memref<24x1xf32, #tpu.memory_space<vmem>>, vector<16x1xf32>
    %119 = arith.sitofp %c3_i32 : i32 to f32
    %cst_47 = arith.constant 1.000000e+00 : f32
    %120 = arith.subf %cst_47, %119 : f32
    %cst_48 = arith.constant 1.000000e+00 : f32
    %121 = arith.mulf %cst_48, %120 : f32
    %122 = vector.broadcast %c3_i32 : i32 to vector<16x1xi32>
    %123 = arith.cmpi slt, %35, %122 : vector<16x1xi32>
    %124 = arith.addf %118, %117 : vector<16x1xf32>
    %125 = vector.broadcast %121 : f32 to vector<16x1xf32>
    %126 = arith.addf %38, %125 : vector<16x1xf32>
    %127 = arith.addf %124, %126 : vector<16x1xf32>
    %128 = vector.broadcast %cst_16 : f32 to vector<16x1xf32>
    %129 = arith.select %123, %127, %128 : vector<16x1xi1>, vector<16x1xf32>
    %130 = vector.shape_cast %129 : vector<16x1xf32> to vector<1x16x1xf32>
    %cst_49 = arith.constant dense<0x7F800000> : vector<1xf32>
    %131 = vector.multi_reduction <minimumf>, %130, %cst_49 [1, 2] : vector<1x16x1xf32> to vector<1xf32>
    %132 = vector.shape_cast %131 : vector<1xf32> to vector<1x1x1xf32>
    %133 = vector.extract %132[0, 0, 0] : f32 from vector<1x1x1xf32>
    %134 = vector.broadcast %133 : f32 to vector<16x1xf32>
    %135 = arith.cmpf oeq, %129, %134 : vector<16x1xf32>
    %c16_i32_50 = arith.constant 16 : i32
    %136 = vector.broadcast %c16_i32_50 : i32 to vector<16x1xi32>
    %137 = arith.select %135, %35, %136 : vector<16x1xi1>, vector<16x1xi32>
    %138 = vector.shape_cast %137 : vector<16x1xi32> to vector<1x16x1xi32>
    %cst_51 = arith.constant dense<2147483647> : vector<1xi32>
    %139 = vector.multi_reduction <minsi>, %138, %cst_51 [1, 2] : vector<1x16x1xi32> to vector<1xi32>
    %140 = vector.shape_cast %139 : vector<1xi32> to vector<1x1x1xi32>
    %141 = vector.extract %140[0, 0, 0] : i32 from vector<1x1x1xi32>
    %142 = vector.broadcast %133 : f32 to vector<1x1xf32>
    %143 = arith.index_cast %c3_i32 : i32 to index
    %c0_52 = arith.constant 0 : index
    %144 = vector.load %arg4[%143, %c0_52] : memref<24x1xf32, #tpu.memory_space<vmem>>, vector<1x1xf32>
    tpu.vector_store %arg4[%143, %c0_52], %142 {strides = array<i32>} : memref<24x1xf32, #tpu.memory_space<vmem>>, vector<1x1xf32>,
    %145 = arith.index_cast %c3_i32 : i32 to index
    %146 = memref.load %arg5[%145] : memref<24xi32, #tpu.memory_space<smem>>
    memref.store %141, %arg5[%145] : memref<24xi32, #tpu.memory_space<smem>>
    %c4_i32 = arith.constant 4 : i32
    %147 = arith.index_cast %c4_i32 : i32 to index
    %c0_53 = arith.constant 0 : index
    %148 = vector.load %arg3[%147, %c0_53] : memref<24x128xf32, #tpu.memory_space<vmem>>, vector<1x128xf32>
    %c0_54 = arith.constant 0 : index
    %c0_55 = arith.constant 0 : index
    %149 = vector.load %arg3[%c0_54, %c0_55] : memref<24x128xf32, #tpu.memory_space<vmem>>, vector<16x128xf32>
    %150 = vector.broadcast %148 : vector<1x128xf32> to vector<16x128xf32>
    %151 = arith.subf %150, %149 : vector<16x128xf32>
    %cst_56 = arith.constant dense<0x7F800000> : vector<16xf32>
    %152 = vector.multi_reduction <minimumf>, %151, %cst_56 [1] : vector<16x128xf32> to vector<16xf32>
    %153 = vector.shape_cast %152 : vector<16xf32> to vector<16x1xf32>
    %c0_57 = arith.constant 0 : index
    %c0_58 = arith.constant 0 : index
    %154 = vector.load %arg4[%c0_57, %c0_58] : memref<24x1xf32, #tpu.memory_space<vmem>>, vector<16x1xf32>
    %155 = arith.sitofp %c4_i32 : i32 to f32
    %cst_59 = arith.constant 1.000000e+00 : f32
    %156 = arith.subf %cst_59, %155 : f32
    %cst_60 = arith.constant 1.000000e+00 : f32
    %157 = arith.mulf %cst_60, %156 : f32
    %158 = vector.broadcast %c4_i32 : i32 to vector<16x1xi32>
    %159 = arith.cmpi slt, %35, %158 : vector<16x1xi32>
    %160 = arith.addf %154, %153 : vector<16x1xf32>
    %161 = vector.broadcast %157 : f32 to vector<16x1xf32>
    %162 = arith.addf %38, %161 : vector<16x1xf32>
    %163 = arith.addf %160, %162 : vector<16x1xf32>
    %164 = vector.broadcast %cst_16 : f32 to vector<16x1xf32>
    %165 = arith.select %159, %163, %164 : vector<16x1xi1>, vector<16x1xf32>
    %166 = vector.shape_cast %165 : vector<16x1xf32> to vector<1x16x1xf32>
    %cst_61 = arith.constant dense<0x7F800000> : vector<1xf32>
    %167 = vector.multi_reduction <minimumf>, %166, %cst_61 [1, 2] : vector<1x16x1xf32> to vector<1xf32>
    %168 = vector.shape_cast %167 : vector<1xf32> to vector<1x1x1xf32>
    %169 = vector.extract %168[0, 0, 0] : f32 from vector<1x1x1xf32>
    %170 = vector.broadcast %169 : f32 to vector<16x1xf32>
    %171 = arith.cmpf oeq, %165, %170 : vector<16x1xf32>
    %c16_i32_62 = arith.constant 16 : i32
    %172 = vector.broadcast %c16_i32_62 : i32 to vector<16x1xi32>
    %173 = arith.select %171, %35, %172 : vector<16x1xi1>, vector<16x1xi32>
    %174 = vector.shape_cast %173 : vector<16x1xi32> to vector<1x16x1xi32>
    %cst_63 = arith.constant dense<2147483647> : vector<1xi32>
    %175 = vector.multi_reduction <minsi>, %174, %cst_63 [1, 2] : vector<1x16x1xi32> to vector<1xi32>
    %176 = vector.shape_cast %175 : vector<1xi32> to vector<1x1x1xi32>
    %177 = vector.extract %176[0, 0, 0] : i32 from vector<1x1x1xi32>
    %178 = vector.broadcast %169 : f32 to vector<1x1xf32>
    %179 = arith.index_cast %c4_i32 : i32 to index
    %c0_64 = arith.constant 0 : index
    %180 = vector.load %arg4[%179, %c0_64] : memref<24x1xf32, #tpu.memory_space<vmem>>, vector<1x1xf32>
    tpu.vector_store %arg4[%179, %c0_64], %178 {strides = array<i32>} : memref<24x1xf32, #tpu.memory_space<vmem>>, vector<1x1xf32>,
    %181 = arith.index_cast %c4_i32 : i32 to index
    %182 = memref.load %arg5[%181] : memref<24xi32, #tpu.memory_space<smem>>
    memref.store %177, %arg5[%181] : memref<24xi32, #tpu.memory_space<smem>>
    %c5_i32 = arith.constant 5 : i32
    %183 = arith.index_cast %c5_i32 : i32 to index
    %c0_65 = arith.constant 0 : index
    %184 = vector.load %arg3[%183, %c0_65] : memref<24x128xf32, #tpu.memory_space<vmem>>, vector<1x128xf32>
    %c0_66 = arith.constant 0 : index
    %c0_67 = arith.constant 0 : index
    %185 = vector.load %arg3[%c0_66, %c0_67] : memref<24x128xf32, #tpu.memory_space<vmem>>, vector<16x128xf32>
    %186 = vector.broadcast %184 : vector<1x128xf32> to vector<16x128xf32>
    %187 = arith.subf %186, %185 : vector<16x128xf32>
    %cst_68 = arith.constant dense<0x7F800000> : vector<16xf32>
    %188 = vector.multi_reduction <minimumf>, %187, %cst_68 [1] : vector<16x128xf32> to vector<16xf32>
    %189 = vector.shape_cast %188 : vector<16xf32> to vector<16x1xf32>
    %c0_69 = arith.constant 0 : index
    %c0_70 = arith.constant 0 : index
    %190 = vector.load %arg4[%c0_69, %c0_70] : memref<24x1xf32, #tpu.memory_space<vmem>>, vector<16x1xf32>
    %191 = arith.sitofp %c5_i32 : i32 to f32
    %cst_71 = arith.constant 1.000000e+00 : f32
    %192 = arith.subf %cst_71, %191 : f32
    %cst_72 = arith.constant 1.000000e+00 : f32
    %193 = arith.mulf %cst_72, %192 : f32
    %194 = vector.broadcast %c5_i32 : i32 to vector<16x1xi32>
    %195 = arith.cmpi slt, %35, %194 : vector<16x1xi32>
    %196 = arith.addf %190, %189 : vector<16x1xf32>
    %197 = vector.broadcast %193 : f32 to vector<16x1xf32>
    %198 = arith.addf %38, %197 : vector<16x1xf32>
    %199 = arith.addf %196, %198 : vector<16x1xf32>
    %200 = vector.broadcast %cst_16 : f32 to vector<16x1xf32>
    %201 = arith.select %195, %199, %200 : vector<16x1xi1>, vector<16x1xf32>
    %202 = vector.shape_cast %201 : vector<16x1xf32> to vector<1x16x1xf32>
    %cst_73 = arith.constant dense<0x7F800000> : vector<1xf32>
    %203 = vector.multi_reduction <minimumf>, %202, %cst_73 [1, 2] : vector<1x16x1xf32> to vector<1xf32>
    %204 = vector.shape_cast %203 : vector<1xf32> to vector<1x1x1xf32>
    %205 = vector.extract %204[0, 0, 0] : f32 from vector<1x1x1xf32>
    %206 = vector.broadcast %205 : f32 to vector<16x1xf32>
    %207 = arith.cmpf oeq, %201, %206 : vector<16x1xf32>
    %c16_i32_74 = arith.constant 16 : i32
    %208 = vector.broadcast %c16_i32_74 : i32 to vector<16x1xi32>
    %209 = arith.select %207, %35, %208 : vector<16x1xi1>, vector<16x1xi32>
    %210 = vector.shape_cast %209 : vector<16x1xi32> to vector<1x16x1xi32>
    %cst_75 = arith.constant dense<2147483647> : vector<1xi32>
    %211 = vector.multi_reduction <minsi>, %210, %cst_75 [1, 2] : vector<1x16x1xi32> to vector<1xi32>
    %212 = vector.shape_cast %211 : vector<1xi32> to vector<1x1x1xi32>
    %213 = vector.extract %212[0, 0, 0] : i32 from vector<1x1x1xi32>
    %214 = vector.broadcast %205 : f32 to vector<1x1xf32>
    %215 = arith.index_cast %c5_i32 : i32 to index
    %c0_76 = arith.constant 0 : index
    %216 = vector.load %arg4[%215, %c0_76] : memref<24x1xf32, #tpu.memory_space<vmem>>, vector<1x1xf32>
    tpu.vector_store %arg4[%215, %c0_76], %214 {strides = array<i32>} : memref<24x1xf32, #tpu.memory_space<vmem>>, vector<1x1xf32>,
    %217 = arith.index_cast %c5_i32 : i32 to index
    %218 = memref.load %arg5[%217] : memref<24xi32, #tpu.memory_space<smem>>
    memref.store %213, %arg5[%217] : memref<24xi32, #tpu.memory_space<smem>>
    %c6_i32 = arith.constant 6 : i32
    %219 = arith.index_cast %c6_i32 : i32 to index
    %c0_77 = arith.constant 0 : index
    %220 = vector.load %arg3[%219, %c0_77] : memref<24x128xf32, #tpu.memory_space<vmem>>, vector<1x128xf32>
    %c0_78 = arith.constant 0 : index
    %c0_79 = arith.constant 0 : index
    %221 = vector.load %arg3[%c0_78, %c0_79] : memref<24x128xf32, #tpu.memory_space<vmem>>, vector<16x128xf32>
    %222 = vector.broadcast %220 : vector<1x128xf32> to vector<16x128xf32>
    %223 = arith.subf %222, %221 : vector<16x128xf32>
    %cst_80 = arith.constant dense<0x7F800000> : vector<16xf32>
    %224 = vector.multi_reduction <minimumf>, %223, %cst_80 [1] : vector<16x128xf32> to vector<16xf32>
    %225 = vector.shape_cast %224 : vector<16xf32> to vector<16x1xf32>
    %c0_81 = arith.constant 0 : index
    %c0_82 = arith.constant 0 : index
    %226 = vector.load %arg4[%c0_81, %c0_82] : memref<24x1xf32, #tpu.memory_space<vmem>>, vector<16x1xf32>
    %227 = arith.sitofp %c6_i32 : i32 to f32
    %cst_83 = arith.constant 1.000000e+00 : f32
    %228 = arith.subf %cst_83, %227 : f32
    %cst_84 = arith.constant 1.000000e+00 : f32
    %229 = arith.mulf %cst_84, %228 : f32
    %230 = vector.broadcast %c6_i32 : i32 to vector<16x1xi32>
    %231 = arith.cmpi slt, %35, %230 : vector<16x1xi32>
    %232 = arith.addf %226, %225 : vector<16x1xf32>
    %233 = vector.broadcast %229 : f32 to vector<16x1xf32>
    %234 = arith.addf %38, %233 : vector<16x1xf32>
    %235 = arith.addf %232, %234 : vector<16x1xf32>
    %236 = vector.broadcast %cst_16 : f32 to vector<16x1xf32>
    %237 = arith.select %231, %235, %236 : vector<16x1xi1>, vector<16x1xf32>
    %238 = vector.shape_cast %237 : vector<16x1xf32> to vector<1x16x1xf32>
    %cst_85 = arith.constant dense<0x7F800000> : vector<1xf32>
    %239 = vector.multi_reduction <minimumf>, %238, %cst_85 [1, 2] : vector<1x16x1xf32> to vector<1xf32>
    %240 = vector.shape_cast %239 : vector<1xf32> to vector<1x1x1xf32>
    %241 = vector.extract %240[0, 0, 0] : f32 from vector<1x1x1xf32>
    %242 = vector.broadcast %241 : f32 to vector<16x1xf32>
    %243 = arith.cmpf oeq, %237, %242 : vector<16x1xf32>
    %c16_i32_86 = arith.constant 16 : i32
    %244 = vector.broadcast %c16_i32_86 : i32 to vector<16x1xi32>
    %245 = arith.select %243, %35, %244 : vector<16x1xi1>, vector<16x1xi32>
    %246 = vector.shape_cast %245 : vector<16x1xi32> to vector<1x16x1xi32>
    %cst_87 = arith.constant dense<2147483647> : vector<1xi32>
    %247 = vector.multi_reduction <minsi>, %246, %cst_87 [1, 2] : vector<1x16x1xi32> to vector<1xi32>
    %248 = vector.shape_cast %247 : vector<1xi32> to vector<1x1x1xi32>
    %249 = vector.extract %248[0, 0, 0] : i32 from vector<1x1x1xi32>
    %250 = vector.broadcast %241 : f32 to vector<1x1xf32>
    %251 = arith.index_cast %c6_i32 : i32 to index
    %c0_88 = arith.constant 0 : index
    %252 = vector.load %arg4[%251, %c0_88] : memref<24x1xf32, #tpu.memory_space<vmem>>, vector<1x1xf32>
    tpu.vector_store %arg4[%251, %c0_88], %250 {strides = array<i32>} : memref<24x1xf32, #tpu.memory_space<vmem>>, vector<1x1xf32>,
    %253 = arith.index_cast %c6_i32 : i32 to index
    %254 = memref.load %arg5[%253] : memref<24xi32, #tpu.memory_space<smem>>
    memref.store %249, %arg5[%253] : memref<24xi32, #tpu.memory_space<smem>>
    %c7_i32 = arith.constant 7 : i32
    %255 = arith.index_cast %c7_i32 : i32 to index
    %c0_89 = arith.constant 0 : index
    %256 = vector.load %arg3[%255, %c0_89] : memref<24x128xf32, #tpu.memory_space<vmem>>, vector<1x128xf32>
    %c0_90 = arith.constant 0 : index
    %c0_91 = arith.constant 0 : index
    %257 = vector.load %arg3[%c0_90, %c0_91] : memref<24x128xf32, #tpu.memory_space<vmem>>, vector<16x128xf32>
    %258 = vector.broadcast %256 : vector<1x128xf32> to vector<16x128xf32>
    %259 = arith.subf %258, %257 : vector<16x128xf32>
    %cst_92 = arith.constant dense<0x7F800000> : vector<16xf32>
    %260 = vector.multi_reduction <minimumf>, %259, %cst_92 [1] : vector<16x128xf32> to vector<16xf32>
    %261 = vector.shape_cast %260 : vector<16xf32> to vector<16x1xf32>
    %c0_93 = arith.constant 0 : index
    %c0_94 = arith.constant 0 : index
    %262 = vector.load %arg4[%c0_93, %c0_94] : memref<24x1xf32, #tpu.memory_space<vmem>>, vector<16x1xf32>
    %263 = arith.sitofp %c7_i32 : i32 to f32
    %cst_95 = arith.constant 1.000000e+00 : f32
    %264 = arith.subf %cst_95, %263 : f32
    %cst_96 = arith.constant 1.000000e+00 : f32
    %265 = arith.mulf %cst_96, %264 : f32
    %266 = vector.broadcast %c7_i32 : i32 to vector<16x1xi32>
    %267 = arith.cmpi slt, %35, %266 : vector<16x1xi32>
    %268 = arith.addf %262, %261 : vector<16x1xf32>
    %269 = vector.broadcast %265 : f32 to vector<16x1xf32>
    %270 = arith.addf %38, %269 : vector<16x1xf32>
    %271 = arith.addf %268, %270 : vector<16x1xf32>
    %272 = vector.broadcast %cst_16 : f32 to vector<16x1xf32>
    %273 = arith.select %267, %271, %272 : vector<16x1xi1>, vector<16x1xf32>
    %274 = vector.shape_cast %273 : vector<16x1xf32> to vector<1x16x1xf32>
    %cst_97 = arith.constant dense<0x7F800000> : vector<1xf32>
    %275 = vector.multi_reduction <minimumf>, %274, %cst_97 [1, 2] : vector<1x16x1xf32> to vector<1xf32>
    %276 = vector.shape_cast %275 : vector<1xf32> to vector<1x1x1xf32>
    %277 = vector.extract %276[0, 0, 0] : f32 from vector<1x1x1xf32>
    %278 = vector.broadcast %277 : f32 to vector<16x1xf32>
    %279 = arith.cmpf oeq, %273, %278 : vector<16x1xf32>
    %c16_i32_98 = arith.constant 16 : i32
    %280 = vector.broadcast %c16_i32_98 : i32 to vector<16x1xi32>
    %281 = arith.select %279, %35, %280 : vector<16x1xi1>, vector<16x1xi32>
    %282 = vector.shape_cast %281 : vector<16x1xi32> to vector<1x16x1xi32>
    %cst_99 = arith.constant dense<2147483647> : vector<1xi32>
    %283 = vector.multi_reduction <minsi>, %282, %cst_99 [1, 2] : vector<1x16x1xi32> to vector<1xi32>
    %284 = vector.shape_cast %283 : vector<1xi32> to vector<1x1x1xi32>
    %285 = vector.extract %284[0, 0, 0] : i32 from vector<1x1x1xi32>
    %286 = vector.broadcast %277 : f32 to vector<1x1xf32>
    %287 = arith.index_cast %c7_i32 : i32 to index
    %c0_100 = arith.constant 0 : index
    %288 = vector.load %arg4[%287, %c0_100] : memref<24x1xf32, #tpu.memory_space<vmem>>, vector<1x1xf32>
    tpu.vector_store %arg4[%287, %c0_100], %286 {strides = array<i32>} : memref<24x1xf32, #tpu.memory_space<vmem>>, vector<1x1xf32>,
    %289 = arith.index_cast %c7_i32 : i32 to index
    %290 = memref.load %arg5[%289] : memref<24xi32, #tpu.memory_space<smem>>
    memref.store %285, %arg5[%289] : memref<24xi32, #tpu.memory_space<smem>>
    %c8_i32 = arith.constant 8 : i32
    %291 = arith.index_cast %c8_i32 : i32 to index
    %c0_101 = arith.constant 0 : index
    %292 = vector.load %arg3[%291, %c0_101] : memref<24x128xf32, #tpu.memory_space<vmem>>, vector<1x128xf32>
    %c0_102 = arith.constant 0 : index
    %c0_103 = arith.constant 0 : index
    %293 = vector.load %arg3[%c0_102, %c0_103] : memref<24x128xf32, #tpu.memory_space<vmem>>, vector<16x128xf32>
    %294 = vector.broadcast %292 : vector<1x128xf32> to vector<16x128xf32>
    %295 = arith.subf %294, %293 : vector<16x128xf32>
    %cst_104 = arith.constant dense<0x7F800000> : vector<16xf32>
    %296 = vector.multi_reduction <minimumf>, %295, %cst_104 [1] : vector<16x128xf32> to vector<16xf32>
    %297 = vector.shape_cast %296 : vector<16xf32> to vector<16x1xf32>
    %c0_105 = arith.constant 0 : index
    %c0_106 = arith.constant 0 : index
    %298 = vector.load %arg4[%c0_105, %c0_106] : memref<24x1xf32, #tpu.memory_space<vmem>>, vector<16x1xf32>
    %299 = arith.sitofp %c8_i32 : i32 to f32
    %cst_107 = arith.constant 1.000000e+00 : f32
    %300 = arith.subf %cst_107, %299 : f32
    %cst_108 = arith.constant 1.000000e+00 : f32
    %301 = arith.mulf %cst_108, %300 : f32
    %302 = vector.broadcast %c8_i32 : i32 to vector<16x1xi32>
    %303 = arith.cmpi slt, %35, %302 : vector<16x1xi32>
    %304 = arith.addf %298, %297 : vector<16x1xf32>
    %305 = vector.broadcast %301 : f32 to vector<16x1xf32>
    %306 = arith.addf %38, %305 : vector<16x1xf32>
    %307 = arith.addf %304, %306 : vector<16x1xf32>
    %308 = vector.broadcast %cst_16 : f32 to vector<16x1xf32>
    %309 = arith.select %303, %307, %308 : vector<16x1xi1>, vector<16x1xf32>
    %310 = vector.shape_cast %309 : vector<16x1xf32> to vector<1x16x1xf32>
    %cst_109 = arith.constant dense<0x7F800000> : vector<1xf32>
    %311 = vector.multi_reduction <minimumf>, %310, %cst_109 [1, 2] : vector<1x16x1xf32> to vector<1xf32>
    %312 = vector.shape_cast %311 : vector<1xf32> to vector<1x1x1xf32>
    %313 = vector.extract %312[0, 0, 0] : f32 from vector<1x1x1xf32>
    %314 = vector.broadcast %313 : f32 to vector<16x1xf32>
    %315 = arith.cmpf oeq, %309, %314 : vector<16x1xf32>
    %c16_i32_110 = arith.constant 16 : i32
    %316 = vector.broadcast %c16_i32_110 : i32 to vector<16x1xi32>
    %317 = arith.select %315, %35, %316 : vector<16x1xi1>, vector<16x1xi32>
    %318 = vector.shape_cast %317 : vector<16x1xi32> to vector<1x16x1xi32>
    %cst_111 = arith.constant dense<2147483647> : vector<1xi32>
    %319 = vector.multi_reduction <minsi>, %318, %cst_111 [1, 2] : vector<1x16x1xi32> to vector<1xi32>
    %320 = vector.shape_cast %319 : vector<1xi32> to vector<1x1x1xi32>
    %321 = vector.extract %320[0, 0, 0] : i32 from vector<1x1x1xi32>
    %322 = vector.broadcast %313 : f32 to vector<1x1xf32>
    %323 = arith.index_cast %c8_i32 : i32 to index
    %c0_112 = arith.constant 0 : index
    %324 = vector.load %arg4[%323, %c0_112] : memref<24x1xf32, #tpu.memory_space<vmem>>, vector<1x1xf32>
    tpu.vector_store %arg4[%323, %c0_112], %322 {strides = array<i32>} : memref<24x1xf32, #tpu.memory_space<vmem>>, vector<1x1xf32>,
    %325 = arith.index_cast %c8_i32 : i32 to index
    %326 = memref.load %arg5[%325] : memref<24xi32, #tpu.memory_space<smem>>
    memref.store %321, %arg5[%325] : memref<24xi32, #tpu.memory_space<smem>>
    %c9_i32 = arith.constant 9 : i32
    %327 = arith.index_cast %c9_i32 : i32 to index
    %c0_113 = arith.constant 0 : index
    %328 = vector.load %arg3[%327, %c0_113] : memref<24x128xf32, #tpu.memory_space<vmem>>, vector<1x128xf32>
    %c0_114 = arith.constant 0 : index
    %c0_115 = arith.constant 0 : index
    %329 = vector.load %arg3[%c0_114, %c0_115] : memref<24x128xf32, #tpu.memory_space<vmem>>, vector<16x128xf32>
    %330 = vector.broadcast %328 : vector<1x128xf32> to vector<16x128xf32>
    %331 = arith.subf %330, %329 : vector<16x128xf32>
    %cst_116 = arith.constant dense<0x7F800000> : vector<16xf32>
    %332 = vector.multi_reduction <minimumf>, %331, %cst_116 [1] : vector<16x128xf32> to vector<16xf32>
    %333 = vector.shape_cast %332 : vector<16xf32> to vector<16x1xf32>
    %c0_117 = arith.constant 0 : index
    %c0_118 = arith.constant 0 : index
    %334 = vector.load %arg4[%c0_117, %c0_118] : memref<24x1xf32, #tpu.memory_space<vmem>>, vector<16x1xf32>
    %335 = arith.sitofp %c9_i32 : i32 to f32
    %cst_119 = arith.constant 1.000000e+00 : f32
    %336 = arith.subf %cst_119, %335 : f32
    %cst_120 = arith.constant 1.000000e+00 : f32
    %337 = arith.mulf %cst_120, %336 : f32
    %338 = vector.broadcast %c9_i32 : i32 to vector<16x1xi32>
    %339 = arith.cmpi slt, %35, %338 : vector<16x1xi32>
    %340 = arith.addf %334, %333 : vector<16x1xf32>
    %341 = vector.broadcast %337 : f32 to vector<16x1xf32>
    %342 = arith.addf %38, %341 : vector<16x1xf32>
    %343 = arith.addf %340, %342 : vector<16x1xf32>
    %344 = vector.broadcast %cst_16 : f32 to vector<16x1xf32>
    %345 = arith.select %339, %343, %344 : vector<16x1xi1>, vector<16x1xf32>
    %346 = vector.shape_cast %345 : vector<16x1xf32> to vector<1x16x1xf32>
    %cst_121 = arith.constant dense<0x7F800000> : vector<1xf32>
    %347 = vector.multi_reduction <minimumf>, %346, %cst_121 [1, 2] : vector<1x16x1xf32> to vector<1xf32>
    %348 = vector.shape_cast %347 : vector<1xf32> to vector<1x1x1xf32>
    %349 = vector.extract %348[0, 0, 0] : f32 from vector<1x1x1xf32>
    %350 = vector.broadcast %349 : f32 to vector<16x1xf32>
    %351 = arith.cmpf oeq, %345, %350 : vector<16x1xf32>
    %c16_i32_122 = arith.constant 16 : i32
    %352 = vector.broadcast %c16_i32_122 : i32 to vector<16x1xi32>
    %353 = arith.select %351, %35, %352 : vector<16x1xi1>, vector<16x1xi32>
    %354 = vector.shape_cast %353 : vector<16x1xi32> to vector<1x16x1xi32>
    %cst_123 = arith.constant dense<2147483647> : vector<1xi32>
    %355 = vector.multi_reduction <minsi>, %354, %cst_123 [1, 2] : vector<1x16x1xi32> to vector<1xi32>
    %356 = vector.shape_cast %355 : vector<1xi32> to vector<1x1x1xi32>
    %357 = vector.extract %356[0, 0, 0] : i32 from vector<1x1x1xi32>
    %358 = vector.broadcast %349 : f32 to vector<1x1xf32>
    %359 = arith.index_cast %c9_i32 : i32 to index
    %c0_124 = arith.constant 0 : index
    %360 = vector.load %arg4[%359, %c0_124] : memref<24x1xf32, #tpu.memory_space<vmem>>, vector<1x1xf32>
    tpu.vector_store %arg4[%359, %c0_124], %358 {strides = array<i32>} : memref<24x1xf32, #tpu.memory_space<vmem>>, vector<1x1xf32>,
    %361 = arith.index_cast %c9_i32 : i32 to index
    %362 = memref.load %arg5[%361] : memref<24xi32, #tpu.memory_space<smem>>
    memref.store %357, %arg5[%361] : memref<24xi32, #tpu.memory_space<smem>>
    %c10_i32 = arith.constant 10 : i32
    %363 = arith.index_cast %c10_i32 : i32 to index
    %c0_125 = arith.constant 0 : index
    %364 = vector.load %arg3[%363, %c0_125] : memref<24x128xf32, #tpu.memory_space<vmem>>, vector<1x128xf32>
    %c0_126 = arith.constant 0 : index
    %c0_127 = arith.constant 0 : index
    %365 = vector.load %arg3[%c0_126, %c0_127] : memref<24x128xf32, #tpu.memory_space<vmem>>, vector<16x128xf32>
    %366 = vector.broadcast %364 : vector<1x128xf32> to vector<16x128xf32>
    %367 = arith.subf %366, %365 : vector<16x128xf32>
    %cst_128 = arith.constant dense<0x7F800000> : vector<16xf32>
    %368 = vector.multi_reduction <minimumf>, %367, %cst_128 [1] : vector<16x128xf32> to vector<16xf32>
    %369 = vector.shape_cast %368 : vector<16xf32> to vector<16x1xf32>
    %c0_129 = arith.constant 0 : index
    %c0_130 = arith.constant 0 : index
    %370 = vector.load %arg4[%c0_129, %c0_130] : memref<24x1xf32, #tpu.memory_space<vmem>>, vector<16x1xf32>
    %371 = arith.sitofp %c10_i32 : i32 to f32
    %cst_131 = arith.constant 1.000000e+00 : f32
    %372 = arith.subf %cst_131, %371 : f32
    %cst_132 = arith.constant 1.000000e+00 : f32
    %373 = arith.mulf %cst_132, %372 : f32
    %374 = vector.broadcast %c10_i32 : i32 to vector<16x1xi32>
    %375 = arith.cmpi slt, %35, %374 : vector<16x1xi32>
    %376 = arith.addf %370, %369 : vector<16x1xf32>
    %377 = vector.broadcast %373 : f32 to vector<16x1xf32>
    %378 = arith.addf %38, %377 : vector<16x1xf32>
    %379 = arith.addf %376, %378 : vector<16x1xf32>
    %380 = vector.broadcast %cst_16 : f32 to vector<16x1xf32>
    %381 = arith.select %375, %379, %380 : vector<16x1xi1>, vector<16x1xf32>
    %382 = vector.shape_cast %381 : vector<16x1xf32> to vector<1x16x1xf32>
    %cst_133 = arith.constant dense<0x7F800000> : vector<1xf32>
    %383 = vector.multi_reduction <minimumf>, %382, %cst_133 [1, 2] : vector<1x16x1xf32> to vector<1xf32>
    %384 = vector.shape_cast %383 : vector<1xf32> to vector<1x1x1xf32>
    %385 = vector.extract %384[0, 0, 0] : f32 from vector<1x1x1xf32>
    %386 = vector.broadcast %385 : f32 to vector<16x1xf32>
    %387 = arith.cmpf oeq, %381, %386 : vector<16x1xf32>
    %c16_i32_134 = arith.constant 16 : i32
    %388 = vector.broadcast %c16_i32_134 : i32 to vector<16x1xi32>
    %389 = arith.select %387, %35, %388 : vector<16x1xi1>, vector<16x1xi32>
    %390 = vector.shape_cast %389 : vector<16x1xi32> to vector<1x16x1xi32>
    %cst_135 = arith.constant dense<2147483647> : vector<1xi32>
    %391 = vector.multi_reduction <minsi>, %390, %cst_135 [1, 2] : vector<1x16x1xi32> to vector<1xi32>
    %392 = vector.shape_cast %391 : vector<1xi32> to vector<1x1x1xi32>
    %393 = vector.extract %392[0, 0, 0] : i32 from vector<1x1x1xi32>
    %394 = vector.broadcast %385 : f32 to vector<1x1xf32>
    %395 = arith.index_cast %c10_i32 : i32 to index
    %c0_136 = arith.constant 0 : index
    %396 = vector.load %arg4[%395, %c0_136] : memref<24x1xf32, #tpu.memory_space<vmem>>, vector<1x1xf32>
    tpu.vector_store %arg4[%395, %c0_136], %394 {strides = array<i32>} : memref<24x1xf32, #tpu.memory_space<vmem>>, vector<1x1xf32>,
    %397 = arith.index_cast %c10_i32 : i32 to index
    %398 = memref.load %arg5[%397] : memref<24xi32, #tpu.memory_space<smem>>
    memref.store %393, %arg5[%397] : memref<24xi32, #tpu.memory_space<smem>>
    %c11_i32 = arith.constant 11 : i32
    %399 = arith.index_cast %c11_i32 : i32 to index
    %c0_137 = arith.constant 0 : index
    %400 = vector.load %arg3[%399, %c0_137] : memref<24x128xf32, #tpu.memory_space<vmem>>, vector<1x128xf32>
    %c0_138 = arith.constant 0 : index
    %c0_139 = arith.constant 0 : index
    %401 = vector.load %arg3[%c0_138, %c0_139] : memref<24x128xf32, #tpu.memory_space<vmem>>, vector<16x128xf32>
    %402 = vector.broadcast %400 : vector<1x128xf32> to vector<16x128xf32>
    %403 = arith.subf %402, %401 : vector<16x128xf32>
    %cst_140 = arith.constant dense<0x7F800000> : vector<16xf32>
    %404 = vector.multi_reduction <minimumf>, %403, %cst_140 [1] : vector<16x128xf32> to vector<16xf32>
    %405 = vector.shape_cast %404 : vector<16xf32> to vector<16x1xf32>
    %c0_141 = arith.constant 0 : index
    %c0_142 = arith.constant 0 : index
    %406 = vector.load %arg4[%c0_141, %c0_142] : memref<24x1xf32, #tpu.memory_space<vmem>>, vector<16x1xf32>
    %407 = arith.sitofp %c11_i32 : i32 to f32
    %cst_143 = arith.constant 1.000000e+00 : f32
    %408 = arith.subf %cst_143, %407 : f32
    %cst_144 = arith.constant 1.000000e+00 : f32
    %409 = arith.mulf %cst_144, %408 : f32
    %410 = vector.broadcast %c11_i32 : i32 to vector<16x1xi32>
    %411 = arith.cmpi slt, %35, %410 : vector<16x1xi32>
    %412 = arith.addf %406, %405 : vector<16x1xf32>
    %413 = vector.broadcast %409 : f32 to vector<16x1xf32>
    %414 = arith.addf %38, %413 : vector<16x1xf32>
    %415 = arith.addf %412, %414 : vector<16x1xf32>
    %416 = vector.broadcast %cst_16 : f32 to vector<16x1xf32>
    %417 = arith.select %411, %415, %416 : vector<16x1xi1>, vector<16x1xf32>
    %418 = vector.shape_cast %417 : vector<16x1xf32> to vector<1x16x1xf32>
    %cst_145 = arith.constant dense<0x7F800000> : vector<1xf32>
    %419 = vector.multi_reduction <minimumf>, %418, %cst_145 [1, 2] : vector<1x16x1xf32> to vector<1xf32>
    %420 = vector.shape_cast %419 : vector<1xf32> to vector<1x1x1xf32>
    %421 = vector.extract %420[0, 0, 0] : f32 from vector<1x1x1xf32>
    %422 = vector.broadcast %421 : f32 to vector<16x1xf32>
    %423 = arith.cmpf oeq, %417, %422 : vector<16x1xf32>
    %c16_i32_146 = arith.constant 16 : i32
    %424 = vector.broadcast %c16_i32_146 : i32 to vector<16x1xi32>
    %425 = arith.select %423, %35, %424 : vector<16x1xi1>, vector<16x1xi32>
    %426 = vector.shape_cast %425 : vector<16x1xi32> to vector<1x16x1xi32>
    %cst_147 = arith.constant dense<2147483647> : vector<1xi32>
    %427 = vector.multi_reduction <minsi>, %426, %cst_147 [1, 2] : vector<1x16x1xi32> to vector<1xi32>
    %428 = vector.shape_cast %427 : vector<1xi32> to vector<1x1x1xi32>
    %429 = vector.extract %428[0, 0, 0] : i32 from vector<1x1x1xi32>
    %430 = vector.broadcast %421 : f32 to vector<1x1xf32>
    %431 = arith.index_cast %c11_i32 : i32 to index
    %c0_148 = arith.constant 0 : index
    %432 = vector.load %arg4[%431, %c0_148] : memref<24x1xf32, #tpu.memory_space<vmem>>, vector<1x1xf32>
    tpu.vector_store %arg4[%431, %c0_148], %430 {strides = array<i32>} : memref<24x1xf32, #tpu.memory_space<vmem>>, vector<1x1xf32>,
    %433 = arith.index_cast %c11_i32 : i32 to index
    %434 = memref.load %arg5[%433] : memref<24xi32, #tpu.memory_space<smem>>
    memref.store %429, %arg5[%433] : memref<24xi32, #tpu.memory_space<smem>>
    %c12_i32 = arith.constant 12 : i32
    %435 = arith.index_cast %c12_i32 : i32 to index
    %c0_149 = arith.constant 0 : index
    %436 = vector.load %arg3[%435, %c0_149] : memref<24x128xf32, #tpu.memory_space<vmem>>, vector<1x128xf32>
    %c0_150 = arith.constant 0 : index
    %c0_151 = arith.constant 0 : index
    %437 = vector.load %arg3[%c0_150, %c0_151] : memref<24x128xf32, #tpu.memory_space<vmem>>, vector<16x128xf32>
    %438 = vector.broadcast %436 : vector<1x128xf32> to vector<16x128xf32>
    %439 = arith.subf %438, %437 : vector<16x128xf32>
    %cst_152 = arith.constant dense<0x7F800000> : vector<16xf32>
    %440 = vector.multi_reduction <minimumf>, %439, %cst_152 [1] : vector<16x128xf32> to vector<16xf32>
    %441 = vector.shape_cast %440 : vector<16xf32> to vector<16x1xf32>
    %c0_153 = arith.constant 0 : index
    %c0_154 = arith.constant 0 : index
    %442 = vector.load %arg4[%c0_153, %c0_154] : memref<24x1xf32, #tpu.memory_space<vmem>>, vector<16x1xf32>
    %443 = arith.sitofp %c12_i32 : i32 to f32
    %cst_155 = arith.constant 1.000000e+00 : f32
    %444 = arith.subf %cst_155, %443 : f32
    %cst_156 = arith.constant 1.000000e+00 : f32
    %445 = arith.mulf %cst_156, %444 : f32
    %446 = vector.broadcast %c12_i32 : i32 to vector<16x1xi32>
    %447 = arith.cmpi slt, %35, %446 : vector<16x1xi32>
    %448 = arith.addf %442, %441 : vector<16x1xf32>
    %449 = vector.broadcast %445 : f32 to vector<16x1xf32>
    %450 = arith.addf %38, %449 : vector<16x1xf32>
    %451 = arith.addf %448, %450 : vector<16x1xf32>
    %452 = vector.broadcast %cst_16 : f32 to vector<16x1xf32>
    %453 = arith.select %447, %451, %452 : vector<16x1xi1>, vector<16x1xf32>
    %454 = vector.shape_cast %453 : vector<16x1xf32> to vector<1x16x1xf32>
    %cst_157 = arith.constant dense<0x7F800000> : vector<1xf32>
    %455 = vector.multi_reduction <minimumf>, %454, %cst_157 [1, 2] : vector<1x16x1xf32> to vector<1xf32>
    %456 = vector.shape_cast %455 : vector<1xf32> to vector<1x1x1xf32>
    %457 = vector.extract %456[0, 0, 0] : f32 from vector<1x1x1xf32>
    %458 = vector.broadcast %457 : f32 to vector<16x1xf32>
    %459 = arith.cmpf oeq, %453, %458 : vector<16x1xf32>
    %c16_i32_158 = arith.constant 16 : i32
    %460 = vector.broadcast %c16_i32_158 : i32 to vector<16x1xi32>
    %461 = arith.select %459, %35, %460 : vector<16x1xi1>, vector<16x1xi32>
    %462 = vector.shape_cast %461 : vector<16x1xi32> to vector<1x16x1xi32>
    %cst_159 = arith.constant dense<2147483647> : vector<1xi32>
    %463 = vector.multi_reduction <minsi>, %462, %cst_159 [1, 2] : vector<1x16x1xi32> to vector<1xi32>
    %464 = vector.shape_cast %463 : vector<1xi32> to vector<1x1x1xi32>
    %465 = vector.extract %464[0, 0, 0] : i32 from vector<1x1x1xi32>
    %466 = vector.broadcast %457 : f32 to vector<1x1xf32>
    %467 = arith.index_cast %c12_i32 : i32 to index
    %c0_160 = arith.constant 0 : index
    %468 = vector.load %arg4[%467, %c0_160] : memref<24x1xf32, #tpu.memory_space<vmem>>, vector<1x1xf32>
    tpu.vector_store %arg4[%467, %c0_160], %466 {strides = array<i32>} : memref<24x1xf32, #tpu.memory_space<vmem>>, vector<1x1xf32>,
    %469 = arith.index_cast %c12_i32 : i32 to index
    %470 = memref.load %arg5[%469] : memref<24xi32, #tpu.memory_space<smem>>
    memref.store %465, %arg5[%469] : memref<24xi32, #tpu.memory_space<smem>>
    %c13_i32 = arith.constant 13 : i32
    %471 = arith.index_cast %c13_i32 : i32 to index
    %c0_161 = arith.constant 0 : index
    %472 = vector.load %arg3[%471, %c0_161] : memref<24x128xf32, #tpu.memory_space<vmem>>, vector<1x128xf32>
    %c0_162 = arith.constant 0 : index
    %c0_163 = arith.constant 0 : index
    %473 = vector.load %arg3[%c0_162, %c0_163] : memref<24x128xf32, #tpu.memory_space<vmem>>, vector<16x128xf32>
    %474 = vector.broadcast %472 : vector<1x128xf32> to vector<16x128xf32>
    %475 = arith.subf %474, %473 : vector<16x128xf32>
    %cst_164 = arith.constant dense<0x7F800000> : vector<16xf32>
    %476 = vector.multi_reduction <minimumf>, %475, %cst_164 [1] : vector<16x128xf32> to vector<16xf32>
    %477 = vector.shape_cast %476 : vector<16xf32> to vector<16x1xf32>
    %c0_165 = arith.constant 0 : index
    %c0_166 = arith.constant 0 : index
    %478 = vector.load %arg4[%c0_165, %c0_166] : memref<24x1xf32, #tpu.memory_space<vmem>>, vector<16x1xf32>
    %479 = arith.sitofp %c13_i32 : i32 to f32
    %cst_167 = arith.constant 1.000000e+00 : f32
    %480 = arith.subf %cst_167, %479 : f32
    %cst_168 = arith.constant 1.000000e+00 : f32
    %481 = arith.mulf %cst_168, %480 : f32
    %482 = vector.broadcast %c13_i32 : i32 to vector<16x1xi32>
    %483 = arith.cmpi slt, %35, %482 : vector<16x1xi32>
    %484 = arith.addf %478, %477 : vector<16x1xf32>
    %485 = vector.broadcast %481 : f32 to vector<16x1xf32>
    %486 = arith.addf %38, %485 : vector<16x1xf32>
    %487 = arith.addf %484, %486 : vector<16x1xf32>
    %488 = vector.broadcast %cst_16 : f32 to vector<16x1xf32>
    %489 = arith.select %483, %487, %488 : vector<16x1xi1>, vector<16x1xf32>
    %490 = vector.shape_cast %489 : vector<16x1xf32> to vector<1x16x1xf32>
    %cst_169 = arith.constant dense<0x7F800000> : vector<1xf32>
    %491 = vector.multi_reduction <minimumf>, %490, %cst_169 [1, 2] : vector<1x16x1xf32> to vector<1xf32>
    %492 = vector.shape_cast %491 : vector<1xf32> to vector<1x1x1xf32>
    %493 = vector.extract %492[0, 0, 0] : f32 from vector<1x1x1xf32>
    %494 = vector.broadcast %493 : f32 to vector<16x1xf32>
    %495 = arith.cmpf oeq, %489, %494 : vector<16x1xf32>
    %c16_i32_170 = arith.constant 16 : i32
    %496 = vector.broadcast %c16_i32_170 : i32 to vector<16x1xi32>
    %497 = arith.select %495, %35, %496 : vector<16x1xi1>, vector<16x1xi32>
    %498 = vector.shape_cast %497 : vector<16x1xi32> to vector<1x16x1xi32>
    %cst_171 = arith.constant dense<2147483647> : vector<1xi32>
    %499 = vector.multi_reduction <minsi>, %498, %cst_171 [1, 2] : vector<1x16x1xi32> to vector<1xi32>
    %500 = vector.shape_cast %499 : vector<1xi32> to vector<1x1x1xi32>
    %501 = vector.extract %500[0, 0, 0] : i32 from vector<1x1x1xi32>
    %502 = vector.broadcast %493 : f32 to vector<1x1xf32>
    %503 = arith.index_cast %c13_i32 : i32 to index
    %c0_172 = arith.constant 0 : index
    %504 = vector.load %arg4[%503, %c0_172] : memref<24x1xf32, #tpu.memory_space<vmem>>, vector<1x1xf32>
    tpu.vector_store %arg4[%503, %c0_172], %502 {strides = array<i32>} : memref<24x1xf32, #tpu.memory_space<vmem>>, vector<1x1xf32>,
    %505 = arith.index_cast %c13_i32 : i32 to index
    %506 = memref.load %arg5[%505] : memref<24xi32, #tpu.memory_space<smem>>
    memref.store %501, %arg5[%505] : memref<24xi32, #tpu.memory_space<smem>>
    %c14_i32 = arith.constant 14 : i32
    %507 = arith.index_cast %c14_i32 : i32 to index
    %c0_173 = arith.constant 0 : index
    %508 = vector.load %arg3[%507, %c0_173] : memref<24x128xf32, #tpu.memory_space<vmem>>, vector<1x128xf32>
    %c0_174 = arith.constant 0 : index
    %c0_175 = arith.constant 0 : index
    %509 = vector.load %arg3[%c0_174, %c0_175] : memref<24x128xf32, #tpu.memory_space<vmem>>, vector<16x128xf32>
    %510 = vector.broadcast %508 : vector<1x128xf32> to vector<16x128xf32>
    %511 = arith.subf %510, %509 : vector<16x128xf32>
    %cst_176 = arith.constant dense<0x7F800000> : vector<16xf32>
    %512 = vector.multi_reduction <minimumf>, %511, %cst_176 [1] : vector<16x128xf32> to vector<16xf32>
    %513 = vector.shape_cast %512 : vector<16xf32> to vector<16x1xf32>
    %c0_177 = arith.constant 0 : index
    %c0_178 = arith.constant 0 : index
    %514 = vector.load %arg4[%c0_177, %c0_178] : memref<24x1xf32, #tpu.memory_space<vmem>>, vector<16x1xf32>
    %515 = arith.sitofp %c14_i32 : i32 to f32
    %cst_179 = arith.constant 1.000000e+00 : f32
    %516 = arith.subf %cst_179, %515 : f32
    %cst_180 = arith.constant 1.000000e+00 : f32
    %517 = arith.mulf %cst_180, %516 : f32
    %518 = vector.broadcast %c14_i32 : i32 to vector<16x1xi32>
    %519 = arith.cmpi slt, %35, %518 : vector<16x1xi32>
    %520 = arith.addf %514, %513 : vector<16x1xf32>
    %521 = vector.broadcast %517 : f32 to vector<16x1xf32>
    %522 = arith.addf %38, %521 : vector<16x1xf32>
    %523 = arith.addf %520, %522 : vector<16x1xf32>
    %524 = vector.broadcast %cst_16 : f32 to vector<16x1xf32>
    %525 = arith.select %519, %523, %524 : vector<16x1xi1>, vector<16x1xf32>
    %526 = vector.shape_cast %525 : vector<16x1xf32> to vector<1x16x1xf32>
    %cst_181 = arith.constant dense<0x7F800000> : vector<1xf32>
    %527 = vector.multi_reduction <minimumf>, %526, %cst_181 [1, 2] : vector<1x16x1xf32> to vector<1xf32>
    %528 = vector.shape_cast %527 : vector<1xf32> to vector<1x1x1xf32>
    %529 = vector.extract %528[0, 0, 0] : f32 from vector<1x1x1xf32>
    %530 = vector.broadcast %529 : f32 to vector<16x1xf32>
    %531 = arith.cmpf oeq, %525, %530 : vector<16x1xf32>
    %c16_i32_182 = arith.constant 16 : i32
    %532 = vector.broadcast %c16_i32_182 : i32 to vector<16x1xi32>
    %533 = arith.select %531, %35, %532 : vector<16x1xi1>, vector<16x1xi32>
    %534 = vector.shape_cast %533 : vector<16x1xi32> to vector<1x16x1xi32>
    %cst_183 = arith.constant dense<2147483647> : vector<1xi32>
    %535 = vector.multi_reduction <minsi>, %534, %cst_183 [1, 2] : vector<1x16x1xi32> to vector<1xi32>
    %536 = vector.shape_cast %535 : vector<1xi32> to vector<1x1x1xi32>
    %537 = vector.extract %536[0, 0, 0] : i32 from vector<1x1x1xi32>
    %538 = vector.broadcast %529 : f32 to vector<1x1xf32>
    %539 = arith.index_cast %c14_i32 : i32 to index
    %c0_184 = arith.constant 0 : index
    %540 = vector.load %arg4[%539, %c0_184] : memref<24x1xf32, #tpu.memory_space<vmem>>, vector<1x1xf32>
    tpu.vector_store %arg4[%539, %c0_184], %538 {strides = array<i32>} : memref<24x1xf32, #tpu.memory_space<vmem>>, vector<1x1xf32>,
    %541 = arith.index_cast %c14_i32 : i32 to index
    %542 = memref.load %arg5[%541] : memref<24xi32, #tpu.memory_space<smem>>
    memref.store %537, %arg5[%541] : memref<24xi32, #tpu.memory_space<smem>>
    %c15_i32 = arith.constant 15 : i32
    %543 = arith.index_cast %c15_i32 : i32 to index
    %c0_185 = arith.constant 0 : index
    %544 = vector.load %arg3[%543, %c0_185] : memref<24x128xf32, #tpu.memory_space<vmem>>, vector<1x128xf32>
    %c0_186 = arith.constant 0 : index
    %c0_187 = arith.constant 0 : index
    %545 = vector.load %arg3[%c0_186, %c0_187] : memref<24x128xf32, #tpu.memory_space<vmem>>, vector<16x128xf32>
    %546 = vector.broadcast %544 : vector<1x128xf32> to vector<16x128xf32>
    %547 = arith.subf %546, %545 : vector<16x128xf32>
    %cst_188 = arith.constant dense<0x7F800000> : vector<16xf32>
    %548 = vector.multi_reduction <minimumf>, %547, %cst_188 [1] : vector<16x128xf32> to vector<16xf32>
    %549 = vector.shape_cast %548 : vector<16xf32> to vector<16x1xf32>
    %c0_189 = arith.constant 0 : index
    %c0_190 = arith.constant 0 : index
    %550 = vector.load %arg4[%c0_189, %c0_190] : memref<24x1xf32, #tpu.memory_space<vmem>>, vector<16x1xf32>
    %551 = arith.sitofp %c15_i32 : i32 to f32
    %cst_191 = arith.constant 1.000000e+00 : f32
    %552 = arith.subf %cst_191, %551 : f32
    %cst_192 = arith.constant 1.000000e+00 : f32
    %553 = arith.mulf %cst_192, %552 : f32
    %554 = vector.broadcast %c15_i32 : i32 to vector<16x1xi32>
    %555 = arith.cmpi slt, %35, %554 : vector<16x1xi32>
    %556 = arith.addf %550, %549 : vector<16x1xf32>
    %557 = vector.broadcast %553 : f32 to vector<16x1xf32>
    %558 = arith.addf %38, %557 : vector<16x1xf32>
    %559 = arith.addf %556, %558 : vector<16x1xf32>
    %560 = vector.broadcast %cst_16 : f32 to vector<16x1xf32>
    %561 = arith.select %555, %559, %560 : vector<16x1xi1>, vector<16x1xf32>
    %562 = vector.shape_cast %561 : vector<16x1xf32> to vector<1x16x1xf32>
    %cst_193 = arith.constant dense<0x7F800000> : vector<1xf32>
    %563 = vector.multi_reduction <minimumf>, %562, %cst_193 [1, 2] : vector<1x16x1xf32> to vector<1xf32>
    %564 = vector.shape_cast %563 : vector<1xf32> to vector<1x1x1xf32>
    %565 = vector.extract %564[0, 0, 0] : f32 from vector<1x1x1xf32>
    %566 = vector.broadcast %565 : f32 to vector<16x1xf32>
    %567 = arith.cmpf oeq, %561, %566 : vector<16x1xf32>
    %c16_i32_194 = arith.constant 16 : i32
    %568 = vector.broadcast %c16_i32_194 : i32 to vector<16x1xi32>
    %569 = arith.select %567, %35, %568 : vector<16x1xi1>, vector<16x1xi32>
    %570 = vector.shape_cast %569 : vector<16x1xi32> to vector<1x16x1xi32>
    %cst_195 = arith.constant dense<2147483647> : vector<1xi32>
    %571 = vector.multi_reduction <minsi>, %570, %cst_195 [1, 2] : vector<1x16x1xi32> to vector<1xi32>
    %572 = vector.shape_cast %571 : vector<1xi32> to vector<1x1x1xi32>
    %573 = vector.extract %572[0, 0, 0] : i32 from vector<1x1x1xi32>
    %574 = vector.broadcast %565 : f32 to vector<1x1xf32>
    %575 = arith.index_cast %c15_i32 : i32 to index
    %c0_196 = arith.constant 0 : index
    %576 = vector.load %arg4[%575, %c0_196] : memref<24x1xf32, #tpu.memory_space<vmem>>, vector<1x1xf32>
    tpu.vector_store %arg4[%575, %c0_196], %574 {strides = array<i32>} : memref<24x1xf32, #tpu.memory_space<vmem>>, vector<1x1xf32>,
    %577 = arith.index_cast %c15_i32 : i32 to index
    %578 = memref.load %arg5[%577] : memref<24xi32, #tpu.memory_space<smem>>
    memref.store %573, %arg5[%577] : memref<24xi32, #tpu.memory_space<smem>>
    %c16_i32_197 = arith.constant 16 : i32
    %579 = arith.index_cast %c16_i32_197 : i32 to index
    %c0_198 = arith.constant 0 : index
    %580 = vector.load %arg3[%579, %c0_198] : memref<24x128xf32, #tpu.memory_space<vmem>>, vector<1x128xf32>
    %c0_199 = arith.constant 0 : index
    %c0_200 = arith.constant 0 : index
    %581 = vector.load %arg3[%c0_199, %c0_200] : memref<24x128xf32, #tpu.memory_space<vmem>>, vector<16x128xf32>
    %582 = vector.broadcast %580 : vector<1x128xf32> to vector<16x128xf32>
    %583 = arith.subf %582, %581 : vector<16x128xf32>
    %cst_201 = arith.constant dense<0x7F800000> : vector<16xf32>
    %584 = vector.multi_reduction <minimumf>, %583, %cst_201 [1] : vector<16x128xf32> to vector<16xf32>
    %585 = vector.shape_cast %584 : vector<16xf32> to vector<16x1xf32>
    %c0_202 = arith.constant 0 : index
    %c0_203 = arith.constant 0 : index
    %586 = vector.load %arg4[%c0_202, %c0_203] : memref<24x1xf32, #tpu.memory_space<vmem>>, vector<16x1xf32>
    %587 = arith.sitofp %c16_i32_197 : i32 to f32
    %cst_204 = arith.constant 1.000000e+00 : f32
    %588 = arith.subf %cst_204, %587 : f32
    %cst_205 = arith.constant 1.000000e+00 : f32
    %589 = arith.mulf %cst_205, %588 : f32
    %590 = vector.broadcast %c16_i32_197 : i32 to vector<16x1xi32>
    %591 = arith.cmpi slt, %35, %590 : vector<16x1xi32>
    %592 = arith.addf %586, %585 : vector<16x1xf32>
    %593 = vector.broadcast %589 : f32 to vector<16x1xf32>
    %594 = arith.addf %38, %593 : vector<16x1xf32>
    %595 = arith.addf %592, %594 : vector<16x1xf32>
    %596 = vector.broadcast %cst_16 : f32 to vector<16x1xf32>
    %597 = arith.select %591, %595, %596 : vector<16x1xi1>, vector<16x1xf32>
    %598 = vector.shape_cast %597 : vector<16x1xf32> to vector<1x16x1xf32>
    %cst_206 = arith.constant dense<0x7F800000> : vector<1xf32>
    %599 = vector.multi_reduction <minimumf>, %598, %cst_206 [1, 2] : vector<1x16x1xf32> to vector<1xf32>
    %600 = vector.shape_cast %599 : vector<1xf32> to vector<1x1x1xf32>
    %601 = vector.extract %600[0, 0, 0] : f32 from vector<1x1x1xf32>
    %602 = vector.broadcast %601 : f32 to vector<16x1xf32>
    %603 = arith.cmpf oeq, %597, %602 : vector<16x1xf32>
    %c16_i32_207 = arith.constant 16 : i32
    %604 = vector.broadcast %c16_i32_207 : i32 to vector<16x1xi32>
    %605 = arith.select %603, %35, %604 : vector<16x1xi1>, vector<16x1xi32>
    %606 = vector.shape_cast %605 : vector<16x1xi32> to vector<1x16x1xi32>
    %cst_208 = arith.constant dense<2147483647> : vector<1xi32>
    %607 = vector.multi_reduction <minsi>, %606, %cst_208 [1, 2] : vector<1x16x1xi32> to vector<1xi32>
    %608 = vector.shape_cast %607 : vector<1xi32> to vector<1x1x1xi32>
    %609 = vector.extract %608[0, 0, 0] : i32 from vector<1x1x1xi32>
    %610 = vector.broadcast %601 : f32 to vector<1x1xf32>
    %611 = arith.index_cast %c16_i32_197 : i32 to index
    %c0_209 = arith.constant 0 : index
    %612 = vector.load %arg4[%611, %c0_209] : memref<24x1xf32, #tpu.memory_space<vmem>>, vector<1x1xf32>
    tpu.vector_store %arg4[%611, %c0_209], %610 {strides = array<i32>} : memref<24x1xf32, #tpu.memory_space<vmem>>, vector<1x1xf32>,
    %613 = arith.index_cast %c16_i32_197 : i32 to index
    %614 = memref.load %arg5[%613] : memref<24xi32, #tpu.memory_space<smem>>
    memref.store %609, %arg5[%613] : memref<24xi32, #tpu.memory_space<smem>>
    %c16_i32_210 = arith.constant 16 : i32
    %615 = tpu.iota {dimensions = array<i32: 1>} : vector<1x128xi32>
    %c0_i32_211 = arith.constant 0 : i32
    %616 = vector.broadcast %c0_i32_211 : i32 to vector<1x128xi32>
    %c16_i32_212 = arith.constant 16 : i32
    %c0_i32_213 = arith.constant 0 : i32
    %617 = arith.index_cast %c16_i32_212 : i32 to index
    %618 = memref.load %arg5[%617] : memref<24xi32, #tpu.memory_space<smem>>
    %619 = arith.index_cast %c16_i32_212 : i32 to index
    %c0_214 = arith.constant 0 : index
    %620 = vector.load %arg3[%619, %c0_214] : memref<24x128xf32, #tpu.memory_space<vmem>>, vector<1x128xf32>
    %621 = arith.index_cast %618 : i32 to index
    %c0_215 = arith.constant 0 : index
    %622 = vector.load %arg3[%621, %c0_215] : memref<24x128xf32, #tpu.memory_space<vmem>>, vector<1x128xf32>
    %623 = arith.subf %620, %622 : vector<1x128xf32>
    %624 = vector.shape_cast %623 : vector<1x128xf32> to vector<1x1x128xf32>
    %cst_216 = arith.constant dense<0x7F800000> : vector<1xf32>
    %625 = vector.multi_reduction <minimumf>, %624, %cst_216 [1, 2] : vector<1x1x128xf32> to vector<1xf32>
    %626 = vector.shape_cast %625 : vector<1xf32> to vector<1x1x1xf32>
    %627 = vector.extract %626[0, 0, 0] : f32 from vector<1x1x1xf32>
    %628 = vector.broadcast %627 : f32 to vector<1x128xf32>
    %629 = arith.cmpf oeq, %623, %628 : vector<1x128xf32>
    %c16_i32_217 = arith.constant 16 : i32
    %630 = vector.broadcast %c16_i32_217 : i32 to vector<1x128xi32>
    %631 = arith.select %629, %10, %630 : vector<1x128xi1>, vector<1x128xi32>
    %632 = vector.shape_cast %631 : vector<1x128xi32> to vector<1x1x128xi32>
    %cst_218 = arith.constant dense<2147483647> : vector<1xi32>
    %633 = vector.multi_reduction <minsi>, %632, %cst_218 [1, 2] : vector<1x1x128xi32> to vector<1xi32>
    %634 = vector.shape_cast %633 : vector<1xi32> to vector<1x1x1xi32>
    %635 = vector.extract %634[0, 0, 0] : i32 from vector<1x1x1xi32>
    %c0_i32_219 = arith.constant 0 : i32
    %636 = arith.cmpi sgt, %c16_i32_212, %c0_i32_219 : i32
    %637 = vector.broadcast %618 : i32 to vector<1x128xi32>
    %638 = arith.cmpi sge, %615, %637 : vector<1x128xi32>
    %639 = vector.broadcast %636 : i1 to vector<1x128xi1>
    %640 = arith.andi %639, %638 : vector<1x128xi1>
    %641 = vector.broadcast %c16_i32_212 : i32 to vector<1x128xi32>
    %642 = arith.cmpi slt, %615, %641 : vector<1x128xi32>
    %643 = arith.andi %640, %642 : vector<1x128xi1>
    %644 = vector.broadcast %635 : i32 to vector<1x128xi32>
    %645 = arith.select %643, %644, %616 : vector<1x128xi1>, vector<1x128xi32>
    %646 = arith.select %636, %618, %c16_i32_212 : i32
    %c1_i32_220 = arith.constant 1 : i32
    %647 = arith.index_cast %646 : i32 to index
    %648 = memref.load %arg5[%647] : memref<24xi32, #tpu.memory_space<smem>>
    %649 = arith.index_cast %646 : i32 to index
    %c0_221 = arith.constant 0 : index
    %650 = vector.load %arg3[%649, %c0_221] : memref<24x128xf32, #tpu.memory_space<vmem>>, vector<1x128xf32>
    %651 = arith.index_cast %648 : i32 to index
    %c0_222 = arith.constant 0 : index
    %652 = vector.load %arg3[%651, %c0_222] : memref<24x128xf32, #tpu.memory_space<vmem>>, vector<1x128xf32>
    %653 = arith.subf %650, %652 : vector<1x128xf32>
    %654 = vector.shape_cast %653 : vector<1x128xf32> to vector<1x1x128xf32>
    %cst_223 = arith.constant dense<0x7F800000> : vector<1xf32>
    %655 = vector.multi_reduction <minimumf>, %654, %cst_223 [1, 2] : vector<1x1x128xf32> to vector<1xf32>
    %656 = vector.shape_cast %655 : vector<1xf32> to vector<1x1x1xf32>
    %657 = vector.extract %656[0, 0, 0] : f32 from vector<1x1x1xf32>
    %658 = vector.broadcast %657 : f32 to vector<1x128xf32>
    %659 = arith.cmpf oeq, %653, %658 : vector<1x128xf32>
    %c16_i32_224 = arith.constant 16 : i32
    %660 = vector.broadcast %c16_i32_224 : i32 to vector<1x128xi32>
    %661 = arith.select %659, %10, %660 : vector<1x128xi1>, vector<1x128xi32>
    %662 = vector.shape_cast %661 : vector<1x128xi32> to vector<1x1x128xi32>
    %cst_225 = arith.constant dense<2147483647> : vector<1xi32>
    %663 = vector.multi_reduction <minsi>, %662, %cst_225 [1, 2] : vector<1x1x128xi32> to vector<1xi32>
    %664 = vector.shape_cast %663 : vector<1xi32> to vector<1x1x1xi32>
    %665 = vector.extract %664[0, 0, 0] : i32 from vector<1x1x1xi32>
    %c0_i32_226 = arith.constant 0 : i32
    %666 = arith.cmpi sgt, %646, %c0_i32_226 : i32
    %667 = vector.broadcast %648 : i32 to vector<1x128xi32>
    %668 = arith.cmpi sge, %615, %667 : vector<1x128xi32>
    %669 = vector.broadcast %666 : i1 to vector<1x128xi1>
    %670 = arith.andi %669, %668 : vector<1x128xi1>
    %671 = vector.broadcast %646 : i32 to vector<1x128xi32>
    %672 = arith.cmpi slt, %615, %671 : vector<1x128xi32>
    %673 = arith.andi %670, %672 : vector<1x128xi1>
    %674 = vector.broadcast %665 : i32 to vector<1x128xi32>
    %675 = arith.select %673, %674, %645 : vector<1x128xi1>, vector<1x128xi32>
    %676 = arith.select %666, %648, %646 : i32
    %c2_i32_227 = arith.constant 2 : i32
    %677 = arith.index_cast %676 : i32 to index
    %678 = memref.load %arg5[%677] : memref<24xi32, #tpu.memory_space<smem>>
    %679 = arith.index_cast %676 : i32 to index
    %c0_228 = arith.constant 0 : index
    %680 = vector.load %arg3[%679, %c0_228] : memref<24x128xf32, #tpu.memory_space<vmem>>, vector<1x128xf32>
    %681 = arith.index_cast %678 : i32 to index
    %c0_229 = arith.constant 0 : index
    %682 = vector.load %arg3[%681, %c0_229] : memref<24x128xf32, #tpu.memory_space<vmem>>, vector<1x128xf32>
    %683 = arith.subf %680, %682 : vector<1x128xf32>
    %684 = vector.shape_cast %683 : vector<1x128xf32> to vector<1x1x128xf32>
    %cst_230 = arith.constant dense<0x7F800000> : vector<1xf32>
    %685 = vector.multi_reduction <minimumf>, %684, %cst_230 [1, 2] : vector<1x1x128xf32> to vector<1xf32>
    %686 = vector.shape_cast %685 : vector<1xf32> to vector<1x1x1xf32>
    %687 = vector.extract %686[0, 0, 0] : f32 from vector<1x1x1xf32>
    %688 = vector.broadcast %687 : f32 to vector<1x128xf32>
    %689 = arith.cmpf oeq, %683, %688 : vector<1x128xf32>
    %c16_i32_231 = arith.constant 16 : i32
    %690 = vector.broadcast %c16_i32_231 : i32 to vector<1x128xi32>
    %691 = arith.select %689, %10, %690 : vector<1x128xi1>, vector<1x128xi32>
    %692 = vector.shape_cast %691 : vector<1x128xi32> to vector<1x1x128xi32>
    %cst_232 = arith.constant dense<2147483647> : vector<1xi32>
    %693 = vector.multi_reduction <minsi>, %692, %cst_232 [1, 2] : vector<1x1x128xi32> to vector<1xi32>
    %694 = vector.shape_cast %693 : vector<1xi32> to vector<1x1x1xi32>
    %695 = vector.extract %694[0, 0, 0] : i32 from vector<1x1x1xi32>
    %c0_i32_233 = arith.constant 0 : i32
    %696 = arith.cmpi sgt, %676, %c0_i32_233 : i32
    %697 = vector.broadcast %678 : i32 to vector<1x128xi32>
    %698 = arith.cmpi sge, %615, %697 : vector<1x128xi32>
    %699 = vector.broadcast %696 : i1 to vector<1x128xi1>
    %700 = arith.andi %699, %698 : vector<1x128xi1>
    %701 = vector.broadcast %676 : i32 to vector<1x128xi32>
    %702 = arith.cmpi slt, %615, %701 : vector<1x128xi32>
    %703 = arith.andi %700, %702 : vector<1x128xi1>
    %704 = vector.broadcast %695 : i32 to vector<1x128xi32>
    %705 = arith.select %703, %704, %675 : vector<1x128xi1>, vector<1x128xi32>
    %706 = arith.select %696, %678, %676 : i32
    %c3_i32_234 = arith.constant 3 : i32
    %707 = arith.index_cast %706 : i32 to index
    %708 = memref.load %arg5[%707] : memref<24xi32, #tpu.memory_space<smem>>
    %709 = arith.index_cast %706 : i32 to index
    %c0_235 = arith.constant 0 : index
    %710 = vector.load %arg3[%709, %c0_235] : memref<24x128xf32, #tpu.memory_space<vmem>>, vector<1x128xf32>
    %711 = arith.index_cast %708 : i32 to index
    %c0_236 = arith.constant 0 : index
    %712 = vector.load %arg3[%711, %c0_236] : memref<24x128xf32, #tpu.memory_space<vmem>>, vector<1x128xf32>
    %713 = arith.subf %710, %712 : vector<1x128xf32>
    %714 = vector.shape_cast %713 : vector<1x128xf32> to vector<1x1x128xf32>
    %cst_237 = arith.constant dense<0x7F800000> : vector<1xf32>
    %715 = vector.multi_reduction <minimumf>, %714, %cst_237 [1, 2] : vector<1x1x128xf32> to vector<1xf32>
    %716 = vector.shape_cast %715 : vector<1xf32> to vector<1x1x1xf32>
    %717 = vector.extract %716[0, 0, 0] : f32 from vector<1x1x1xf32>
    %718 = vector.broadcast %717 : f32 to vector<1x128xf32>
    %719 = arith.cmpf oeq, %713, %718 : vector<1x128xf32>
    %c16_i32_238 = arith.constant 16 : i32
    %720 = vector.broadcast %c16_i32_238 : i32 to vector<1x128xi32>
    %721 = arith.select %719, %10, %720 : vector<1x128xi1>, vector<1x128xi32>
    %722 = vector.shape_cast %721 : vector<1x128xi32> to vector<1x1x128xi32>
    %cst_239 = arith.constant dense<2147483647> : vector<1xi32>
    %723 = vector.multi_reduction <minsi>, %722, %cst_239 [1, 2] : vector<1x1x128xi32> to vector<1xi32>
    %724 = vector.shape_cast %723 : vector<1xi32> to vector<1x1x1xi32>
    %725 = vector.extract %724[0, 0, 0] : i32 from vector<1x1x1xi32>
    %c0_i32_240 = arith.constant 0 : i32
    %726 = arith.cmpi sgt, %706, %c0_i32_240 : i32
    %727 = vector.broadcast %708 : i32 to vector<1x128xi32>
    %728 = arith.cmpi sge, %615, %727 : vector<1x128xi32>
    %729 = vector.broadcast %726 : i1 to vector<1x128xi1>
    %730 = arith.andi %729, %728 : vector<1x128xi1>
    %731 = vector.broadcast %706 : i32 to vector<1x128xi32>
    %732 = arith.cmpi slt, %615, %731 : vector<1x128xi32>
    %733 = arith.andi %730, %732 : vector<1x128xi1>
    %734 = vector.broadcast %725 : i32 to vector<1x128xi32>
    %735 = arith.select %733, %734, %705 : vector<1x128xi1>, vector<1x128xi32>
    %736 = arith.select %726, %708, %706 : i32
    %c4_i32_241 = arith.constant 4 : i32
    %737 = arith.index_cast %736 : i32 to index
    %738 = memref.load %arg5[%737] : memref<24xi32, #tpu.memory_space<smem>>
    %739 = arith.index_cast %736 : i32 to index
    %c0_242 = arith.constant 0 : index
    %740 = vector.load %arg3[%739, %c0_242] : memref<24x128xf32, #tpu.memory_space<vmem>>, vector<1x128xf32>
    %741 = arith.index_cast %738 : i32 to index
    %c0_243 = arith.constant 0 : index
    %742 = vector.load %arg3[%741, %c0_243] : memref<24x128xf32, #tpu.memory_space<vmem>>, vector<1x128xf32>
    %743 = arith.subf %740, %742 : vector<1x128xf32>
    %744 = vector.shape_cast %743 : vector<1x128xf32> to vector<1x1x128xf32>
    %cst_244 = arith.constant dense<0x7F800000> : vector<1xf32>
    %745 = vector.multi_reduction <minimumf>, %744, %cst_244 [1, 2] : vector<1x1x128xf32> to vector<1xf32>
    %746 = vector.shape_cast %745 : vector<1xf32> to vector<1x1x1xf32>
    %747 = vector.extract %746[0, 0, 0] : f32 from vector<1x1x1xf32>
    %748 = vector.broadcast %747 : f32 to vector<1x128xf32>
    %749 = arith.cmpf oeq, %743, %748 : vector<1x128xf32>
    %c16_i32_245 = arith.constant 16 : i32
    %750 = vector.broadcast %c16_i32_245 : i32 to vector<1x128xi32>
    %751 = arith.select %749, %10, %750 : vector<1x128xi1>, vector<1x128xi32>
    %752 = vector.shape_cast %751 : vector<1x128xi32> to vector<1x1x128xi32>
    %cst_246 = arith.constant dense<2147483647> : vector<1xi32>
    %753 = vector.multi_reduction <minsi>, %752, %cst_246 [1, 2] : vector<1x1x128xi32> to vector<1xi32>
    %754 = vector.shape_cast %753 : vector<1xi32> to vector<1x1x1xi32>
    %755 = vector.extract %754[0, 0, 0] : i32 from vector<1x1x1xi32>
    %c0_i32_247 = arith.constant 0 : i32
    %756 = arith.cmpi sgt, %736, %c0_i32_247 : i32
    %757 = vector.broadcast %738 : i32 to vector<1x128xi32>
    %758 = arith.cmpi sge, %615, %757 : vector<1x128xi32>
    %759 = vector.broadcast %756 : i1 to vector<1x128xi1>
    %760 = arith.andi %759, %758 : vector<1x128xi1>
    %761 = vector.broadcast %736 : i32 to vector<1x128xi32>
    %762 = arith.cmpi slt, %615, %761 : vector<1x128xi32>
    %763 = arith.andi %760, %762 : vector<1x128xi1>
    %764 = vector.broadcast %755 : i32 to vector<1x128xi32>
    %765 = arith.select %763, %764, %735 : vector<1x128xi1>, vector<1x128xi32>
    %766 = arith.select %756, %738, %736 : i32
    %c5_i32_248 = arith.constant 5 : i32
    %767 = arith.index_cast %766 : i32 to index
    %768 = memref.load %arg5[%767] : memref<24xi32, #tpu.memory_space<smem>>
    %769 = arith.index_cast %766 : i32 to index
    %c0_249 = arith.constant 0 : index
    %770 = vector.load %arg3[%769, %c0_249] : memref<24x128xf32, #tpu.memory_space<vmem>>, vector<1x128xf32>
    %771 = arith.index_cast %768 : i32 to index
    %c0_250 = arith.constant 0 : index
    %772 = vector.load %arg3[%771, %c0_250] : memref<24x128xf32, #tpu.memory_space<vmem>>, vector<1x128xf32>
    %773 = arith.subf %770, %772 : vector<1x128xf32>
    %774 = vector.shape_cast %773 : vector<1x128xf32> to vector<1x1x128xf32>
    %cst_251 = arith.constant dense<0x7F800000> : vector<1xf32>
    %775 = vector.multi_reduction <minimumf>, %774, %cst_251 [1, 2] : vector<1x1x128xf32> to vector<1xf32>
    %776 = vector.shape_cast %775 : vector<1xf32> to vector<1x1x1xf32>
    %777 = vector.extract %776[0, 0, 0] : f32 from vector<1x1x1xf32>
    %778 = vector.broadcast %777 : f32 to vector<1x128xf32>
    %779 = arith.cmpf oeq, %773, %778 : vector<1x128xf32>
    %c16_i32_252 = arith.constant 16 : i32
    %780 = vector.broadcast %c16_i32_252 : i32 to vector<1x128xi32>
    %781 = arith.select %779, %10, %780 : vector<1x128xi1>, vector<1x128xi32>
    %782 = vector.shape_cast %781 : vector<1x128xi32> to vector<1x1x128xi32>
    %cst_253 = arith.constant dense<2147483647> : vector<1xi32>
    %783 = vector.multi_reduction <minsi>, %782, %cst_253 [1, 2] : vector<1x1x128xi32> to vector<1xi32>
    %784 = vector.shape_cast %783 : vector<1xi32> to vector<1x1x1xi32>
    %785 = vector.extract %784[0, 0, 0] : i32 from vector<1x1x1xi32>
    %c0_i32_254 = arith.constant 0 : i32
    %786 = arith.cmpi sgt, %766, %c0_i32_254 : i32
    %787 = vector.broadcast %768 : i32 to vector<1x128xi32>
    %788 = arith.cmpi sge, %615, %787 : vector<1x128xi32>
    %789 = vector.broadcast %786 : i1 to vector<1x128xi1>
    %790 = arith.andi %789, %788 : vector<1x128xi1>
    %791 = vector.broadcast %766 : i32 to vector<1x128xi32>
    %792 = arith.cmpi slt, %615, %791 : vector<1x128xi32>
    %793 = arith.andi %790, %792 : vector<1x128xi1>
    %794 = vector.broadcast %785 : i32 to vector<1x128xi32>
    %795 = arith.select %793, %794, %765 : vector<1x128xi1>, vector<1x128xi32>
    %796 = arith.select %786, %768, %766 : i32
    %c6_i32_255 = arith.constant 6 : i32
    %797 = arith.index_cast %796 : i32 to index
    %798 = memref.load %arg5[%797] : memref<24xi32, #tpu.memory_space<smem>>
    %799 = arith.index_cast %796 : i32 to index
    %c0_256 = arith.constant 0 : index
    %800 = vector.load %arg3[%799, %c0_256] : memref<24x128xf32, #tpu.memory_space<vmem>>, vector<1x128xf32>
    %801 = arith.index_cast %798 : i32 to index
    %c0_257 = arith.constant 0 : index
    %802 = vector.load %arg3[%801, %c0_257] : memref<24x128xf32, #tpu.memory_space<vmem>>, vector<1x128xf32>
    %803 = arith.subf %800, %802 : vector<1x128xf32>
    %804 = vector.shape_cast %803 : vector<1x128xf32> to vector<1x1x128xf32>
    %cst_258 = arith.constant dense<0x7F800000> : vector<1xf32>
    %805 = vector.multi_reduction <minimumf>, %804, %cst_258 [1, 2] : vector<1x1x128xf32> to vector<1xf32>
    %806 = vector.shape_cast %805 : vector<1xf32> to vector<1x1x1xf32>
    %807 = vector.extract %806[0, 0, 0] : f32 from vector<1x1x1xf32>
    %808 = vector.broadcast %807 : f32 to vector<1x128xf32>
    %809 = arith.cmpf oeq, %803, %808 : vector<1x128xf32>
    %c16_i32_259 = arith.constant 16 : i32
    %810 = vector.broadcast %c16_i32_259 : i32 to vector<1x128xi32>
    %811 = arith.select %809, %10, %810 : vector<1x128xi1>, vector<1x128xi32>
    %812 = vector.shape_cast %811 : vector<1x128xi32> to vector<1x1x128xi32>
    %cst_260 = arith.constant dense<2147483647> : vector<1xi32>
    %813 = vector.multi_reduction <minsi>, %812, %cst_260 [1, 2] : vector<1x1x128xi32> to vector<1xi32>
    %814 = vector.shape_cast %813 : vector<1xi32> to vector<1x1x1xi32>
    %815 = vector.extract %814[0, 0, 0] : i32 from vector<1x1x1xi32>
    %c0_i32_261 = arith.constant 0 : i32
    %816 = arith.cmpi sgt, %796, %c0_i32_261 : i32
    %817 = vector.broadcast %798 : i32 to vector<1x128xi32>
    %818 = arith.cmpi sge, %615, %817 : vector<1x128xi32>
    %819 = vector.broadcast %816 : i1 to vector<1x128xi1>
    %820 = arith.andi %819, %818 : vector<1x128xi1>
    %821 = vector.broadcast %796 : i32 to vector<1x128xi32>
    %822 = arith.cmpi slt, %615, %821 : vector<1x128xi32>
    %823 = arith.andi %820, %822 : vector<1x128xi1>
    %824 = vector.broadcast %815 : i32 to vector<1x128xi32>
    %825 = arith.select %823, %824, %795 : vector<1x128xi1>, vector<1x128xi32>
    %826 = arith.select %816, %798, %796 : i32
    %c7_i32_262 = arith.constant 7 : i32
    %827 = arith.index_cast %826 : i32 to index
    %828 = memref.load %arg5[%827] : memref<24xi32, #tpu.memory_space<smem>>
    %829 = arith.index_cast %826 : i32 to index
    %c0_263 = arith.constant 0 : index
    %830 = vector.load %arg3[%829, %c0_263] : memref<24x128xf32, #tpu.memory_space<vmem>>, vector<1x128xf32>
    %831 = arith.index_cast %828 : i32 to index
    %c0_264 = arith.constant 0 : index
    %832 = vector.load %arg3[%831, %c0_264] : memref<24x128xf32, #tpu.memory_space<vmem>>, vector<1x128xf32>
    %833 = arith.subf %830, %832 : vector<1x128xf32>
    %834 = vector.shape_cast %833 : vector<1x128xf32> to vector<1x1x128xf32>
    %cst_265 = arith.constant dense<0x7F800000> : vector<1xf32>
    %835 = vector.multi_reduction <minimumf>, %834, %cst_265 [1, 2] : vector<1x1x128xf32> to vector<1xf32>
    %836 = vector.shape_cast %835 : vector<1xf32> to vector<1x1x1xf32>
    %837 = vector.extract %836[0, 0, 0] : f32 from vector<1x1x1xf32>
    %838 = vector.broadcast %837 : f32 to vector<1x128xf32>
    %839 = arith.cmpf oeq, %833, %838 : vector<1x128xf32>
    %c16_i32_266 = arith.constant 16 : i32
    %840 = vector.broadcast %c16_i32_266 : i32 to vector<1x128xi32>
    %841 = arith.select %839, %10, %840 : vector<1x128xi1>, vector<1x128xi32>
    %842 = vector.shape_cast %841 : vector<1x128xi32> to vector<1x1x128xi32>
    %cst_267 = arith.constant dense<2147483647> : vector<1xi32>
    %843 = vector.multi_reduction <minsi>, %842, %cst_267 [1, 2] : vector<1x1x128xi32> to vector<1xi32>
    %844 = vector.shape_cast %843 : vector<1xi32> to vector<1x1x1xi32>
    %845 = vector.extract %844[0, 0, 0] : i32 from vector<1x1x1xi32>
    %c0_i32_268 = arith.constant 0 : i32
    %846 = arith.cmpi sgt, %826, %c0_i32_268 : i32
    %847 = vector.broadcast %828 : i32 to vector<1x128xi32>
    %848 = arith.cmpi sge, %615, %847 : vector<1x128xi32>
    %849 = vector.broadcast %846 : i1 to vector<1x128xi1>
    %850 = arith.andi %849, %848 : vector<1x128xi1>
    %851 = vector.broadcast %826 : i32 to vector<1x128xi32>
    %852 = arith.cmpi slt, %615, %851 : vector<1x128xi32>
    %853 = arith.andi %850, %852 : vector<1x128xi1>
    %854 = vector.broadcast %845 : i32 to vector<1x128xi32>
    %855 = arith.select %853, %854, %825 : vector<1x128xi1>, vector<1x128xi32>
    %856 = arith.select %846, %828, %826 : i32
    %c8_i32_269 = arith.constant 8 : i32
    %857 = arith.index_cast %856 : i32 to index
    %858 = memref.load %arg5[%857] : memref<24xi32, #tpu.memory_space<smem>>
    %859 = arith.index_cast %856 : i32 to index
    %c0_270 = arith.constant 0 : index
    %860 = vector.load %arg3[%859, %c0_270] : memref<24x128xf32, #tpu.memory_space<vmem>>, vector<1x128xf32>
    %861 = arith.index_cast %858 : i32 to index
    %c0_271 = arith.constant 0 : index
    %862 = vector.load %arg3[%861, %c0_271] : memref<24x128xf32, #tpu.memory_space<vmem>>, vector<1x128xf32>
    %863 = arith.subf %860, %862 : vector<1x128xf32>
    %864 = vector.shape_cast %863 : vector<1x128xf32> to vector<1x1x128xf32>
    %cst_272 = arith.constant dense<0x7F800000> : vector<1xf32>
    %865 = vector.multi_reduction <minimumf>, %864, %cst_272 [1, 2] : vector<1x1x128xf32> to vector<1xf32>
    %866 = vector.shape_cast %865 : vector<1xf32> to vector<1x1x1xf32>
    %867 = vector.extract %866[0, 0, 0] : f32 from vector<1x1x1xf32>
    %868 = vector.broadcast %867 : f32 to vector<1x128xf32>
    %869 = arith.cmpf oeq, %863, %868 : vector<1x128xf32>
    %c16_i32_273 = arith.constant 16 : i32
    %870 = vector.broadcast %c16_i32_273 : i32 to vector<1x128xi32>
    %871 = arith.select %869, %10, %870 : vector<1x128xi1>, vector<1x128xi32>
    %872 = vector.shape_cast %871 : vector<1x128xi32> to vector<1x1x128xi32>
    %cst_274 = arith.constant dense<2147483647> : vector<1xi32>
    %873 = vector.multi_reduction <minsi>, %872, %cst_274 [1, 2] : vector<1x1x128xi32> to vector<1xi32>
    %874 = vector.shape_cast %873 : vector<1xi32> to vector<1x1x1xi32>
    %875 = vector.extract %874[0, 0, 0] : i32 from vector<1x1x1xi32>
    %c0_i32_275 = arith.constant 0 : i32
    %876 = arith.cmpi sgt, %856, %c0_i32_275 : i32
    %877 = vector.broadcast %858 : i32 to vector<1x128xi32>
    %878 = arith.cmpi sge, %615, %877 : vector<1x128xi32>
    %879 = vector.broadcast %876 : i1 to vector<1x128xi1>
    %880 = arith.andi %879, %878 : vector<1x128xi1>
    %881 = vector.broadcast %856 : i32 to vector<1x128xi32>
    %882 = arith.cmpi slt, %615, %881 : vector<1x128xi32>
    %883 = arith.andi %880, %882 : vector<1x128xi1>
    %884 = vector.broadcast %875 : i32 to vector<1x128xi32>
    %885 = arith.select %883, %884, %855 : vector<1x128xi1>, vector<1x128xi32>
    %886 = arith.select %876, %858, %856 : i32
    %c9_i32_276 = arith.constant 9 : i32
    %887 = arith.index_cast %886 : i32 to index
    %888 = memref.load %arg5[%887] : memref<24xi32, #tpu.memory_space<smem>>
    %889 = arith.index_cast %886 : i32 to index
    %c0_277 = arith.constant 0 : index
    %890 = vector.load %arg3[%889, %c0_277] : memref<24x128xf32, #tpu.memory_space<vmem>>, vector<1x128xf32>
    %891 = arith.index_cast %888 : i32 to index
    %c0_278 = arith.constant 0 : index
    %892 = vector.load %arg3[%891, %c0_278] : memref<24x128xf32, #tpu.memory_space<vmem>>, vector<1x128xf32>
    %893 = arith.subf %890, %892 : vector<1x128xf32>
    %894 = vector.shape_cast %893 : vector<1x128xf32> to vector<1x1x128xf32>
    %cst_279 = arith.constant dense<0x7F800000> : vector<1xf32>
    %895 = vector.multi_reduction <minimumf>, %894, %cst_279 [1, 2] : vector<1x1x128xf32> to vector<1xf32>
    %896 = vector.shape_cast %895 : vector<1xf32> to vector<1x1x1xf32>
    %897 = vector.extract %896[0, 0, 0] : f32 from vector<1x1x1xf32>
    %898 = vector.broadcast %897 : f32 to vector<1x128xf32>
    %899 = arith.cmpf oeq, %893, %898 : vector<1x128xf32>
    %c16_i32_280 = arith.constant 16 : i32
    %900 = vector.broadcast %c16_i32_280 : i32 to vector<1x128xi32>
    %901 = arith.select %899, %10, %900 : vector<1x128xi1>, vector<1x128xi32>
    %902 = vector.shape_cast %901 : vector<1x128xi32> to vector<1x1x128xi32>
    %cst_281 = arith.constant dense<2147483647> : vector<1xi32>
    %903 = vector.multi_reduction <minsi>, %902, %cst_281 [1, 2] : vector<1x1x128xi32> to vector<1xi32>
    %904 = vector.shape_cast %903 : vector<1xi32> to vector<1x1x1xi32>
    %905 = vector.extract %904[0, 0, 0] : i32 from vector<1x1x1xi32>
    %c0_i32_282 = arith.constant 0 : i32
    %906 = arith.cmpi sgt, %886, %c0_i32_282 : i32
    %907 = vector.broadcast %888 : i32 to vector<1x128xi32>
    %908 = arith.cmpi sge, %615, %907 : vector<1x128xi32>
    %909 = vector.broadcast %906 : i1 to vector<1x128xi1>
    %910 = arith.andi %909, %908 : vector<1x128xi1>
    %911 = vector.broadcast %886 : i32 to vector<1x128xi32>
    %912 = arith.cmpi slt, %615, %911 : vector<1x128xi32>
    %913 = arith.andi %910, %912 : vector<1x128xi1>
    %914 = vector.broadcast %905 : i32 to vector<1x128xi32>
    %915 = arith.select %913, %914, %885 : vector<1x128xi1>, vector<1x128xi32>
    %916 = arith.select %906, %888, %886 : i32
    %c10_i32_283 = arith.constant 10 : i32
    %917 = arith.index_cast %916 : i32 to index
    %918 = memref.load %arg5[%917] : memref<24xi32, #tpu.memory_space<smem>>
    %919 = arith.index_cast %916 : i32 to index
    %c0_284 = arith.constant 0 : index
    %920 = vector.load %arg3[%919, %c0_284] : memref<24x128xf32, #tpu.memory_space<vmem>>, vector<1x128xf32>
    %921 = arith.index_cast %918 : i32 to index
    %c0_285 = arith.constant 0 : index
    %922 = vector.load %arg3[%921, %c0_285] : memref<24x128xf32, #tpu.memory_space<vmem>>, vector<1x128xf32>
    %923 = arith.subf %920, %922 : vector<1x128xf32>
    %924 = vector.shape_cast %923 : vector<1x128xf32> to vector<1x1x128xf32>
    %cst_286 = arith.constant dense<0x7F800000> : vector<1xf32>
    %925 = vector.multi_reduction <minimumf>, %924, %cst_286 [1, 2] : vector<1x1x128xf32> to vector<1xf32>
    %926 = vector.shape_cast %925 : vector<1xf32> to vector<1x1x1xf32>
    %927 = vector.extract %926[0, 0, 0] : f32 from vector<1x1x1xf32>
    %928 = vector.broadcast %927 : f32 to vector<1x128xf32>
    %929 = arith.cmpf oeq, %923, %928 : vector<1x128xf32>
    %c16_i32_287 = arith.constant 16 : i32
    %930 = vector.broadcast %c16_i32_287 : i32 to vector<1x128xi32>
    %931 = arith.select %929, %10, %930 : vector<1x128xi1>, vector<1x128xi32>
    %932 = vector.shape_cast %931 : vector<1x128xi32> to vector<1x1x128xi32>
    %cst_288 = arith.constant dense<2147483647> : vector<1xi32>
    %933 = vector.multi_reduction <minsi>, %932, %cst_288 [1, 2] : vector<1x1x128xi32> to vector<1xi32>
    %934 = vector.shape_cast %933 : vector<1xi32> to vector<1x1x1xi32>
    %935 = vector.extract %934[0, 0, 0] : i32 from vector<1x1x1xi32>
    %c0_i32_289 = arith.constant 0 : i32
    %936 = arith.cmpi sgt, %916, %c0_i32_289 : i32
    %937 = vector.broadcast %918 : i32 to vector<1x128xi32>
    %938 = arith.cmpi sge, %615, %937 : vector<1x128xi32>
    %939 = vector.broadcast %936 : i1 to vector<1x128xi1>
    %940 = arith.andi %939, %938 : vector<1x128xi1>
    %941 = vector.broadcast %916 : i32 to vector<1x128xi32>
    %942 = arith.cmpi slt, %615, %941 : vector<1x128xi32>
    %943 = arith.andi %940, %942 : vector<1x128xi1>
    %944 = vector.broadcast %935 : i32 to vector<1x128xi32>
    %945 = arith.select %943, %944, %915 : vector<1x128xi1>, vector<1x128xi32>
    %946 = arith.select %936, %918, %916 : i32
    %c11_i32_290 = arith.constant 11 : i32
    %947 = arith.index_cast %946 : i32 to index
    %948 = memref.load %arg5[%947] : memref<24xi32, #tpu.memory_space<smem>>
    %949 = arith.index_cast %946 : i32 to index
    %c0_291 = arith.constant 0 : index
    %950 = vector.load %arg3[%949, %c0_291] : memref<24x128xf32, #tpu.memory_space<vmem>>, vector<1x128xf32>
    %951 = arith.index_cast %948 : i32 to index
    %c0_292 = arith.constant 0 : index
    %952 = vector.load %arg3[%951, %c0_292] : memref<24x128xf32, #tpu.memory_space<vmem>>, vector<1x128xf32>
    %953 = arith.subf %950, %952 : vector<1x128xf32>
    %954 = vector.shape_cast %953 : vector<1x128xf32> to vector<1x1x128xf32>
    %cst_293 = arith.constant dense<0x7F800000> : vector<1xf32>
    %955 = vector.multi_reduction <minimumf>, %954, %cst_293 [1, 2] : vector<1x1x128xf32> to vector<1xf32>
    %956 = vector.shape_cast %955 : vector<1xf32> to vector<1x1x1xf32>
    %957 = vector.extract %956[0, 0, 0] : f32 from vector<1x1x1xf32>
    %958 = vector.broadcast %957 : f32 to vector<1x128xf32>
    %959 = arith.cmpf oeq, %953, %958 : vector<1x128xf32>
    %c16_i32_294 = arith.constant 16 : i32
    %960 = vector.broadcast %c16_i32_294 : i32 to vector<1x128xi32>
    %961 = arith.select %959, %10, %960 : vector<1x128xi1>, vector<1x128xi32>
    %962 = vector.shape_cast %961 : vector<1x128xi32> to vector<1x1x128xi32>
    %cst_295 = arith.constant dense<2147483647> : vector<1xi32>
    %963 = vector.multi_reduction <minsi>, %962, %cst_295 [1, 2] : vector<1x1x128xi32> to vector<1xi32>
    %964 = vector.shape_cast %963 : vector<1xi32> to vector<1x1x1xi32>
    %965 = vector.extract %964[0, 0, 0] : i32 from vector<1x1x1xi32>
    %c0_i32_296 = arith.constant 0 : i32
    %966 = arith.cmpi sgt, %946, %c0_i32_296 : i32
    %967 = vector.broadcast %948 : i32 to vector<1x128xi32>
    %968 = arith.cmpi sge, %615, %967 : vector<1x128xi32>
    %969 = vector.broadcast %966 : i1 to vector<1x128xi1>
    %970 = arith.andi %969, %968 : vector<1x128xi1>
    %971 = vector.broadcast %946 : i32 to vector<1x128xi32>
    %972 = arith.cmpi slt, %615, %971 : vector<1x128xi32>
    %973 = arith.andi %970, %972 : vector<1x128xi1>
    %974 = vector.broadcast %965 : i32 to vector<1x128xi32>
    %975 = arith.select %973, %974, %945 : vector<1x128xi1>, vector<1x128xi32>
    %976 = arith.select %966, %948, %946 : i32
    %c12_i32_297 = arith.constant 12 : i32
    %977 = arith.index_cast %976 : i32 to index
    %978 = memref.load %arg5[%977] : memref<24xi32, #tpu.memory_space<smem>>
    %979 = arith.index_cast %976 : i32 to index
    %c0_298 = arith.constant 0 : index
    %980 = vector.load %arg3[%979, %c0_298] : memref<24x128xf32, #tpu.memory_space<vmem>>, vector<1x128xf32>
    %981 = arith.index_cast %978 : i32 to index
    %c0_299 = arith.constant 0 : index
    %982 = vector.load %arg3[%981, %c0_299] : memref<24x128xf32, #tpu.memory_space<vmem>>, vector<1x128xf32>
    %983 = arith.subf %980, %982 : vector<1x128xf32>
    %984 = vector.shape_cast %983 : vector<1x128xf32> to vector<1x1x128xf32>
    %cst_300 = arith.constant dense<0x7F800000> : vector<1xf32>
    %985 = vector.multi_reduction <minimumf>, %984, %cst_300 [1, 2] : vector<1x1x128xf32> to vector<1xf32>
    %986 = vector.shape_cast %985 : vector<1xf32> to vector<1x1x1xf32>
    %987 = vector.extract %986[0, 0, 0] : f32 from vector<1x1x1xf32>
    %988 = vector.broadcast %987 : f32 to vector<1x128xf32>
    %989 = arith.cmpf oeq, %983, %988 : vector<1x128xf32>
    %c16_i32_301 = arith.constant 16 : i32
    %990 = vector.broadcast %c16_i32_301 : i32 to vector<1x128xi32>
    %991 = arith.select %989, %10, %990 : vector<1x128xi1>, vector<1x128xi32>
    %992 = vector.shape_cast %991 : vector<1x128xi32> to vector<1x1x128xi32>
    %cst_302 = arith.constant dense<2147483647> : vector<1xi32>
    %993 = vector.multi_reduction <minsi>, %992, %cst_302 [1, 2] : vector<1x1x128xi32> to vector<1xi32>
    %994 = vector.shape_cast %993 : vector<1xi32> to vector<1x1x1xi32>
    %995 = vector.extract %994[0, 0, 0] : i32 from vector<1x1x1xi32>
    %c0_i32_303 = arith.constant 0 : i32
    %996 = arith.cmpi sgt, %976, %c0_i32_303 : i32
    %997 = vector.broadcast %978 : i32 to vector<1x128xi32>
    %998 = arith.cmpi sge, %615, %997 : vector<1x128xi32>
    %999 = vector.broadcast %996 : i1 to vector<1x128xi1>
    %1000 = arith.andi %999, %998 : vector<1x128xi1>
    %1001 = vector.broadcast %976 : i32 to vector<1x128xi32>
    %1002 = arith.cmpi slt, %615, %1001 : vector<1x128xi32>
    %1003 = arith.andi %1000, %1002 : vector<1x128xi1>
    %1004 = vector.broadcast %995 : i32 to vector<1x128xi32>
    %1005 = arith.select %1003, %1004, %975 : vector<1x128xi1>, vector<1x128xi32>
    %1006 = arith.select %996, %978, %976 : i32
    %c13_i32_304 = arith.constant 13 : i32
    %1007 = arith.index_cast %1006 : i32 to index
    %1008 = memref.load %arg5[%1007] : memref<24xi32, #tpu.memory_space<smem>>
    %1009 = arith.index_cast %1006 : i32 to index
    %c0_305 = arith.constant 0 : index
    %1010 = vector.load %arg3[%1009, %c0_305] : memref<24x128xf32, #tpu.memory_space<vmem>>, vector<1x128xf32>
    %1011 = arith.index_cast %1008 : i32 to index
    %c0_306 = arith.constant 0 : index
    %1012 = vector.load %arg3[%1011, %c0_306] : memref<24x128xf32, #tpu.memory_space<vmem>>, vector<1x128xf32>
    %1013 = arith.subf %1010, %1012 : vector<1x128xf32>
    %1014 = vector.shape_cast %1013 : vector<1x128xf32> to vector<1x1x128xf32>
    %cst_307 = arith.constant dense<0x7F800000> : vector<1xf32>
    %1015 = vector.multi_reduction <minimumf>, %1014, %cst_307 [1, 2] : vector<1x1x128xf32> to vector<1xf32>
    %1016 = vector.shape_cast %1015 : vector<1xf32> to vector<1x1x1xf32>
    %1017 = vector.extract %1016[0, 0, 0] : f32 from vector<1x1x1xf32>
    %1018 = vector.broadcast %1017 : f32 to vector<1x128xf32>
    %1019 = arith.cmpf oeq, %1013, %1018 : vector<1x128xf32>
    %c16_i32_308 = arith.constant 16 : i32
    %1020 = vector.broadcast %c16_i32_308 : i32 to vector<1x128xi32>
    %1021 = arith.select %1019, %10, %1020 : vector<1x128xi1>, vector<1x128xi32>
    %1022 = vector.shape_cast %1021 : vector<1x128xi32> to vector<1x1x128xi32>
    %cst_309 = arith.constant dense<2147483647> : vector<1xi32>
    %1023 = vector.multi_reduction <minsi>, %1022, %cst_309 [1, 2] : vector<1x1x128xi32> to vector<1xi32>
    %1024 = vector.shape_cast %1023 : vector<1xi32> to vector<1x1x1xi32>
    %1025 = vector.extract %1024[0, 0, 0] : i32 from vector<1x1x1xi32>
    %c0_i32_310 = arith.constant 0 : i32
    %1026 = arith.cmpi sgt, %1006, %c0_i32_310 : i32
    %1027 = vector.broadcast %1008 : i32 to vector<1x128xi32>
    %1028 = arith.cmpi sge, %615, %1027 : vector<1x128xi32>
    %1029 = vector.broadcast %1026 : i1 to vector<1x128xi1>
    %1030 = arith.andi %1029, %1028 : vector<1x128xi1>
    %1031 = vector.broadcast %1006 : i32 to vector<1x128xi32>
    %1032 = arith.cmpi slt, %615, %1031 : vector<1x128xi32>
    %1033 = arith.andi %1030, %1032 : vector<1x128xi1>
    %1034 = vector.broadcast %1025 : i32 to vector<1x128xi32>
    %1035 = arith.select %1033, %1034, %1005 : vector<1x128xi1>, vector<1x128xi32>
    %1036 = arith.select %1026, %1008, %1006 : i32
    %c14_i32_311 = arith.constant 14 : i32
    %1037 = arith.index_cast %1036 : i32 to index
    %1038 = memref.load %arg5[%1037] : memref<24xi32, #tpu.memory_space<smem>>
    %1039 = arith.index_cast %1036 : i32 to index
    %c0_312 = arith.constant 0 : index
    %1040 = vector.load %arg3[%1039, %c0_312] : memref<24x128xf32, #tpu.memory_space<vmem>>, vector<1x128xf32>
    %1041 = arith.index_cast %1038 : i32 to index
    %c0_313 = arith.constant 0 : index
    %1042 = vector.load %arg3[%1041, %c0_313] : memref<24x128xf32, #tpu.memory_space<vmem>>, vector<1x128xf32>
    %1043 = arith.subf %1040, %1042 : vector<1x128xf32>
    %1044 = vector.shape_cast %1043 : vector<1x128xf32> to vector<1x1x128xf32>
    %cst_314 = arith.constant dense<0x7F800000> : vector<1xf32>
    %1045 = vector.multi_reduction <minimumf>, %1044, %cst_314 [1, 2] : vector<1x1x128xf32> to vector<1xf32>
    %1046 = vector.shape_cast %1045 : vector<1xf32> to vector<1x1x1xf32>
    %1047 = vector.extract %1046[0, 0, 0] : f32 from vector<1x1x1xf32>
    %1048 = vector.broadcast %1047 : f32 to vector<1x128xf32>
    %1049 = arith.cmpf oeq, %1043, %1048 : vector<1x128xf32>
    %c16_i32_315 = arith.constant 16 : i32
    %1050 = vector.broadcast %c16_i32_315 : i32 to vector<1x128xi32>
    %1051 = arith.select %1049, %10, %1050 : vector<1x128xi1>, vector<1x128xi32>
    %1052 = vector.shape_cast %1051 : vector<1x128xi32> to vector<1x1x128xi32>
    %cst_316 = arith.constant dense<2147483647> : vector<1xi32>
    %1053 = vector.multi_reduction <minsi>, %1052, %cst_316 [1, 2] : vector<1x1x128xi32> to vector<1xi32>
    %1054 = vector.shape_cast %1053 : vector<1xi32> to vector<1x1x1xi32>
    %1055 = vector.extract %1054[0, 0, 0] : i32 from vector<1x1x1xi32>
    %c0_i32_317 = arith.constant 0 : i32
    %1056 = arith.cmpi sgt, %1036, %c0_i32_317 : i32
    %1057 = vector.broadcast %1038 : i32 to vector<1x128xi32>
    %1058 = arith.cmpi sge, %615, %1057 : vector<1x128xi32>
    %1059 = vector.broadcast %1056 : i1 to vector<1x128xi1>
    %1060 = arith.andi %1059, %1058 : vector<1x128xi1>
    %1061 = vector.broadcast %1036 : i32 to vector<1x128xi32>
    %1062 = arith.cmpi slt, %615, %1061 : vector<1x128xi32>
    %1063 = arith.andi %1060, %1062 : vector<1x128xi1>
    %1064 = vector.broadcast %1055 : i32 to vector<1x128xi32>
    %1065 = arith.select %1063, %1064, %1035 : vector<1x128xi1>, vector<1x128xi32>
    %1066 = arith.select %1056, %1038, %1036 : i32
    %c15_i32_318 = arith.constant 15 : i32
    %1067 = arith.index_cast %1066 : i32 to index
    %1068 = memref.load %arg5[%1067] : memref<24xi32, #tpu.memory_space<smem>>
    %1069 = arith.index_cast %1066 : i32 to index
    %c0_319 = arith.constant 0 : index
    %1070 = vector.load %arg3[%1069, %c0_319] : memref<24x128xf32, #tpu.memory_space<vmem>>, vector<1x128xf32>
    %1071 = arith.index_cast %1068 : i32 to index
    %c0_320 = arith.constant 0 : index
    %1072 = vector.load %arg3[%1071, %c0_320] : memref<24x128xf32, #tpu.memory_space<vmem>>, vector<1x128xf32>
    %1073 = arith.subf %1070, %1072 : vector<1x128xf32>
    %1074 = vector.shape_cast %1073 : vector<1x128xf32> to vector<1x1x128xf32>
    %cst_321 = arith.constant dense<0x7F800000> : vector<1xf32>
    %1075 = vector.multi_reduction <minimumf>, %1074, %cst_321 [1, 2] : vector<1x1x128xf32> to vector<1xf32>
    %1076 = vector.shape_cast %1075 : vector<1xf32> to vector<1x1x1xf32>
    %1077 = vector.extract %1076[0, 0, 0] : f32 from vector<1x1x1xf32>
    %1078 = vector.broadcast %1077 : f32 to vector<1x128xf32>
    %1079 = arith.cmpf oeq, %1073, %1078 : vector<1x128xf32>
    %c16_i32_322 = arith.constant 16 : i32
    %1080 = vector.broadcast %c16_i32_322 : i32 to vector<1x128xi32>
    %1081 = arith.select %1079, %10, %1080 : vector<1x128xi1>, vector<1x128xi32>
    %1082 = vector.shape_cast %1081 : vector<1x128xi32> to vector<1x1x128xi32>
    %cst_323 = arith.constant dense<2147483647> : vector<1xi32>
    %1083 = vector.multi_reduction <minsi>, %1082, %cst_323 [1, 2] : vector<1x1x128xi32> to vector<1xi32>
    %1084 = vector.shape_cast %1083 : vector<1xi32> to vector<1x1x1xi32>
    %1085 = vector.extract %1084[0, 0, 0] : i32 from vector<1x1x1xi32>
    %c0_i32_324 = arith.constant 0 : i32
    %1086 = arith.cmpi sgt, %1066, %c0_i32_324 : i32
    %1087 = vector.broadcast %1068 : i32 to vector<1x128xi32>
    %1088 = arith.cmpi sge, %615, %1087 : vector<1x128xi32>
    %1089 = vector.broadcast %1086 : i1 to vector<1x128xi1>
    %1090 = arith.andi %1089, %1088 : vector<1x128xi1>
    %1091 = vector.broadcast %1066 : i32 to vector<1x128xi32>
    %1092 = arith.cmpi slt, %615, %1091 : vector<1x128xi32>
    %1093 = arith.andi %1090, %1092 : vector<1x128xi1>
    %1094 = vector.broadcast %1085 : i32 to vector<1x128xi32>
    %1095 = arith.select %1093, %1094, %1065 : vector<1x128xi1>, vector<1x128xi32>
    %1096 = arith.select %1086, %1068, %1066 : i32
    %c0_325 = arith.constant 0 : index
    %c0_326 = arith.constant 0 : index
    %1097 = vector.load %arg2[%c0_325, %c0_326] : memref<1x128xi32, #tpu.memory_space<vmem>>, vector<1x128xi32>
    tpu.vector_store %arg2[%c0_325, %c0_326], %1095 {strides = array<i32>} : memref<1x128xi32, #tpu.memory_space<vmem>>, vector<1x128xi32>,
    return
  }
}

</mosaic_0001>

<bundles_post_ra>
// kernel: tpu_custom_call.1
= control target key start
LH: loop header
LB: loop body
LE: loop exit
PB: predicated region body
PF: predicated region fallthrough
CT: control target
= control target key end

     0   :  { %s3434_s0 = inlined_call_operand.hbm [shape: f32[16,128], index: 0, kind: input, shape index: {}]   ;;  %s3435_s1 = inlined_call_operand.hbm [shape: f32[128,128], index: 1, kind: input, shape index: {}]   ;;  %s3436_s2 = inlined_call_operand.hbm [shape: s32[1,128], index: 2, kind: output, shape index: {}]  }
   0x1   :  { %3441 = sst [smem:[#allocation16_spill]] %s3436_s2 }
   0x2   :  { %7 = vsyncpa [#allocation6], 0 }
   0x3   :  { %8 = vsyncpa [#allocation9], 0 }
   0x4   :  { %9 = vsyncpa [#allocation7], 0  ;;  %s2771_s9 = smov [#allocation5]  }
   0x5   :  { %s15_s10 = sshll.u32 %s2771_s9, 4  ;;  %s16_s10 = int_to_ptr.vmem [resolvable:$true] %s15_s10 }
   0x6   :  { %s2713_s11 = scalar_lea.vmem %s16_s10, 256  ;;  %p2718_p1 = scmp.lt.s32.totalorder %s16_s10, %s16_s10 }
   0x7   :  { %p2714_p0 = scmp.ne.s32.totalorder %s16_s10, %s2713_s11  ;;  %p2719_p2 = scmp.lt.s32.totalorder %s2713_s11, %s2713_s11 }
   0x9   :  { %p2720_p3 = por %p2719_p2, %p2718_p1 }
   0xb   :  { %p2721_p4 = pnand %p2720_p3, %p2714_p0 }
   0xd   :  { %2724 = shalt.err (!%p2721_p4)
}
   0xe   :  { %s2772_s12 = smov 128   ;;  %s2773_s13 = smov 8  }
   0xf   :  { %21 = dma.hbm_to_vmem [thread:$0]  %s3434_s0, 256, %s16_s10, [#allocation6], %s2772_s12, %s2772_s12, %s2773_s13  }
  0x10   :  { %s2774_s16 = smov [#allocation8]  }
  0x11   :  { %s27_s17 = sshll.u32 %s2774_s16, 4  ;;  %s28_s17 = int_to_ptr.vmem [resolvable:$true] %s27_s17 }
  0x12   :  { %s2733_s18 = scalar_lea.vmem %s28_s17, 2048  ;;  %p2738_p6 = scmp.lt.s32.totalorder %s28_s17, %s28_s17 }
  0x13   :  { %p2734_p5 = scmp.ne.s32.totalorder %s28_s17, %s2733_s18  ;;  %p2739_p7 = scmp.lt.s32.totalorder %s2733_s18, %s2733_s18 }
  0x15   :  { %p2740_p8 = por %p2739_p7, %p2738_p6 }
  0x17   :  { %p2741_p9 = pnand %p2740_p8, %p2734_p5 }
  0x19   :  { %2744 = shalt.err (!%p2741_p9)
}
  0x1a   :  { %33 = dma.hbm_to_vmem [thread:$0]  %s3435_s1, 2048, %s28_s17, [#allocation9], %s2772_s12, %s2772_s12, %s2773_s13  }
  0x1b   :  { %2765 = dma.done.wait [#allocation6], 256  }
  0x1c   :  { %2766 = vsyncadd [#allocation6], 4294967040 }
  0x1d   :  { %2767 = dma.done.wait [#allocation9], 2048  }
  0x1e   :  { %2768 = vsyncadd [#allocation9], 4294965248  ;;  %v2801_v0 = vld [vmem:[#allocation8] sm:$0xff]  ;;  %v2803_v1 = vld [vmem:[#allocation8 + $0x8] sm:$0xff]  ;;  %vm341_vm0 = vcmask 7168   ;;  %v2775_v39 = vmov 0.0   ;;  %v219_v53 = vlaneseq }
  0x1f   :  { %v57_v2 = vld [vmem:[#allocation8 + $0x78] sm:$0xff]  ;;  %v139_v3 = vmul.f32 %v2801_v0, %v2801_v0  ;;  %v2807_v4 = vld [vmem:[#allocation8 + $0x10] sm:$0xff]  ;;  %v140_v8 = vmul.f32 %v2803_v1, %v2803_v1  ;;  %v55_v10 = vld [vmem:[#allocation8 + $0x68] sm:$0xff]  ;;  %2554 = vmatprep.subr.mxu1 %v2775_v39  ;;  %343 = vst.msk [vmem:[#allocation3 + $0x8] sm:$0xff] %vm341_vm0, %v2775_v39  ;;  %vm2776_vm1 = vmmov 0   ;;  %vm248_vm4 = vcmask 130048  }
  0x20   :  { %2519 = vmatprep.subr.mxu0 %v57_v2  ;;  %v56_v5 = vld [vmem:[#allocation8 + $0x70] sm:$0xff]  ;;  %v2809_v6 = vld [vmem:[#allocation8 + $0x18] sm:$0xff]  ;;  %v141_v7 = vmul.f32 %v2807_v4, %v2807_v4  ;;  %v46_v11 = vld [vmem:[#allocation8 + $0x20] sm:$0xff]  ;;  %v152_v30 = vmul.f32 %v55_v10, %v55_v10  ;;  %v154_v32 = vmul.f32 %v57_v2, %v57_v2  ;;  %342 = vst.msk [vmem:[#allocation3] sm:$0xff] %vm341_vm0, %v2775_v39  ;;  %v2832_v54 = vand.u32 127, %v219_v53 }
  0x21   :  { %2520 = vmatpush3.xpose.msra.mxu0 %v57_v2  ;;  %155 = vadd.xlane.f32.xlu0 %v139_v3  ;;  %v142_v9 = vmul.f32 %v2809_v6, %v2809_v6  ;;  %v47_v12 = vld [vmem:[#allocation8 + $0x28] sm:$0xff]  ;;  %v40_v13 = vld [vmem:[#allocation5] sm:$0xff]  ;;  %v143_v14 = vmul.f32 %v46_v11, %v46_v11  ;;  %v54_v15 = vld [vmem:[#allocation8 + $0x60] sm:$0xff]  ;;  %v153_v31 = vmul.f32 %v56_v5, %v56_v5  ;;  %v2834_v55 = vshrl.u32 %v219_v53, 7 }
  0x22   :  { %2521 = vmatprep.subr.mxu0 %v56_v5  ;;  %159 = vadd.xlane.f32.xlu1 %v141_v7  ;;  %v144_v16 = vmul.f32 %v47_v12, %v47_v12  ;;  %v48_v17 = vld [vmem:[#allocation8 + $0x30] sm:$0xff]  ;;  %v49_v18 = vld [vmem:[#allocation8 + $0x38] sm:$0xff]  ;;  %v50_v22 = vld [vmem:[#allocation8 + $0x40] sm:$0xff]  ;;  %v151_v29 = vmul.f32 %v54_v15, %v54_v15  ;;  %v133_v35 = vmul.f32 %v40_v13, %v40_v13  ;;  %vm3437_vm2 = vcmp.lt.s32.totalorder %v2832_v54, 16 }
  0x23   :  { %2551 = vmatprep.mubr.f32.mxu0 %v40_v13  ;;  %v145_v19 = vmul.f32 %v48_v17, %v48_v17  ;;  %v53_v20 = vld [vmem:[#allocation8 + $0x58] sm:$0xff]  ;;  %v146_v21 = vmul.f32 %v49_v18, %v49_v18  ;;  %v51_v23 = vld [vmem:[#allocation8 + $0x48] sm:$0xff]  ;;  %v147_v24 = vmul.f32 %v50_v22, %v50_v22  ;;  %v52_v25 = vld [vmem:[#allocation8 + $0x50] sm:$0xff]  ;;  %2558 = vmatprep.mubr.msk.f32.mxu1 %vm2776_vm1, %v2775_v39  ;;  %v225_v58 = vsub.s32 0, %v2834_v55 }
  0x24   :  { %v148_v26 = vmul.f32 %v51_v23, %v51_v23  ;;  %v149_v27 = vmul.f32 %v52_v25, %v52_v25  ;;  %v150_v28 = vmul.f32 %v53_v20, %v53_v20  ;;  %v41_v33 = vld [vmem:[#allocation5 + $0x8] sm:$0xff]  ;;  %vm239_vm3 = vcmp.lt.s32.totalorder %v2832_v54, %v2834_v55 }
  0x25   :  { %2522 = vmatpush3.xpose.msra.mxu0 %v56_v5  ;;  %157 = vadd.xlane.f32.xlu0 %v140_v8  ;;  %v134_v34 = vmul.f32 %v41_v33, %v41_v33  ;;  %vm364_vm7 = vcmp.lt.s32.totalorder %v2834_v55, 1  ;;  %vm419_vm8 = vcmask 0   ;;  %vm438_vm12 = vcmp.lt.s32.totalorder %v2834_v55, 2 }
  0x26   :  { %2523 = vmatprep.subr.mxu0 %v55_v10  ;;  %161 = vadd.xlane.f32.xlu1 %v142_v9  ;;  %v2465_v9 = vsel %vm239_vm3, 1.0, %v2775_v39 }
  0x29   :  { %2524 = vmatpush3.xpose.msra.mxu0 %v55_v10  ;;  %163 = vadd.xlane.f32.xlu0 %v143_v14  ;;  %v238_v10 = vadd.s32 16, %v2834_v55 }
  0x2a   :  { %2525 = vmatprep.subr.mxu0 %v54_v15  ;;  %165 = vadd.xlane.f32.xlu1 %v144_v16 }
  0x2b   :  { %vm241_vm6 = vcmp.lt.s32.totalorder %v2832_v54, %v238_v10 }
  0x2d   :  { %2526 = vmatpush3.xpose.msra.mxu0 %v54_v15  ;;  %167 = vadd.xlane.f32.xlu0 %v145_v19 }
  0x2e   :  { %2527 = vmatprep.subr.mxu0 %v53_v20  ;;  %169 = vadd.xlane.f32.xlu1 %v146_v21  ;;  %v362_v21 = vld [vmem:[#allocation3] sm:$0xff] }
  0x31   :  { %2528 = vmatpush3.xpose.msra.mxu0 %v53_v20  ;;  %171 = vadd.xlane.f32.xlu0 %v147_v24 }
  0x32   :  { %2529 = vmatprep.subr.mxu0 %v52_v25  ;;  %173 = vadd.xlane.f32.xlu1 %v148_v26  ;;  %v2777_v26 = vmov inf  }
  0x35   :  { %2530 = vmatpush3.xpose.msra.mxu0 %v52_v25  ;;  %175 = vadd.xlane.f32.xlu0 %v149_v27  ;;  %v2870_v27 = vsel %vm341_vm0, 1e+30, %v2777_v26 }
  0x36   :  { %2531 = vmatprep.subr.mxu0 %v51_v23  ;;  %177 = vadd.xlane.f32.xlu1 %v150_v28 }
  0x39   :  { %2532 = vmatpush3.xpose.msra.mxu0 %v51_v23  ;;  %179 = vadd.xlane.f32.xlu0 %v151_v29 }
  0x3a   :  { %2533 = vmatprep.subr.mxu0 %v50_v22  ;;  %181 = vadd.xlane.f32.xlu1 %v152_v30 }
  0x3d   :  { %2534 = vmatpush3.xpose.msra.mxu0 %v50_v22  ;;  %183 = vadd.xlane.f32.xlu0 %v153_v31  ;;  %v2865_v22 = vcvt.s32.f32 %v2834_v55 }
  0x3e   :  { %2535 = vmatprep.subr.mxu0 %v49_v18  ;;  %185 = vadd.xlane.f32.xlu1 %v154_v32 }
  0x41   :  { %2536 = vmatpush3.xpose.msra.mxu0 %v49_v18  ;;  %137 = vadd.xlane.f32.xlu0 %v134_v34 }
  0x42   :  { %2537 = vmatprep.subr.mxu0 %v48_v17  ;;  %135 = vadd.xlane.f32.xlu1 %v133_v35 }
  0x45   :  { %2538 = vmatpush3.xpose.msra.mxu0 %v48_v17 }
  0x46   :  { %2539 = vmatprep.subr.mxu0 %v47_v12 }
  0x49   :  { %2540 = vmatpush3.xpose.msra.mxu0 %v47_v12  ;;  %v2467_v12 = vsel %vm241_vm6, 1.0, %v2775_v39  ;;  %vm511_vm6 = vcmp.lt.s32.totalorder %v2834_v55, 3 }
  0x4a   :  { %2541 = vmatprep.subr.mxu0 %v46_v11 }
  0x4d   :  { %2542 = vmatpush3.xpose.msra.mxu0 %v46_v11 }
  0x4e   :  { %2543 = vmatprep.subr.mxu0 %v2809_v6 }
  0x51   :  { %2544 = vmatpush3.xpose.msra.mxu0 %v2809_v6  ;;  %v2843_v6 = vadd.s32 8, %v2834_v55 }
  0x52   :  { %2545 = vmatprep.subr.mxu0 %v2807_v4 }
  0x53   :  { %vm240_vm5 = vcmp.lt.s32.totalorder %v2832_v54, %v2843_v6 }
  0x54   :  { %v2466_v11 = vsel %vm240_vm5, 1.0, %v2775_v39 }
  0x55   :  { %2546 = vmatpush3.xpose.msra.mxu0 %v2807_v4 }
  0x56   :  { %2547 = vmatprep.subr.mxu0 %v2803_v1 }
  0x59   :  { %2548 = vmatpush3.xpose.msra.mxu0 %v2803_v1 }
  0x5a   :  { %2549 = vmatprep.subr.mxu0 %v2801_v0 }
  0x5d   :  { %2550 = vmatpush3.xpose.msra.mxu0 %v2801_v0 }
  0x60   :  { %2552 = vmatmul.mubr.f32.vlgmr.msra.gmra.mxu0 %v41_v33 }
  0xaa   :  { %v156_v36 = vpop.xlane.xlu0 %155 }
  0xab   :  { %187 = vxpose.xlu0.b32.start [1/16] (narrow) %v156_v36, 8  ;;  %v160_v38 = vpop.xlane.xlu1 %159 }
  0xae   :  { %v158_v37 = vpop.xlane.xlu0 %157 }
  0xaf   :  { %188 = vxpose.xlu0.b32.cont [2/16] (narrow) %v158_v37, 8  ;;  %v162_v40 = vpop.xlane.xlu1 %161 }
  0xb2   :  { %v164_v41 = vpop.xlane.xlu0 %163 }
  0xb3   :  { %189 = vxpose.xlu0.b32.cont [3/16] (narrow) %v160_v38, 8  ;;  %v166_v42 = vpop.xlane.xlu1 %165 }
  0xb6   :  { %v168_v43 = vpop.xlane.xlu0 %167 }
  0xb7   :  { %190 = vxpose.xlu0.b32.cont [4/16] (narrow) %v162_v40, 8  ;;  %v170_v44 = vpop.xlane.xlu1 %169 }
  0xba   :  { %v172_v45 = vpop.xlane.xlu0 %171 }
  0xbb   :  { %191 = vxpose.xlu0.b32.cont [5/16] (narrow) %v164_v41, 8  ;;  %v174_v46 = vpop.xlane.xlu1 %173 }
  0xbe   :  { %v176_v47 = vpop.xlane.xlu0 %175 }
  0xbf   :  { %192 = vxpose.xlu0.b32.cont [6/16] (narrow) %v166_v42, 8  ;;  %v178_v48 = vpop.xlane.xlu1 %177 }
  0xc2   :  { %v180_v49 = vpop.xlane.xlu0 %179 }
  0xc3   :  { %193 = vxpose.xlu0.b32.cont [7/16] (narrow) %v168_v43, 8  ;;  %v182_v50 = vpop.xlane.xlu1 %181 }
  0xc6   :  { %v184_v51 = vpop.xlane.xlu0 %183 }
  0xc7   :  { %194 = vxpose.xlu0.b32.cont [8/16] (narrow) %v170_v44, 8  ;;  %v186_v52 = vpop.xlane.xlu1 %185 }
  0xca   :  { %v138_v57 = vpop.xlane.xlu0 %137 }
  0xcb   :  { %195 = vxpose.xlu0.b32.cont [9/16] (narrow) %v172_v45, 8  ;;  %v136_v62 = vpop.xlane.xlu1 %135 }
  0xcf   :  { %196 = vxpose.xlu0.b32.cont [10/16] (narrow) %v174_v46, 8 }
  0xd3   :  { %197 = vxpose.xlu0.b32.cont [11/16] (narrow) %v176_v47, 8 }
  0xd7   :  { %198 = vxpose.xlu0.b32.cont [12/16] (narrow) %v178_v48, 8 }
  0xdb   :  { %199 = vxpose.xlu0.b32.cont [13/16] (narrow) %v180_v49, 8 }
  0xdf   :  { %200 = vxpose.xlu0.b32.cont [14/16] (narrow) %v182_v50, 8 }
  0xe3   :  { %201 = vxpose.xlu0.b32.cont [15/16] (narrow) %v184_v51, 8  ;;  %v442_v51 = vadd.f32 -1.0, %v2865_v22 }
  0xe7   :  { %202 = vxpose.xlu0.b32.end [16/16] (narrow) %v186_v52, 8 }
 0x120   :  { %v2553_v56 = vpop.f32.mrf.mxu0 }
 0x121   :  { %v230_v0 = vmul.f32 2.0, %v2553_v56 }
 0x122   :  { %v124_v59 = vpop.f32.mrf.mxu0 }
 0x123   :  { %v229_v1 = vmul.f32 2.0, %v124_v59 }
 0x127   :  { %v203_v60 = vpop.trf.xlu0 }
 0x128   :  { %v222_v61 = vsel %vm3437_vm2, %v203_v60, 1e+30 }
 0x129   :  { %v226_v63 = vrot.slane %v222_v61, %v225_v58 }
 0x12b   :  { %v228_v2 = vadd.f32 %v226_v63, %v138_v57  ;;  %v227_v3 = vadd.f32 %v226_v63, %v136_v62 }
 0x12d   :  { %v231_v4 = vsub.f32 %v227_v3, %v229_v1  ;;  %v232_v5 = vsub.f32 %v228_v2, %v230_v0 }
 0x12f   :  { %v234_v7 = vmax.f32 %v232_v5, 0.0  ;;  %v233_v8 = vmax.f32 %v231_v4, 0.0 }
 0x131   :  { %2555 = vmatpush3.msra.mxu1 %v234_v7 }
 0x132   :  { %2556 = vmatprep.subr.mxu1 %v2775_v39 }
 0x133   :  { %2557 = vmatpush3.msra.mxu1 %v233_v8 }
 0x134   :  { %2559 = vmatmul.mubr.msk.f32.vlgmr.msra.gmra.mxu1 %vm248_vm4, %v2465_v9 }
 0x135   :  { %2561 = vmatprep.mubr.msk.f32.mxu1 %vm2776_vm1, %v2775_v39 }
 0x138   :  { %2562 = vmatmul.mubr.msk.f32.gmra.mxu1 %vm248_vm4, %v2466_v11 }
 0x139   :  { %2564 = vmatprep.mubr.msk.f32.mxu1 %vm2776_vm1, %v2775_v39 }
 0x13c   :  { %2565 = vmatmul.mubr.msk.f32.gmra.mxu1 %vm248_vm4, %v2467_v12 }
 0x1f4   :  { %v2857_v13 = vpop.f32.mrf.mxu1 }
 0x1f5   :  { %338 = vst [vmem:[#allocation2] sm:$0xff] %v2857_v13 }
 0x1f6   :  { %v2560_v14 = vpop.f32.mrf.mxu1 }
 0x1f8   :  { %v2860_v15 = vpop.f32.mrf.mxu1 }
 0x1f9   :  { %339 = vst [vmem:[#allocation2 + $0x8] sm:$0xff] %v2860_v15 }
 0x1fa   :  { %v2563_v16 = vpop.f32.mrf.mxu1 }
 0x1fc   :  { %v334_v17 = vpop.f32.mrf.mxu1  ;;  %v2471_v18 = vld [vmem:[#allocation2 + $0x1] ss:$0 sm:$0xff]  ;;  %v2473_v31 = vld [vmem:[#allocation2 + $0x2] ss:$0 sm:$0xff]  ;;  %v2475_v62 = vld [vmem:[#allocation2 + $0x3] ss:$0 sm:$0xff] }
 0x1fd   :  { %340 = vst [vmem:[#allocation2 + $0x10] sm:$0xff] %v334_v17  ;;  %v356_v19 = vsub.f32 %v2471_v18, %v2857_v13  ;;  %v430_v32 = vsub.f32 %v2473_v31, %v2857_v13  ;;  %v503_v63 = vsub.f32 %v2475_v62, %v2857_v13 }
 0x1fe   :  { %v2566_v20 = vpop.f32.mrf.mxu1 }
 0x1ff   :  { %358 = vmin.xlane.f32.xlu1 %v356_v19 }
 0x288   :  { %v359_v23 = vpop.xlane.xlu1 %358 }
 0x289   :  { %v366_v24 = vadd.f32 %v362_v21, %v359_v23 }
 0x28b   :  { %v370_v25 = vadd.f32 %v366_v24, %v2865_v22 }
 0x28d   :  { %v372_v28 = vsel %vm364_vm7, %v370_v25, 1e+30 }
 0x28e   :  { %v374_v29 = vsel %vm341_vm0, %v372_v28, inf }
 0x28f   :  { %v376_v30 = vmin.f32 %v374_v29, %v2870_v27 }
 0x291   :  { %377 = vmin.xlane.f32.xlu1 %v376_v30 }
 0x295   :  { %432 = vmin.xlane.f32.xlu1 %v430_v32 }
 0x31a   :  { %v378_v33 = vpop.xlane.xlu1 %377 }
 0x31b   :  { %v379_v34 = vrot.slane %v378_v33, 4 }
 0x31d   :  { %v380_v35 = vmin.f32 %v378_v33, %v379_v34  ;;  %v515_v34 = vadd.f32 -2.0, %v2865_v22 }
 0x31e   :  { %v433_v49 = vpop.xlane.xlu1 %432 }
 0x31f   :  { %v381_v36 = vrot.slane %v380_v35, 2 }
 0x321   :  { %v382_v37 = vmin.f32 %v380_v35, %v381_v36 }
 0x323   :  { %v383_v38 = vrot.slane %v382_v37, 1 }
 0x325   :  { %v384_v39 = vmin.f32 %v382_v37, %v383_v38 }
 0x327   :  { %2567 = vpush %v384_v39 }
 0x358   :  { %s2568_s0 = spop %2567 }
 0x359   :  { %v386_v40 = vstv %s2568_s0 }
 0x35a   :  { %vm387_vm9 = vcmp.eq.f32.partialorder %v372_v28, %v386_v40  ;;  %vm2472_vm10 = vcmp.eq.f32.partialorder %v386_v40, 1e+30  ;;  %420 = vst.msk [vmem:[#allocation3 + $0x1] sm:$0x1] %vm419_vm8, %v386_v40 }
 0x35b   :  { %v389_v41 = vsel %vm387_vm9, %v2834_v55, 16  ;;  %v390_v42 = vsel %vm2472_vm10, %v2843_v6, 16 }
 0x35c   :  { %v391_v43 = vsel %vm341_vm0, %v389_v41, 2147483647  ;;  %v392_v44 = vsel %vm341_vm0, %v390_v42, 2147483647 }
 0x35d   :  { %vm393_vm11 = vcmp.lt.s32.totalorder %v391_v43, %v392_v44 }
 0x35e   :  { %v394_v45 = vsel %vm393_vm11, %v391_v43, %v392_v44  ;;  %v2477_v43 = vld [vmem:[#allocation2 + $0x4] ss:$0 sm:$0xff] }
 0x35f   :  { %v396_v46 = vshra.s32 %v394_v45, 16  ;;  %v395_v53 = vand.u32 65535, %v394_v45  ;;  %v576_v44 = vsub.f32 %v2477_v43, %v2857_v13 }
 0x361   :  { %v398_v47 = vcvt.s32.f32 %v396_v46  ;;  %v436_v48 = vld [vmem:[#allocation3] sm:$0xff]  ;;  %v397_v58 = vcvt.s32.f32 %v395_v53 }
 0x362   :  { %v440_v50 = vadd.f32 %v436_v48, %v433_v49 }
 0x363   :  { %399 = vmin.xlane.f32.xlu1 %v398_v47 }
 0x364   :  { %v444_v52 = vadd.f32 %v442_v51, %v440_v50 }
 0x366   :  { %v446_v56 = vsel %vm438_vm12, %v444_v52, 1e+30 }
 0x367   :  { %v448_v60 = vsel %vm341_vm0, %v446_v56, inf }
 0x368   :  { %v450_v61 = vmin.f32 %v448_v60, %v2870_v27 }
 0x3ec   :  { %v400_v57 = vpop.xlane.xlu1 %399 }
 0x3ed   :  { %vm401_vm13 = vcmp.eq.f32.partialorder %v398_v47, %v400_v57  ;;  %v406_v0 = vcvt.f32.s32 %v400_v57 }
 0x3ee   :  { %v402_v59 = vsel %vm401_vm13, %v397_v58, inf }
 0x3ef   :  { %403 = vmin.xlane.f32.xlu1 %v402_v59  ;;  %v407_v2 = vshll.u32 %v406_v0, 16 }
 0x3f3   :  { %451 = vmin.xlane.f32.xlu1 %v450_v61 }
 0x3f7   :  { %505 = vmin.xlane.f32.xlu1 %v503_v63 }
 0x478   :  { %v404_v1 = vpop.xlane.xlu1 %403 }
 0x479   :  { %v405_v3 = vcvt.f32.s32 %v404_v1 }
 0x47b   :  { %v408_v4 = vadd.s32 %v407_v2, %v405_v3 }
 0x47c   :  { %v452_v5 = vpop.xlane.xlu1 %451 }
 0x47d   :  { %v409_v7 = vrot.slane %v408_v4, 4  ;;  %v453_v8 = vrot.slane %v452_v5, 4 }
 0x47f   :  { %v454_v9 = vmin.f32 %v452_v5, %v453_v8  ;;  %vm410_vm14 = vcmp.lt.s32.totalorder %v408_v4, %v409_v7 }
 0x480   :  { %v411_v10 = vsel %vm410_vm14, %v408_v4, %v409_v7  ;;  %v506_v32 = vpop.xlane.xlu1 %505 }
 0x481   :  { %v412_v11 = vrot.slane %v411_v10, 2  ;;  %v455_v12 = vrot.slane %v454_v9, 2 }
 0x483   :  { %vm413_vm15 = vcmp.lt.s32.totalorder %v411_v10, %v412_v11  ;;  %v456_v14 = vmin.f32 %v454_v9, %v455_v12 }
 0x484   :  { %v414_v16 = vsel %vm413_vm15, %v411_v10, %v412_v11  ;;  %vm584_vm15 = vcmp.lt.s32.totalorder %v2834_v55, 4 }
 0x485   :  { %v415_v17 = vrot.slane %v414_v16, 1  ;;  %v457_v18 = vrot.slane %v456_v14, 1 }
 0x487   :  { %vm416_vm1 = vcmp.lt.s32.totalorder %v414_v16, %v415_v17  ;;  %v458_v19 = vmin.f32 %v456_v14, %v457_v18  ;;  %v588_v14 = vadd.f32 -3.0, %v2865_v22 }
 0x488   :  { %v417_v20 = vsel %vm416_vm1, %v414_v16, %v415_v17 }
 0x489   :  { %2569 = vpush %v417_v20 }
 0x48a   :  { %2571 = vpush %v458_v19 }
 0x4ba   :  { %s2570_s1 = spop %2569 }
 0x4bb   :  { %422 = sst [smem:[#allocation4 + $0x1]] %s2570_s1  ;;  %s2572_s21 = spop %2571 }
 0x4bc   :  { %v460_v21 = vstv %s2572_s21  ;;  %s2778_s1 = smov 0  }
 0x4bd   :  { %vm461_vm3 = vcmp.eq.f32.partialorder %v446_v56, %v460_v21  ;;  %vm2474_vm4 = vcmp.eq.f32.partialorder %v460_v21, 1e+30  ;;  %493 = vst.msk [vmem:[#allocation3 + $0x2] sm:$0x1] %vm419_vm8, %v460_v21  ;;  %346 = sst [smem:[#allocation4]] %s2778_s1 }
 0x4be   :  { %v463_v23 = vsel %vm461_vm3, %v2834_v55, 16  ;;  %v464_v24 = vsel %vm2474_vm4, %v2843_v6, 16 }
 0x4bf   :  { %v465_v25 = vsel %vm341_vm0, %v463_v23, 2147483647  ;;  %v466_v26 = vsel %vm341_vm0, %v464_v24, 2147483647 }
 0x4c0   :  { %vm467_vm5 = vcmp.lt.s32.totalorder %v465_v25, %v466_v26 }
 0x4c1   :  { %v468_v28 = vsel %vm467_vm5, %v465_v25, %v466_v26  ;;  %v2479_v25 = vld [vmem:[#allocation2 + $0x5] ss:$0 sm:$0xff] }
 0x4c2   :  { %v470_v29 = vshra.s32 %v468_v28, 16  ;;  %v469_v36 = vand.u32 65535, %v468_v28  ;;  %v649_v26 = vsub.f32 %v2479_v25, %v2857_v13 }
 0x4c4   :  { %v472_v30 = vcvt.s32.f32 %v470_v29  ;;  %v509_v31 = vld [vmem:[#allocation3] sm:$0xff]  ;;  %v471_v39 = vcvt.s32.f32 %v469_v36 }
 0x4c5   :  { %v513_v33 = vadd.f32 %v509_v31, %v506_v32 }
 0x4c6   :  { %473 = vmin.xlane.f32.xlu1 %v472_v30 }
 0x4c7   :  { %v517_v35 = vadd.f32 %v515_v34, %v513_v33 }
 0x4c9   :  { %v519_v37 = vsel %vm511_vm6, %v517_v35, 1e+30 }
 0x4ca   :  { %v521_v41 = vsel %vm341_vm0, %v519_v37, inf }
 0x4cb   :  { %v523_v42 = vmin.f32 %v521_v41, %v2870_v27 }
 0x54f   :  { %v474_v38 = vpop.xlane.xlu1 %473 }
 0x550   :  { %vm475_vm7 = vcmp.eq.f32.partialorder %v472_v30, %v474_v38  ;;  %v480_v45 = vcvt.f32.s32 %v474_v38 }
 0x551   :  { %v476_v40 = vsel %vm475_vm7, %v471_v39, inf }
 0x552   :  { %477 = vmin.xlane.f32.xlu1 %v476_v40  ;;  %v481_v47 = vshll.u32 %v480_v45, 16 }
 0x556   :  { %524 = vmin.xlane.f32.xlu1 %v523_v42 }
 0x55a   :  { %578 = vmin.xlane.f32.xlu1 %v576_v44 }
 0x5db   :  { %v478_v46 = vpop.xlane.xlu1 %477 }
 0x5dc   :  { %v479_v48 = vcvt.f32.s32 %v478_v46 }
 0x5de   :  { %v482_v49 = vadd.s32 %v481_v47, %v479_v48 }
 0x5df   :  { %v525_v50 = vpop.xlane.xlu1 %524 }
 0x5e0   :  { %v483_v51 = vrot.slane %v482_v49, 4  ;;  %v526_v52 = vrot.slane %v525_v50, 4 }
 0x5e2   :  { %v527_v53 = vmin.f32 %v525_v50, %v526_v52  ;;  %vm484_vm9 = vcmp.lt.s32.totalorder %v482_v49, %v483_v51 }
 0x5e3   :  { %v485_v56 = vsel %vm484_vm9, %v482_v49, %v483_v51  ;;  %v579_v11 = vpop.xlane.xlu1 %578 }
 0x5e4   :  { %v486_v57 = vrot.slane %v485_v56, 2  ;;  %v528_v58 = vrot.slane %v527_v53, 2 }
 0x5e6   :  { %vm487_vm10 = vcmp.lt.s32.totalorder %v485_v56, %v486_v57  ;;  %v529_v59 = vmin.f32 %v527_v53, %v528_v58 }
 0x5e7   :  { %v488_v60 = vsel %vm487_vm10, %v485_v56, %v486_v57  ;;  %vm657_vm10 = vcmp.lt.s32.totalorder %v2834_v55, 5 }
 0x5e8   :  { %v489_v61 = vrot.slane %v488_v60, 1  ;;  %v530_v62 = vrot.slane %v529_v59, 1 }
 0x5ea   :  { %vm490_vm11 = vcmp.lt.s32.totalorder %v488_v60, %v489_v61  ;;  %v531_v63 = vmin.f32 %v529_v59, %v530_v62  ;;  %v661_v59 = vadd.f32 -4.0, %v2865_v22 }
 0x5eb   :  { %v491_v0 = vsel %vm490_vm11, %v488_v60, %v489_v61 }
 0x5ec   :  { %2573 = vpush %v491_v0 }
 0x5ed   :  { %2575 = vpush %v531_v63 }
 0x61d   :  { %s2574_s22 = spop %2573 }
 0x61e   :  { %495 = sst [smem:[#allocation4 + $0x2]] %s2574_s22  ;;  %s2576_s23 = spop %2575 }
 0x61f   :  { %v533_v1 = vstv %s2576_s23 }
 0x620   :  { %vm534_vm12 = vcmp.eq.f32.partialorder %v519_v37, %v533_v1  ;;  %vm2476_vm13 = vcmp.eq.f32.partialorder %v533_v1, 1e+30  ;;  %566 = vst.msk [vmem:[#allocation3 + $0x3] sm:$0x1] %vm419_vm8, %v533_v1 }
 0x621   :  { %v536_v2 = vsel %vm534_vm12, %v2834_v55, 16  ;;  %v537_v3 = vsel %vm2476_vm13, %v2843_v6, 16 }
 0x622   :  { %v538_v4 = vsel %vm341_vm0, %v536_v2, 2147483647  ;;  %v539_v5 = vsel %vm341_vm0, %v537_v3, 2147483647 }
 0x623   :  { %vm540_vm14 = vcmp.lt.s32.totalorder %v538_v4, %v539_v5 }
 0x624   :  { %v541_v7 = vsel %vm540_vm14, %v538_v4, %v539_v5  ;;  %v2481_v4 = vld [vmem:[#allocation2 + $0x6] ss:$0 sm:$0xff] }
 0x625   :  { %v543_v8 = vshra.s32 %v541_v7, 16  ;;  %v542_v17 = vand.u32 65535, %v541_v7  ;;  %v722_v5 = vsub.f32 %v2481_v4, %v2857_v13 }
 0x627   :  { %v545_v9 = vcvt.s32.f32 %v543_v8  ;;  %v582_v10 = vld [vmem:[#allocation3] sm:$0xff]  ;;  %v544_v20 = vcvt.s32.f32 %v542_v17 }
 0x628   :  { %v586_v12 = vadd.f32 %v582_v10, %v579_v11 }
 0x629   :  { %546 = vmin.xlane.f32.xlu1 %v545_v9 }
 0x62a   :  { %v590_v16 = vadd.f32 %v588_v14, %v586_v12 }
 0x62c   :  { %v592_v18 = vsel %vm584_vm15, %v590_v16, 1e+30 }
 0x62d   :  { %v594_v23 = vsel %vm341_vm0, %v592_v18, inf }
 0x62e   :  { %v596_v24 = vmin.f32 %v594_v23, %v2870_v27 }
 0x6b2   :  { %v547_v19 = vpop.xlane.xlu1 %546 }
 0x6b3   :  { %vm548_vm1 = vcmp.eq.f32.partialorder %v545_v9, %v547_v19  ;;  %v553_v28 = vcvt.f32.s32 %v547_v19 }
 0x6b4   :  { %v549_v21 = vsel %vm548_vm1, %v544_v20, inf }
 0x6b5   :  { %550 = vmin.xlane.f32.xlu1 %v549_v21  ;;  %v554_v30 = vshll.u32 %v553_v28, 16 }
 0x6b9   :  { %597 = vmin.xlane.f32.xlu1 %v596_v24 }
 0x6bd   :  { %651 = vmin.xlane.f32.xlu1 %v649_v26 }
 0x73e   :  { %v551_v29 = vpop.xlane.xlu1 %550 }
 0x73f   :  { %v552_v31 = vcvt.f32.s32 %v551_v29 }
 0x741   :  { %v555_v32 = vadd.s32 %v554_v30, %v552_v31 }
 0x742   :  { %v598_v33 = vpop.xlane.xlu1 %597 }
 0x743   :  { %v556_v34 = vrot.slane %v555_v32, 4  ;;  %v599_v35 = vrot.slane %v598_v33, 4 }
 0x745   :  { %v600_v36 = vmin.f32 %v598_v33, %v599_v35  ;;  %vm557_vm3 = vcmp.lt.s32.totalorder %v555_v32, %v556_v34 }
 0x746   :  { %v558_v37 = vsel %vm557_vm3, %v555_v32, %v556_v34  ;;  %v652_v57 = vpop.xlane.xlu1 %651 }
 0x747   :  { %v559_v38 = vrot.slane %v558_v37, 2  ;;  %v601_v39 = vrot.slane %v600_v36, 2 }
 0x749   :  { %vm560_vm4 = vcmp.lt.s32.totalorder %v558_v37, %v559_v38  ;;  %v602_v40 = vmin.f32 %v600_v36, %v601_v39 }
 0x74a   :  { %v561_v41 = vsel %vm560_vm4, %v558_v37, %v559_v38  ;;  %vm730_vm4 = vcmp.lt.s32.totalorder %v2834_v55, 6 }
 0x74b   :  { %v562_v42 = vrot.slane %v561_v41, 1  ;;  %v603_v43 = vrot.slane %v602_v40, 1 }
 0x74d   :  { %vm563_vm5 = vcmp.lt.s32.totalorder %v561_v41, %v562_v42  ;;  %v604_v44 = vmin.f32 %v602_v40, %v603_v43  ;;  %v734_v40 = vadd.f32 -5.0, %v2865_v22 }
 0x74e   :  { %v564_v45 = vsel %vm563_vm5, %v561_v41, %v562_v42 }
 0x74f   :  { %2577 = vpush %v564_v45 }
 0x750   :  { %2579 = vpush %v604_v44 }
 0x780   :  { %s2578_s24 = spop %2577 }
 0x781   :  { %568 = sst [smem:[#allocation4 + $0x3]] %s2578_s24  ;;  %s2580_s25 = spop %2579 }
 0x782   :  { %v606_v46 = vstv %s2580_s25 }
 0x783   :  { %vm607_vm6 = vcmp.eq.f32.partialorder %v592_v18, %v606_v46  ;;  %vm2478_vm7 = vcmp.eq.f32.partialorder %v606_v46, 1e+30  ;;  %639 = vst.msk [vmem:[#allocation3 + $0x4] sm:$0x1] %vm419_vm8, %v606_v46 }
 0x784   :  { %v609_v47 = vsel %vm607_vm6, %v2834_v55, 16  ;;  %v610_v48 = vsel %vm2478_vm7, %v2843_v6, 16 }
 0x785   :  { %v611_v49 = vsel %vm341_vm0, %v609_v47, 2147483647  ;;  %v612_v50 = vsel %vm341_vm0, %v610_v48, 2147483647 }
 0x786   :  { %vm613_vm9 = vcmp.lt.s32.totalorder %v611_v49, %v612_v50 }
 0x787   :  { %v614_v51 = vsel %vm613_vm9, %v611_v49, %v612_v50  ;;  %v2483_v49 = vld [vmem:[#allocation2 + $0x7] ss:$0 sm:$0xff] }
 0x788   :  { %v616_v52 = vshra.s32 %v614_v51, 16  ;;  %v615_v61 = vand.u32 65535, %v614_v51  ;;  %v795_v50 = vsub.f32 %v2483_v49, %v2857_v13 }
 0x78a   :  { %v618_v53 = vcvt.s32.f32 %v616_v52  ;;  %v655_v56 = vld [vmem:[#allocation3] sm:$0xff]  ;;  %v617_v0 = vcvt.s32.f32 %v615_v61 }
 0x78b   :  { %v659_v58 = vadd.f32 %v655_v56, %v652_v57 }
 0x78c   :  { %619 = vmin.xlane.f32.xlu1 %v618_v53 }
 0x78d   :  { %v663_v60 = vadd.f32 %v661_v59, %v659_v58 }
 0x78f   :  { %v665_v62 = vsel %vm657_vm10, %v663_v60, 1e+30 }
 0x790   :  { %v667_v2 = vsel %vm341_vm0, %v665_v62, inf }
 0x791   :  { %v669_v3 = vmin.f32 %v667_v2, %v2870_v27 }
 0x815   :  { %v620_v63 = vpop.xlane.xlu1 %619 }
 0x816   :  { %vm621_vm11 = vcmp.eq.f32.partialorder %v618_v53, %v620_v63  ;;  %v626_v7 = vcvt.f32.s32 %v620_v63 }
 0x817   :  { %v622_v1 = vsel %vm621_vm11, %v617_v0, inf }
 0x818   :  { %623 = vmin.xlane.f32.xlu1 %v622_v1  ;;  %v627_v9 = vshll.u32 %v626_v7, 16 }
 0x81c   :  { %670 = vmin.xlane.f32.xlu1 %v669_v3 }
 0x820   :  { %724 = vmin.xlane.f32.xlu1 %v722_v5 }
 0x8a1   :  { %v624_v8 = vpop.xlane.xlu1 %623 }
 0x8a2   :  { %v625_v10 = vcvt.f32.s32 %v624_v8 }
 0x8a4   :  { %v628_v11 = vadd.s32 %v627_v9, %v625_v10 }
 0x8a5   :  { %v671_v12 = vpop.xlane.xlu1 %670 }
 0x8a6   :  { %v629_v14 = vrot.slane %v628_v11, 4  ;;  %v672_v16 = vrot.slane %v671_v12, 4 }
 0x8a8   :  { %v673_v17 = vmin.f32 %v671_v12, %v672_v16  ;;  %vm630_vm12 = vcmp.lt.s32.totalorder %v628_v11, %v629_v14 }
 0x8a9   :  { %v631_v18 = vsel %vm630_vm12, %v628_v11, %v629_v14  ;;  %v725_v38 = vpop.xlane.xlu1 %724 }
 0x8aa   :  { %v632_v19 = vrot.slane %v631_v18, 2  ;;  %v674_v20 = vrot.slane %v673_v17, 2 }
 0x8ac   :  { %vm633_vm13 = vcmp.lt.s32.totalorder %v631_v18, %v632_v19  ;;  %v675_v21 = vmin.f32 %v673_v17, %v674_v20 }
 0x8ad   :  { %v634_v23 = vsel %vm633_vm13, %v631_v18, %v632_v19  ;;  %vm803_vm13 = vcmp.lt.s32.totalorder %v2834_v55, 7 }
 0x8ae   :  { %v635_v24 = vrot.slane %v634_v23, 1  ;;  %v676_v25 = vrot.slane %v675_v21, 1 }
 0x8b0   :  { %vm636_vm14 = vcmp.lt.s32.totalorder %v634_v23, %v635_v24  ;;  %v677_v26 = vmin.f32 %v675_v21, %v676_v25  ;;  %v807_v21 = vadd.f32 -6.0, %v2865_v22 }
 0x8b1   :  { %v637_v28 = vsel %vm636_vm14, %v634_v23, %v635_v24 }
 0x8b2   :  { %2581 = vpush %v637_v28 }
 0x8b3   :  { %2583 = vpush %v677_v26 }
 0x8e3   :  { %s2582_s26 = spop %2581 }
 0x8e4   :  { %641 = sst [smem:[#allocation4 + $0x4]] %s2582_s26  ;;  %s2584_s27 = spop %2583 }
 0x8e5   :  { %v679_v29 = vstv %s2584_s27 }
 0x8e6   :  { %vm680_vm15 = vcmp.eq.f32.partialorder %v665_v62, %v679_v29  ;;  %vm2480_vm1 = vcmp.eq.f32.partialorder %v679_v29, 1e+30  ;;  %712 = vst.msk [vmem:[#allocation3 + $0x5] sm:$0x1] %vm419_vm8, %v679_v29 }
 0x8e7   :  { %v682_v30 = vsel %vm680_vm15, %v2834_v55, 16  ;;  %v683_v31 = vsel %vm2480_vm1, %v2843_v6, 16 }
 0x8e8   :  { %v684_v32 = vsel %vm341_vm0, %v682_v30, 2147483647  ;;  %v685_v33 = vsel %vm341_vm0, %v683_v31, 2147483647 }
 0x8e9   :  { %vm686_vm3 = vcmp.lt.s32.totalorder %v684_v32, %v685_v33 }
 0x8ea   :  { %v687_v34 = vsel %vm686_vm3, %v684_v32, %v685_v33  ;;  %v2485_v32 = vld [vmem:[#allocation2 + $0x8] ss:$0 sm:$0xff] }
 0x8eb   :  { %v689_v35 = vshra.s32 %v687_v34, 16  ;;  %v688_v42 = vand.u32 65535, %v687_v34  ;;  %v868_v33 = vsub.f32 %v2485_v32, %v2857_v13 }
 0x8ed   :  { %v691_v36 = vcvt.s32.f32 %v689_v35  ;;  %v728_v37 = vld [vmem:[#allocation3] sm:$0xff]  ;;  %v690_v45 = vcvt.s32.f32 %v688_v42 }
 0x8ee   :  { %v732_v39 = vadd.f32 %v728_v37, %v725_v38 }
 0x8ef   :  { %692 = vmin.xlane.f32.xlu1 %v691_v36 }
 0x8f0   :  { %v736_v41 = vadd.f32 %v734_v40, %v732_v39 }
 0x8f2   :  { %v738_v43 = vsel %vm730_vm4, %v736_v41, 1e+30 }
 0x8f3   :  { %v740_v47 = vsel %vm341_vm0, %v738_v43, inf }
 0x8f4   :  { %v742_v48 = vmin.f32 %v740_v47, %v2870_v27 }
 0x978   :  { %v693_v44 = vpop.xlane.xlu1 %692 }
 0x979   :  { %vm694_vm5 = vcmp.eq.f32.partialorder %v691_v36, %v693_v44  ;;  %v699_v51 = vcvt.f32.s32 %v693_v44 }
 0x97a   :  { %v695_v46 = vsel %vm694_vm5, %v690_v45, inf }
 0x97b   :  { %696 = vmin.xlane.f32.xlu1 %v695_v46  ;;  %v700_v53 = vshll.u32 %v699_v51, 16 }
 0x97f   :  { %743 = vmin.xlane.f32.xlu1 %v742_v48 }
 0x983   :  { %797 = vmin.xlane.f32.xlu1 %v795_v50 }
 0xa04   :  { %v697_v52 = vpop.xlane.xlu1 %696 }
 0xa05   :  { %v698_v56 = vcvt.f32.s32 %v697_v52 }
 0xa07   :  { %v701_v57 = vadd.s32 %v700_v53, %v698_v56 }
 0xa08   :  { %v744_v58 = vpop.xlane.xlu1 %743 }
 0xa09   :  { %v702_v59 = vrot.slane %v701_v57, 4  ;;  %v745_v60 = vrot.slane %v744_v58, 4 }
 0xa0b   :  { %v746_v61 = vmin.f32 %v744_v58, %v745_v60  ;;  %vm703_vm6 = vcmp.lt.s32.totalorder %v701_v57, %v702_v59 }
 0xa0c   :  { %v704_v62 = vsel %vm703_vm6, %v701_v57, %v702_v59  ;;  %v798_v19 = vpop.xlane.xlu1 %797 }
 0xa0d   :  { %v705_v63 = vrot.slane %v704_v62, 2  ;;  %v747_v0 = vrot.slane %v746_v61, 2 }
 0xa0f   :  { %vm706_vm7 = vcmp.lt.s32.totalorder %v704_v62, %v705_v63  ;;  %v748_v1 = vmin.f32 %v746_v61, %v747_v0 }
 0xa10   :  { %v707_v2 = vsel %vm706_vm7, %v704_v62, %v705_v63 }
 0xa11   :  { %v708_v3 = vrot.slane %v707_v2, 1  ;;  %v749_v4 = vrot.slane %v748_v1, 1 }
 0xa13   :  { %vm709_vm9 = vcmp.lt.s32.totalorder %v707_v2, %v708_v3  ;;  %v750_v5 = vmin.f32 %v748_v1, %v749_v4  ;;  %v880_v1 = vadd.f32 -7.0, %v2865_v22 }
 0xa14   :  { %v710_v7 = vsel %vm709_vm9, %v707_v2, %v708_v3 }
 0xa15   :  { %2585 = vpush %v710_v7 }
 0xa16   :  { %2587 = vpush %v750_v5 }
 0xa46   :  { %s2586_s28 = spop %2585 }
 0xa47   :  { %714 = sst [smem:[#allocation4 + $0x5]] %s2586_s28  ;;  %s2588_s29 = spop %2587 }
 0xa48   :  { %v752_v8 = vstv %s2588_s29 }
 0xa49   :  { %vm753_vm10 = vcmp.eq.f32.partialorder %v738_v43, %v752_v8  ;;  %vm2482_vm11 = vcmp.eq.f32.partialorder %v752_v8, 1e+30  ;;  %785 = vst.msk [vmem:[#allocation3 + $0x6] sm:$0x1] %vm419_vm8, %v752_v8 }
 0xa4a   :  { %v755_v9 = vsel %vm753_vm10, %v2834_v55, 16  ;;  %v756_v10 = vsel %vm2482_vm11, %v2843_v6, 16 }
 0xa4b   :  { %v757_v11 = vsel %vm341_vm0, %v755_v9, 2147483647  ;;  %v758_v12 = vsel %vm341_vm0, %v756_v10, 2147483647  ;;  %v2487_v10 = vld [vmem:[#allocation2 + $0x9] ss:$0 sm:$0xff] }
 0xa4c   :  { %vm759_vm12 = vcmp.lt.s32.totalorder %v757_v11, %v758_v12 }
 0xa4d   :  { %v760_v14 = vsel %vm759_vm12, %v757_v11, %v758_v12  ;;  %v942_v11 = vsub.f32 %v2487_v10, %v2860_v15  ;;  %v941_v12 = vsub.f32 %v2487_v10, %v2857_v13 }
 0xa4e   :  { %v762_v16 = vshra.s32 %v760_v14, 16  ;;  %v761_v24 = vand.u32 65535, %v760_v14 }
 0xa50   :  { %v764_v17 = vcvt.s32.f32 %v762_v16  ;;  %v801_v18 = vld [vmem:[#allocation3] sm:$0xff]  ;;  %v763_v28 = vcvt.s32.f32 %v761_v24 }
 0xa51   :  { %v805_v20 = vadd.f32 %v801_v18, %v798_v19 }
 0xa52   :  { %765 = vmin.xlane.f32.xlu1 %v764_v17 }
 0xa53   :  { %v809_v23 = vadd.f32 %v807_v21, %v805_v20 }
 0xa55   :  { %v811_v25 = vsel %vm803_vm13, %v809_v23, 1e+30 }
 0xa56   :  { %v813_v30 = vsel %vm341_vm0, %v811_v25, inf }
 0xa57   :  { %v815_v31 = vmin.f32 %v813_v30, %v2870_v27 }
 0xadb   :  { %v766_v26 = vpop.xlane.xlu1 %765 }
 0xadc   :  { %vm767_vm14 = vcmp.eq.f32.partialorder %v764_v17, %v766_v26  ;;  %v772_v34 = vcvt.f32.s32 %v766_v26 }
 0xadd   :  { %v768_v29 = vsel %vm767_vm14, %v763_v28, inf }
 0xade   :  { %769 = vmin.xlane.f32.xlu1 %v768_v29  ;;  %v773_v36 = vshll.u32 %v772_v34, 16 }
 0xae2   :  { %816 = vmin.xlane.f32.xlu1 %v815_v31 }
 0xae6   :  { %870 = vmin.xlane.f32.xlu1 %v868_v33 }
 0xb67   :  { %v770_v35 = vpop.xlane.xlu1 %769 }
 0xb68   :  { %v771_v37 = vcvt.f32.s32 %v770_v35 }
 0xb6a   :  { %v774_v38 = vadd.s32 %v773_v36, %v771_v37 }
 0xb6b   :  { %v817_v39 = vpop.xlane.xlu1 %816 }
 0xb6c   :  { %v775_v40 = vrot.slane %v774_v38, 4  ;;  %v818_v41 = vrot.slane %v817_v39, 4 }
 0xb6e   :  { %v819_v42 = vmin.f32 %v817_v39, %v818_v41  ;;  %vm776_vm15 = vcmp.lt.s32.totalorder %v774_v38, %v775_v40 }
 0xb6f   :  { %v777_v43 = vsel %vm776_vm15, %v774_v38, %v775_v40  ;;  %v871_v63 = vpop.xlane.xlu1 %870  ;;  %vm950_vm15 = vcmp.lt.s32.totalorder %v2843_v6, 9 }
 0xb70   :  { %v778_v44 = vrot.slane %v777_v43, 2  ;;  %v820_v45 = vrot.slane %v819_v42, 2 }
 0xb72   :  { %vm779_vm1 = vcmp.lt.s32.totalorder %v777_v43, %v778_v44  ;;  %v821_v46 = vmin.f32 %v819_v42, %v820_v45 }
 0xb73   :  { %v780_v47 = vsel %vm779_vm1, %v777_v43, %v778_v44  ;;  %v2954_v43 = vcvt.s32.f32 %v2843_v6 }
 0xb74   :  { %v781_v48 = vrot.slane %v780_v47, 1  ;;  %v822_v49 = vrot.slane %v821_v46, 1 }
 0xb76   :  { %vm782_vm3 = vcmp.lt.s32.totalorder %v780_v47, %v781_v48  ;;  %v823_v50 = vmin.f32 %v821_v46, %v822_v49  ;;  %v954_v46 = vadd.f32 -8.0, %v2954_v43  ;;  %v953_v49 = vadd.f32 -8.0, %v2865_v22 }
 0xb77   :  { %v783_v51 = vsel %vm782_vm3, %v780_v47, %v781_v48 }
 0xb78   :  { %2589 = vpush %v783_v51 }
 0xb79   :  { %2591 = vpush %v823_v50 }
 0xba9   :  { %s2590_s30 = spop %2589 }
 0xbaa   :  { %787 = sst [smem:[#allocation4 + $0x6]] %s2590_s30  ;;  %s2592_s3 = spop %2591 }
 0xbab   :  { %v825_v52 = vstv %s2592_s3 }
 0xbac   :  { %vm826_vm4 = vcmp.eq.f32.partialorder %v811_v25, %v825_v52  ;;  %vm2484_vm5 = vcmp.eq.f32.partialorder %v825_v52, 1e+30  ;;  %858 = vst.msk [vmem:[#allocation3 + $0x7] sm:$0x1] %vm419_vm8, %v825_v52 }
 0xbad   :  { %v828_v53 = vsel %vm826_vm4, %v2834_v55, 16  ;;  %v829_v56 = vsel %vm2484_vm5, %v2843_v6, 16 }
 0xbae   :  { %v830_v57 = vsel %vm341_vm0, %v828_v53, 2147483647  ;;  %v831_v58 = vsel %vm341_vm0, %v829_v56, 2147483647 }
 0xbaf   :  { %vm832_vm6 = vcmp.lt.s32.totalorder %v830_v57, %v831_v58 }
 0xbb0   :  { %v833_v59 = vsel %vm832_vm6, %v830_v57, %v831_v58 }
 0xbb1   :  { %v835_v60 = vshra.s32 %v833_v59, 16  ;;  %v834_v2 = vand.u32 65535, %v833_v59 }
 0xbb3   :  { %v837_v61 = vcvt.s32.f32 %v835_v60  ;;  %v2940_v62 = vld [vmem:[#allocation3] sm:$0xff]  ;;  %v836_v5 = vcvt.s32.f32 %v834_v2 }
 0xbb4   :  { %v878_v0 = vadd.f32 %v2940_v62, %v871_v63  ;;  %v2488_v63 = vld [vmem:[#allocation2 + $0xa] ss:$0 sm:$0xff] }
 0xbb5   :  { %838 = vmin.xlane.f32.xlu0 %v837_v61 }
 0xbb6   :  { %v882_v3 = vadd.f32 %v880_v1, %v878_v0  ;;  %v1015_v0 = vsub.f32 %v2488_v63, %v2860_v15  ;;  %v1014_v1 = vsub.f32 %v2488_v63, %v2857_v13 }
 0xbb8   :  { %v886_v8 = vsel %vm341_vm0, %v882_v3, inf }
 0xbb9   :  { %v888_v9 = vmin.f32 %v886_v8, %v2870_v27 }
 0xc3e   :  { %v839_v4 = vpop.xlane.xlu0 %838 }
 0xc3f   :  { %vm840_vm7 = vcmp.eq.f32.partialorder %v837_v61, %v839_v4  ;;  %v845_v14 = vcvt.f32.s32 %v839_v4 }
 0xc40   :  { %v841_v7 = vsel %vm840_vm7, %v836_v5, inf }
 0xc41   :  { %842 = vmin.xlane.f32.xlu1 %v841_v7  ;;  %v846_v17 = vshll.u32 %v845_v14, 16 }
 0xc45   :  { %889 = vmin.xlane.f32.xlu1 %v888_v9 }
 0xc49   :  { %945 = vmin.xlane.f32.xlu1 %v942_v11 }
 0xc4d   :  { %943 = vmin.xlane.f32.xlu1 %v941_v12 }
 0xcca   :  { %v843_v16 = vpop.xlane.xlu1 %842 }
 0xccb   :  { %v844_v18 = vcvt.f32.s32 %v843_v16 }
 0xccd   :  { %v847_v19 = vadd.s32 %v846_v17, %v844_v18 }
 0xcce   :  { %v890_v20 = vpop.xlane.xlu1 %889 }
 0xccf   :  { %v848_v21 = vrot.slane %v847_v19, 4  ;;  %v891_v23 = vrot.slane %v890_v20, 4 }
 0xcd1   :  { %v892_v24 = vmin.f32 %v890_v20, %v891_v23  ;;  %vm849_vm9 = vcmp.lt.s32.totalorder %v847_v19, %v848_v21 }
 0xcd2   :  { %v850_v25 = vsel %vm849_vm9, %v847_v19, %v848_v21  ;;  %v946_v42 = vpop.xlane.xlu1 %945 }
 0xcd3   :  { %v851_v27 = vrot.slane %v850_v25, 2  ;;  %v893_v26 = vrot.slane %v892_v24, 2 }
 0xcd5   :  { %vm852_vm10 = vcmp.lt.s32.totalorder %v850_v25, %v851_v27  ;;  %v894_v28 = vmin.f32 %v892_v24, %v893_v26 }
 0xcd6   :  { %v853_v29 = vsel %vm852_vm10, %v850_v25, %v851_v27  ;;  %v944_v47 = vpop.xlane.xlu1 %943  ;;  %vm1023_vm10 = vcmp.lt.s32.totalorder %v2843_v6, 10 }
 0xcd7   :  { %v854_v30 = vrot.slane %v853_v29, 1  ;;  %v895_v31 = vrot.slane %v894_v28, 1  ;;  %v951_v50 = vadd.f32 %v944_v47, %v2940_v62 }
 0xcd9   :  { %vm855_vm11 = vcmp.lt.s32.totalorder %v853_v29, %v854_v30  ;;  %v896_v32 = vmin.f32 %v894_v28, %v895_v31  ;;  %v955_v53 = vadd.f32 %v953_v49, %v951_v50 }
 0xcda   :  { %v856_v33 = vsel %vm855_vm11, %v853_v29, %v854_v30  ;;  %v1026_v30 = vadd.f32 -9.0, %v2865_v22 }
 0xcdb   :  { %2593 = vpush %v856_v33  ;;  %v959_v60 = vsel %vm341_vm0, %v955_v53, inf  ;;  %v1027_v33 = vadd.f32 -9.0, %v2954_v43 }
 0xcdc   :  { %2595 = vpush %v896_v32 }
 0xd0c   :  { %s2594_s4 = spop %2593 }
 0xd0d   :  { %860 = sst [smem:[#allocation4 + $0x7]] %s2594_s4  ;;  %s2596_s5 = spop %2595 }
 0xd0e   :  { %v898_v34 = vstv %s2596_s5 }
 0xd0f   :  { %vm899_vm12 = vcmp.eq.f32.partialorder %v882_v3, %v898_v34  ;;  %vm2486_vm13 = vcmp.eq.f32.partialorder %v898_v34, 1e+30  ;;  %931 = vst.msk [vmem:[#allocation3 + $0x8] sm:$0x1] %vm419_vm8, %v898_v34 }
 0xd10   :  { %v901_v35 = vsel %vm899_vm12, %v2834_v55, 16  ;;  %v902_v36 = vsel %vm2486_vm13, %v2843_v6, 16 }
 0xd11   :  { %v903_v37 = vsel %vm341_vm0, %v901_v35, 2147483647  ;;  %v904_v38 = vsel %vm341_vm0, %v902_v36, 2147483647 }
 0xd12   :  { %vm905_vm14 = vcmp.lt.s32.totalorder %v903_v37, %v904_v38 }
 0xd13   :  { %v906_v39 = vsel %vm905_vm14, %v903_v37, %v904_v38 }
 0xd14   :  { %v908_v40 = vshra.s32 %v906_v39, 16  ;;  %v907_v51 = vand.u32 65535, %v906_v39 }
 0xd16   :  { %v910_v41 = vcvt.s32.f32 %v908_v40  ;;  %v948_v44 = vld [vmem:[#allocation3 + $0x8] sm:$0xff]  ;;  %v909_v57 = vcvt.s32.f32 %v907_v51  ;;  %v2978_v51 = vld [vmem:[#allocation2 + $0x8] sm:$0xff] }
 0xd17   :  { %v952_v45 = vadd.f32 %v948_v44, %v946_v42  ;;  %v2489_v44 = vld [vmem:[#allocation2 + $0xb] ss:$0 sm:$0xff] }
 0xd18   :  { %911 = vmin.xlane.f32.xlu1 %v910_v41 }
 0xd19   :  { %v956_v48 = vadd.f32 %v954_v46, %v952_v45  ;;  %v2975_v45 = vld [vmem:[#allocation2] sm:$0xff] }
 0xd1a   :  { %v1087_v46 = vsub.f32 %v2489_v44, %v2975_v45 }
 0xd1b   :  { %v958_v52 = vsel %vm950_vm15, %v956_v48, 1e+30 }
 0xd1c   :  { %v960_v59 = vsel %vm341_vm0, %v958_v52, inf }
 0xd1d   :  { %v961_v61 = vmin.f32 %v959_v60, %v960_v59 }
 0xda1   :  { %v912_v56 = vpop.xlane.xlu1 %911 }
 0xda2   :  { %vm913_vm1 = vcmp.eq.f32.partialorder %v910_v41, %v912_v56  ;;  %v918_v2 = vcvt.f32.s32 %v912_v56 }
 0xda3   :  { %v914_v58 = vsel %vm913_vm1, %v909_v57, inf }
 0xda4   :  { %915 = vmin.xlane.f32.xlu1 %v914_v58  ;;  %v919_v4 = vshll.u32 %v918_v2, 16 }
 0xda8   :  { %962 = vmin.xlane.f32.xlu1 %v961_v61 }
 0xdac   :  { %1018 = vmin.xlane.f32.xlu1 %v1015_v0 }
 0xdb0   :  { %1016 = vmin.xlane.f32.xlu1 %v1014_v1 }
 0xe2d   :  { %v916_v3 = vpop.xlane.xlu1 %915 }
 0xe2e   :  { %v917_v5 = vcvt.f32.s32 %v916_v3 }
 0xe30   :  { %v920_v7 = vadd.s32 %v919_v4, %v917_v5 }
 0xe31   :  { %v963_v8 = vpop.xlane.xlu1 %962 }
 0xe32   :  { %v921_v9 = vrot.slane %v920_v7, 4  ;;  %v964_v10 = vrot.slane %v963_v8, 4 }
 0xe34   :  { %vm922_vm3 = vcmp.lt.s32.totalorder %v920_v7, %v921_v9  ;;  %v965_v11 = vmin.f32 %v963_v8, %v964_v10 }
 0xe35   :  { %v923_v12 = vsel %vm922_vm3, %v920_v7, %v921_v9  ;;  %v1019_v21 = vpop.xlane.xlu1 %1018 }
 0xe36   :  { %v966_v14 = vrot.slane %v965_v11, 2  ;;  %v924_v16 = vrot.slane %v923_v12, 2 }
 0xe38   :  { %vm925_vm4 = vcmp.lt.s32.totalorder %v923_v12, %v924_v16  ;;  %v967_v17 = vmin.f32 %v965_v11, %v966_v14 }
 0xe39   :  { %v926_v15 = vsel %vm925_vm4, %v923_v12, %v924_v16  ;;  %v1017_v27 = vpop.xlane.xlu1 %1016  ;;  %vm1096_vm4 = vcmp.lt.s32.totalorder %v2843_v6, 11 }
 0xe3a   :  { %v927_v18 = vrot.slane %v926_v15, 1  ;;  %v968_v19 = vrot.slane %v967_v17, 1  ;;  %v1024_v31 = vadd.f32 %v1017_v27, %v2940_v62 }
 0xe3c   :  { %vm928_vm5 = vcmp.lt.s32.totalorder %v926_v15, %v927_v18  ;;  %v969_v13 = vmin.f32 %v967_v17, %v968_v19  ;;  %v1028_v37 = vadd.f32 %v1026_v30, %v1024_v31  ;;  %v1099_v19 = vadd.f32 -10.0, %v2865_v22 }
 0xe3d   :  { %v929_v20 = vsel %vm928_vm5, %v926_v15, %v927_v18 }
 0xe3e   :  { %2597 = vpush %v929_v20  ;;  %v1032_v40 = vsel %vm341_vm0, %v1028_v37, inf }
 0xe3f   :  { %2599 = vpush %v969_v13 }
 0xe6f   :  { %s2598_s6 = spop %2597 }
 0xe70   :  { %933 = sst [smem:[#allocation4 + $0x8]] %s2598_s6  ;;  %s2600_s7 = spop %2599 }
 0xe71   :  { %v971_v23 = vstv %s2600_s7 }
 0xe72   :  { %vm972_vm6 = vcmp.eq.f32.partialorder %v955_v53, %v971_v23  ;;  %vm973_vm7 = vcmp.eq.f32.partialorder %v958_v52, %v971_v23  ;;  %1004 = vst.msk [vmem:[#allocation3 + $0x9] sm:$0x1] %vm419_vm8, %v971_v23  ;;  %v1088_v52 = vsub.f32 %v2489_v44, %v2978_v51 }
 0xe73   :  { %v974_v24 = vsel %vm972_vm6, %v2834_v55, 16  ;;  %v975_v25 = vsel %vm973_vm7, %v2843_v6, 16 }
 0xe74   :  { %v976_v26 = vsel %vm341_vm0, %v974_v24, 2147483647  ;;  %v977_v28 = vsel %vm341_vm0, %v975_v25, 2147483647 }
 0xe75   :  { %vm978_vm9 = vcmp.lt.s32.totalorder %v976_v26, %v977_v28 }
 0xe76   :  { %v979_v29 = vsel %vm978_vm9, %v976_v26, %v977_v28 }
 0xe77   :  { %v981_v32 = vshra.s32 %v979_v29, 16  ;;  %v980_v47 = vand.u32 65535, %v979_v29 }
 0xe79   :  { %v983_v34 = vcvt.s32.f32 %v981_v32  ;;  %v1021_v35 = vld [vmem:[#allocation3 + $0x8] sm:$0xff]  ;;  %v982_v49 = vcvt.s32.f32 %v980_v47 }
 0xe7a   :  { %v1025_v36 = vadd.f32 %v1021_v35, %v1019_v21  ;;  %v1100_v21 = vadd.f32 -10.0, %v2954_v43 }
 0xe7b   :  { %984 = vmin.xlane.f32.xlu1 %v983_v34 }
 0xe7c   :  { %v1029_v38 = vadd.f32 %v1027_v33, %v1025_v36  ;;  %v2490_v33 = vld [vmem:[#allocation2 + $0xc] ss:$0 sm:$0xff] }
 0xe7e   :  { %v1031_v39 = vsel %vm1023_vm10, %v1029_v38, 1e+30 }
 0xe7f   :  { %v1033_v41 = vsel %vm341_vm0, %v1031_v39, inf }
 0xe80   :  { %v1034_v42 = vmin.f32 %v1032_v40, %v1033_v41 }
 0xe82   :  { %1035 = vmin.xlane.f32.xlu0 %v1034_v42 }
 0xe86   :  { %1089 = vmin.xlane.f32.xlu0 %v1087_v46 }
 0xf04   :  { %v985_v48 = vpop.xlane.xlu1 %984 }
 0xf05   :  { %vm986_vm11 = vcmp.eq.f32.partialorder %v983_v34, %v985_v48  ;;  %v991_v57 = vcvt.f32.s32 %v985_v48  ;;  %v1160_v34 = vsub.f32 %v2490_v33, %v2975_v45 }
 0xf06   :  { %v987_v50 = vsel %vm986_vm11, %v982_v49, inf }
 0xf07   :  { %988 = vmin.xlane.f32.xlu1 %v987_v50  ;;  %v992_v60 = vshll.u32 %v991_v57, 16 }
 0xf0b   :  { %1091 = vmin.xlane.f32.xlu1 %v1088_v52  ;;  %v1036_v53 = vpop.xlane.xlu0 %1035 }
 0xf0c   :  { %v1037_v56 = vrot.slane %v1036_v53, 4 }
 0xf0e   :  { %v1038_v58 = vmin.f32 %v1036_v53, %v1037_v56 }
 0xf0f   :  { %v1090_v16 = vpop.xlane.xlu0 %1089 }
 0xf10   :  { %v1039_v0 = vrot.slane %v1038_v58, 2  ;;  %v1097_v13 = vadd.f32 %v1090_v16, %v2940_v62 }
 0xf12   :  { %v1040_v3 = vmin.f32 %v1038_v58, %v1039_v0  ;;  %v1101_v26 = vadd.f32 %v1099_v19, %v1097_v13 }
 0xf14   :  { %v1041_v7 = vrot.slane %v1040_v3, 1  ;;  %v1105_v30 = vsel %vm341_vm0, %v1101_v26, inf }
 0xf16   :  { %v1042_v10 = vmin.f32 %v1040_v3, %v1041_v7 }
 0xf90   :  { %v989_v59 = vpop.xlane.xlu1 %988 }
 0xf91   :  { %v990_v61 = vcvt.f32.s32 %v989_v59 }
 0xf93   :  { %v993_v63 = vadd.s32 %v992_v60, %v990_v61 }
 0xf94   :  { %v1092_v23 = vpop.xlane.xlu1 %1091 }
 0xf95   :  { %v994_v1 = vrot.slane %v993_v63, 4 }
 0xf97   :  { %vm995_vm12 = vcmp.lt.s32.totalorder %v993_v63, %v994_v1 }
 0xf98   :  { %v996_v2 = vsel %vm995_vm12, %v993_v63, %v994_v1 }
 0xf99   :  { %v997_v4 = vrot.slane %v996_v2, 2 }
 0xf9b   :  { %vm998_vm13 = vcmp.lt.s32.totalorder %v996_v2, %v997_v4 }
 0xf9c   :  { %v999_v5 = vsel %vm998_vm13, %v996_v2, %v997_v4  ;;  %vm1169_vm13 = vcmp.lt.s32.totalorder %v2843_v6, 12 }
 0xf9d   :  { %v1000_v8 = vrot.slane %v999_v5, 1 }
 0xf9f   :  { %vm1001_vm14 = vcmp.lt.s32.totalorder %v999_v5, %v1000_v8 }
 0xfa0   :  { %v1002_v9 = vsel %vm1001_vm14, %v999_v5, %v1000_v8  ;;  %v1172_v8 = vadd.f32 -11.0, %v2865_v22 }
 0xfa1   :  { %2601 = vpush %v1002_v9 }
 0xfa2   :  { %2603 = vpush %v1042_v10 }
 0xfd2   :  { %s2602_s8 = spop %2601 }
 0xfd3   :  { %1006 = sst [smem:[#allocation4 + $0x9]] %s2602_s8  ;;  %s2604_s9 = spop %2603 }
 0xfd4   :  { %v1044_v11 = vstv %s2604_s9 }
 0xfd5   :  { %vm1045_vm15 = vcmp.eq.f32.partialorder %v1028_v37, %v1044_v11  ;;  %vm1046_vm1 = vcmp.eq.f32.partialorder %v1031_v39, %v1044_v11  ;;  %1077 = vst.msk [vmem:[#allocation3 + $0xa] sm:$0x1] %vm419_vm8, %v1044_v11  ;;  %v1161_v39 = vsub.f32 %v2490_v33, %v2978_v51  ;;  %v1173_v11 = vadd.f32 -11.0, %v2954_v43 }
 0xfd6   :  { %v1047_v12 = vsel %vm1045_vm15, %v2834_v55, 16  ;;  %v1048_v14 = vsel %vm1046_vm1, %v2843_v6, 16 }
 0xfd7   :  { %v1049_v17 = vsel %vm341_vm0, %v1047_v12, 2147483647  ;;  %v1050_v15 = vsel %vm341_vm0, %v1048_v14, 2147483647 }
 0xfd8   :  { %vm1051_vm3 = vcmp.lt.s32.totalorder %v1049_v17, %v1050_v15 }
 0xfd9   :  { %v1052_v18 = vsel %vm1051_vm3, %v1049_v17, %v1050_v15 }
 0xfda   :  { %v1054_v20 = vshra.s32 %v1052_v18, 16  ;;  %v1053_v35 = vand.u32 65535, %v1052_v18 }
 0xfdc   :  { %v1056_v24 = vcvt.s32.f32 %v1054_v20  ;;  %v1094_v25 = vld [vmem:[#allocation3 + $0x8] sm:$0xff]  ;;  %v1055_v37 = vcvt.s32.f32 %v1053_v35 }
 0xfdd   :  { %v1098_v27 = vadd.f32 %v1094_v25, %v1092_v23  ;;  %v2491_v23 = vld [vmem:[#allocation2 + $0xd] ss:$0 sm:$0xff] }
 0xfde   :  { %1057 = vmin.xlane.f32.xlu1 %v1056_v24 }
 0xfdf   :  { %v1102_v28 = vadd.f32 %v1100_v21, %v1098_v27 }
 0xfe1   :  { %v1104_v29 = vsel %vm1096_vm4, %v1102_v28, 1e+30 }
 0xfe2   :  { %v1106_v31 = vsel %vm341_vm0, %v1104_v29, inf }
 0xfe3   :  { %v1107_v32 = vmin.f32 %v1105_v30, %v1106_v31 }
 0xfe5   :  { %1108 = vmin.xlane.f32.xlu1 %v1107_v32 }
 0xfe9   :  { %1162 = vmin.xlane.f32.xlu1 %v1160_v34 }
0x1067   :  { %v1058_v36 = vpop.xlane.xlu1 %1057 }
0x1068   :  { %vm1059_vm5 = vcmp.eq.f32.partialorder %v1056_v24, %v1058_v36  ;;  %v1064_v42 = vcvt.f32.s32 %v1058_v36  ;;  %v1233_v24 = vsub.f32 %v2491_v23, %v2975_v45 }
0x1069   :  { %v1060_v38 = vsel %vm1059_vm5, %v1055_v37, inf }
0x106a   :  { %1061 = vmin.xlane.f32.xlu0 %v1060_v38  ;;  %v1065_v47 = vshll.u32 %v1064_v42, 16 }
0x106e   :  { %1164 = vmin.xlane.f32.xlu0 %v1161_v39  ;;  %v1109_v40 = vpop.xlane.xlu1 %1108 }
0x106f   :  { %v1110_v41 = vrot.slane %v1109_v40, 4 }
0x1071   :  { %v1111_v44 = vmin.f32 %v1109_v40, %v1110_v41 }
0x1072   :  { %v1163_v3 = vpop.xlane.xlu1 %1162 }
0x1073   :  { %v1112_v50 = vrot.slane %v1111_v44, 2  ;;  %v1170_v9 = vadd.f32 %v1163_v3, %v2940_v62 }
0x1075   :  { %v1113_v56 = vmin.f32 %v1111_v44, %v1112_v50  ;;  %v1174_v15 = vadd.f32 %v1172_v8, %v1170_v9 }
0x1077   :  { %v1114_v59 = vrot.slane %v1113_v56, 1  ;;  %v1178_v13 = vsel %vm341_vm0, %v1174_v15, inf }
0x1079   :  { %v1115_v63 = vmin.f32 %v1113_v56, %v1114_v59 }
0x10f3   :  { %v1062_v46 = vpop.xlane.xlu0 %1061 }
0x10f4   :  { %v1063_v48 = vcvt.f32.s32 %v1062_v46 }
0x10f6   :  { %v1066_v49 = vadd.s32 %v1065_v47, %v1063_v48 }
0x10f7   :  { %v1165_v12 = vpop.xlane.xlu0 %1164 }
0x10f8   :  { %v1067_v52 = vrot.slane %v1066_v49, 4 }
0x10fa   :  { %vm1068_vm6 = vcmp.lt.s32.totalorder %v1066_v49, %v1067_v52 }
0x10fb   :  { %v1069_v53 = vsel %vm1068_vm6, %v1066_v49, %v1067_v52 }
0x10fc   :  { %v1070_v57 = vrot.slane %v1069_v53, 2 }
0x10fe   :  { %vm1071_vm7 = vcmp.lt.s32.totalorder %v1069_v53, %v1070_v57 }
0x10ff   :  { %v1072_v58 = vsel %vm1071_vm7, %v1069_v53, %v1070_v57  ;;  %vm1242_vm7 = vcmp.lt.s32.totalorder %v2843_v6, 13 }
0x1100   :  { %v1073_v60 = vrot.slane %v1072_v58, 1 }
0x1102   :  { %vm1074_vm9 = vcmp.lt.s32.totalorder %v1072_v58, %v1073_v60 }
0x1103   :  { %v1075_v61 = vsel %vm1074_vm9, %v1072_v58, %v1073_v60  ;;  %v1245_v60 = vadd.f32 -12.0, %v2865_v22 }
0x1104   :  { %2605 = vpush %v1075_v61 }
0x1105   :  { %2607 = vpush %v1115_v63 }
0x1135   :  { %s2606_s10 = spop %2605 }
0x1136   :  { %1079 = sst [smem:[#allocation4 + $0xa]] %s2606_s10  ;;  %s2608_s11 = spop %2607 }
0x1137   :  { %v1117_v0 = vstv %s2608_s11 }
0x1138   :  { %vm1118_vm10 = vcmp.eq.f32.partialorder %v1101_v26, %v1117_v0  ;;  %vm1119_vm11 = vcmp.eq.f32.partialorder %v1104_v29, %v1117_v0  ;;  %1150 = vst.msk [vmem:[#allocation3 + $0xb] sm:$0x1] %vm419_vm8, %v1117_v0  ;;  %v1234_v29 = vsub.f32 %v2491_v23, %v2978_v51  ;;  %v1246_v0 = vadd.f32 -12.0, %v2954_v43 }
0x1139   :  { %v1120_v1 = vsel %vm1118_vm10, %v2834_v55, 16  ;;  %v1121_v2 = vsel %vm1119_vm11, %v2843_v6, 16 }
0x113a   :  { %v1122_v4 = vsel %vm341_vm0, %v1120_v1, 2147483647  ;;  %v1123_v5 = vsel %vm341_vm0, %v1121_v2, 2147483647 }
0x113b   :  { %vm1124_vm12 = vcmp.lt.s32.totalorder %v1122_v4, %v1123_v5 }
0x113c   :  { %v1125_v7 = vsel %vm1124_vm12, %v1122_v4, %v1123_v5 }
0x113d   :  { %v1127_v10 = vshra.s32 %v1125_v7, 16  ;;  %v1126_v25 = vand.u32 65535, %v1125_v7 }
0x113f   :  { %v1129_v14 = vcvt.s32.f32 %v1127_v10  ;;  %v1167_v16 = vld [vmem:[#allocation3 + $0x8] sm:$0xff]  ;;  %v1128_v26 = vcvt.s32.f32 %v1126_v25 }
0x1140   :  { %v1171_v17 = vadd.f32 %v1167_v16, %v1165_v12  ;;  %v2492_v12 = vld [vmem:[#allocation2 + $0xe] ss:$0 sm:$0xff] }
0x1141   :  { %1130 = vmin.xlane.f32.xlu0 %v1129_v14 }
0x1142   :  { %v1175_v18 = vadd.f32 %v1173_v11, %v1171_v17 }
0x1144   :  { %v1177_v19 = vsel %vm1169_vm13, %v1175_v18, 1e+30 }
0x1145   :  { %v1179_v20 = vsel %vm341_vm0, %v1177_v19, inf }
0x1146   :  { %v1180_v21 = vmin.f32 %v1178_v13, %v1179_v20 }
0x1148   :  { %1181 = vmin.xlane.f32.xlu0 %v1180_v21 }
0x114c   :  { %1235 = vmin.xlane.f32.xlu0 %v1233_v24 }
0x11ca   :  { %v1131_v27 = vpop.xlane.xlu0 %1130 }
0x11cb   :  { %vm1132_vm14 = vcmp.eq.f32.partialorder %v1129_v14, %v1131_v27  ;;  %v1137_v32 = vcvt.f32.s32 %v1131_v27  ;;  %v1306_v14 = vsub.f32 %v2492_v12, %v2975_v45 }
0x11cc   :  { %v1133_v28 = vsel %vm1132_vm14, %v1128_v26, inf }
0x11cd   :  { %1134 = vmin.xlane.f32.xlu1 %v1133_v28  ;;  %v1138_v35 = vshll.u32 %v1137_v32, 16 }
0x11d1   :  { %1237 = vmin.xlane.f32.xlu1 %v1234_v29  ;;  %v1182_v30 = vpop.xlane.xlu0 %1181 }
0x11d2   :  { %v1183_v31 = vrot.slane %v1182_v30, 4 }
0x11d4   :  { %v1184_v33 = vmin.f32 %v1182_v30, %v1183_v31 }
0x11d5   :  { %v1236_v56 = vpop.xlane.xlu0 %1235 }
0x11d6   :  { %v1185_v38 = vrot.slane %v1184_v33, 2  ;;  %v1243_v61 = vadd.f32 %v1236_v56, %v2940_v62 }
0x11d8   :  { %v1186_v41 = vmin.f32 %v1184_v33, %v1185_v38  ;;  %v1247_v5 = vadd.f32 %v1245_v60, %v1243_v61 }
0x11da   :  { %v1187_v46 = vrot.slane %v1186_v41, 1  ;;  %v1251_v9 = vsel %vm341_vm0, %v1247_v5, inf }
0x11dc   :  { %v1188_v49 = vmin.f32 %v1186_v41, %v1187_v46 }
0x1256   :  { %v1135_v34 = vpop.xlane.xlu1 %1134 }
0x1257   :  { %v1136_v36 = vcvt.f32.s32 %v1135_v34 }
0x1259   :  { %v1139_v37 = vadd.s32 %v1138_v35, %v1136_v36 }
0x125a   :  { %v1238_v1 = vpop.xlane.xlu1 %1237 }
0x125b   :  { %v1140_v39 = vrot.slane %v1139_v37, 4 }
0x125d   :  { %vm1141_vm15 = vcmp.lt.s32.totalorder %v1139_v37, %v1140_v39 }
0x125e   :  { %v1142_v40 = vsel %vm1141_vm15, %v1139_v37, %v1140_v39 }
0x125f   :  { %v1143_v42 = vrot.slane %v1142_v40, 2 }
0x1261   :  { %vm1144_vm1 = vcmp.lt.s32.totalorder %v1142_v40, %v1143_v42 }
0x1262   :  { %v1145_v44 = vsel %vm1144_vm1, %v1142_v40, %v1143_v42  ;;  %vm1315_vm1 = vcmp.lt.s32.totalorder %v2843_v6, 14 }
0x1263   :  { %v1146_v47 = vrot.slane %v1145_v44, 1 }
0x1265   :  { %vm1147_vm3 = vcmp.lt.s32.totalorder %v1145_v44, %v1146_v47 }
0x1266   :  { %v1148_v48 = vsel %vm1147_vm3, %v1145_v44, %v1146_v47  ;;  %v1318_v47 = vadd.f32 -13.0, %v2865_v22 }
0x1267   :  { %2609 = vpush %v1148_v48 }
0x1268   :  { %2611 = vpush %v1188_v49 }
0x1298   :  { %s2610_s12 = spop %2609 }
0x1299   :  { %1152 = sst [smem:[#allocation4 + $0xb]] %s2610_s12  ;;  %s2612_s13 = spop %2611 }
0x129a   :  { %v1190_v50 = vstv %s2612_s13 }
0x129b   :  { %vm1191_vm4 = vcmp.eq.f32.partialorder %v1174_v15, %v1190_v50  ;;  %vm1192_vm5 = vcmp.eq.f32.partialorder %v1177_v19, %v1190_v50  ;;  %1223 = vst.msk [vmem:[#allocation3 + $0xc] sm:$0x1] %vm419_vm8, %v1190_v50  ;;  %v1307_v19 = vsub.f32 %v2492_v12, %v2978_v51  ;;  %v1319_v50 = vadd.f32 -13.0, %v2954_v43 }
0x129c   :  { %v1193_v52 = vsel %vm1191_vm4, %v2834_v55, 16  ;;  %v1194_v53 = vsel %vm1192_vm5, %v2843_v6, 16 }
0x129d   :  { %v1195_v57 = vsel %vm341_vm0, %v1193_v52, 2147483647  ;;  %v1196_v58 = vsel %vm341_vm0, %v1194_v53, 2147483647 }
0x129e   :  { %vm1197_vm6 = vcmp.lt.s32.totalorder %v1195_v57, %v1196_v58 }
0x129f   :  { %v1198_v59 = vsel %vm1197_vm6, %v1195_v57, %v1196_v58 }
0x12a0   :  { %v1200_v63 = vshra.s32 %v1198_v59, 16  ;;  %v1199_v16 = vand.u32 65535, %v1198_v59 }
0x12a2   :  { %v1202_v2 = vcvt.s32.f32 %v1200_v63  ;;  %v1240_v3 = vld [vmem:[#allocation3 + $0x8] sm:$0xff]  ;;  %v1201_v15 = vcvt.s32.f32 %v1199_v16 }
0x12a3   :  { %v1244_v4 = vadd.f32 %v1240_v3, %v1238_v1  ;;  %v2493_v1 = vld [vmem:[#allocation2 + $0xf] ss:$0 sm:$0xff] }
0x12a4   :  { %1203 = vmin.xlane.f32.xlu1 %v1202_v2 }
0x12a5   :  { %v1248_v7 = vadd.f32 %v1246_v0, %v1244_v4 }
0x12a7   :  { %v1250_v8 = vsel %vm1242_vm7, %v1248_v7, 1e+30 }
0x12a8   :  { %v1252_v10 = vsel %vm341_vm0, %v1250_v8, inf }
0x12a9   :  { %v1253_v11 = vmin.f32 %v1251_v9, %v1252_v10 }
0x12ab   :  { %1254 = vmin.xlane.f32.xlu1 %v1253_v11 }
0x12af   :  { %1308 = vmin.xlane.f32.xlu1 %v1306_v14 }
0x132d   :  { %v1204_v17 = vpop.xlane.xlu1 %1203 }
0x132e   :  { %vm1205_vm9 = vcmp.eq.f32.partialorder %v1202_v2, %v1204_v17  ;;  %v1210_v21 = vcvt.f32.s32 %v1204_v17  ;;  %v1379_v2 = vsub.f32 %v2493_v1, %v2975_v45 }
0x132f   :  { %v1206_v18 = vsel %vm1205_vm9, %v1201_v15, inf }
0x1330   :  { %1207 = vmin.xlane.f32.xlu0 %v1206_v18  ;;  %v1211_v25 = vshll.u32 %v1210_v21, 16 }
0x1334   :  { %1310 = vmin.xlane.f32.xlu0 %v1307_v19  ;;  %v1255_v13 = vpop.xlane.xlu1 %1254 }
0x1335   :  { %v1256_v20 = vrot.slane %v1255_v13, 4 }
0x1337   :  { %v1257_v23 = vmin.f32 %v1255_v13, %v1256_v20 }
0x1338   :  { %v1309_v41 = vpop.xlane.xlu1 %1308 }
0x1339   :  { %v1258_v28 = vrot.slane %v1257_v23, 2  ;;  %v1316_v48 = vadd.f32 %v1309_v41, %v2940_v62 }
0x133b   :  { %v1259_v31 = vmin.f32 %v1257_v23, %v1258_v28  ;;  %v1320_v58 = vadd.f32 %v1318_v47, %v1316_v48 }
0x133d   :  { %v1260_v34 = vrot.slane %v1259_v31, 1  ;;  %v1324_v61 = vsel %vm341_vm0, %v1320_v58, inf }
0x133f   :  { %v1261_v37 = vmin.f32 %v1259_v31, %v1260_v34 }
0x13b9   :  { %v1208_v24 = vpop.xlane.xlu0 %1207 }
0x13ba   :  { %v1209_v27 = vcvt.f32.s32 %v1208_v24 }
0x13bc   :  { %v1212_v26 = vadd.s32 %v1211_v25, %v1209_v27 }
0x13bd   :  { %v1311_v52 = vpop.xlane.xlu0 %1310 }
0x13be   :  { %v1213_v29 = vrot.slane %v1212_v26, 4 }
0x13c0   :  { %vm1214_vm10 = vcmp.lt.s32.totalorder %v1212_v26, %v1213_v29 }
0x13c1   :  { %v1215_v30 = vsel %vm1214_vm10, %v1212_v26, %v1213_v29 }
0x13c2   :  { %v1216_v32 = vrot.slane %v1215_v30, 2 }
0x13c4   :  { %vm1217_vm11 = vcmp.lt.s32.totalorder %v1215_v30, %v1216_v32 }
0x13c5   :  { %v1218_v33 = vsel %vm1217_vm11, %v1215_v30, %v1216_v32  ;;  %vm1388_vm11 = vcmp.lt.s32.totalorder %v2843_v6, 15 }
0x13c6   :  { %v1219_v35 = vrot.slane %v1218_v33, 1 }
0x13c8   :  { %vm1220_vm12 = vcmp.lt.s32.totalorder %v1218_v33, %v1219_v35 }
0x13c9   :  { %v1221_v36 = vsel %vm1220_vm12, %v1218_v33, %v1219_v35  ;;  %v1391_v35 = vadd.f32 -14.0, %v2865_v22 }
0x13ca   :  { %2613 = vpush %v1221_v36 }
0x13cb   :  { %2615 = vpush %v1261_v37 }
0x13fb   :  { %s2614_s14 = spop %2613 }
0x13fc   :  { %1225 = sst [smem:[#allocation4 + $0xc]] %s2614_s14  ;;  %s2616_s15 = spop %2615 }
0x13fd   :  { %v1263_v38 = vstv %s2616_s15 }
0x13fe   :  { %vm1264_vm13 = vcmp.eq.f32.partialorder %v1247_v5, %v1263_v38  ;;  %vm1265_vm14 = vcmp.eq.f32.partialorder %v1250_v8, %v1263_v38  ;;  %1296 = vst.msk [vmem:[#allocation3 + $0xd] sm:$0x1] %vm419_vm8, %v1263_v38  ;;  %v1380_v8 = vsub.f32 %v2493_v1, %v2978_v51  ;;  %v1392_v38 = vadd.f32 -14.0, %v2954_v43 }
0x13ff   :  { %v1266_v39 = vsel %vm1264_vm13, %v2834_v55, 16  ;;  %v1267_v40 = vsel %vm1265_vm14, %v2843_v6, 16 }
0x1400   :  { %v1268_v42 = vsel %vm341_vm0, %v1266_v39, 2147483647  ;;  %v1269_v44 = vsel %vm341_vm0, %v1267_v40, 2147483647 }
0x1401   :  { %vm1270_vm15 = vcmp.lt.s32.totalorder %v1268_v42, %v1269_v44 }
0x1402   :  { %v1271_v46 = vsel %vm1270_vm15, %v1268_v42, %v1269_v44 }
0x1403   :  { %v1273_v49 = vshra.s32 %v1271_v46, 16  ;;  %v1272_v3 = vand.u32 65535, %v1271_v46 }
0x1405   :  { %v1275_v53 = vcvt.s32.f32 %v1273_v49  ;;  %v1313_v56 = vld [vmem:[#allocation3 + $0x8] sm:$0xff]  ;;  %v1274_v5 = vcvt.s32.f32 %v1272_v3 }
0x1406   :  { %v1317_v57 = vadd.f32 %v1313_v56, %v1311_v52 }
0x1407   :  { %1276 = vmin.xlane.f32.xlu0 %v1275_v53 }
0x1408   :  { %v1321_v59 = vadd.f32 %v1319_v50, %v1317_v57 }
0x140a   :  { %v1323_v60 = vsel %vm1315_vm1, %v1321_v59, 1e+30 }
0x140b   :  { %v1325_v63 = vsel %vm341_vm0, %v1323_v60, inf }
0x140c   :  { %v1326_v0 = vmin.f32 %v1324_v61, %v1325_v63 }
0x140e   :  { %1327 = vmin.xlane.f32.xlu0 %v1326_v0 }
0x1412   :  { %1381 = vmin.xlane.f32.xlu0 %v1379_v2 }
0x1490   :  { %v1277_v4 = vpop.xlane.xlu0 %1276 }
0x1491   :  { %vm1278_vm3 = vcmp.eq.f32.partialorder %v1275_v53, %v1277_v4  ;;  %v1283_v11 = vcvt.f32.s32 %v1277_v4 }
0x1492   :  { %v1279_v7 = vsel %vm1278_vm3, %v1274_v5, inf }
0x1493   :  { %1280 = vmin.xlane.f32.xlu1 %v1279_v7  ;;  %v1284_v16 = vshll.u32 %v1283_v11, 16 }
0x1497   :  { %1383 = vmin.xlane.f32.xlu1 %v1380_v8  ;;  %v1328_v9 = vpop.xlane.xlu0 %1327 }
0x1498   :  { %v1329_v10 = vrot.slane %v1328_v9, 4 }
0x149a   :  { %v1330_v12 = vmin.f32 %v1328_v9, %v1329_v10 }
0x149b   :  { %v1382_v31 = vpop.xlane.xlu0 %1381 }
0x149c   :  { %v1331_v18 = vrot.slane %v1330_v12, 2  ;;  %v1389_v36 = vadd.f32 %v1382_v31, %v2940_v62  ;;  %v2494_v62 = vld [vmem:[#allocation2 + $0x10] ss:$0 sm:$0xff] }
0x149d   :  { %v1453_v52 = vsub.f32 %v2494_v62, %v2978_v51  ;;  %v1452_v59 = vsub.f32 %v2494_v62, %v2975_v45 }
0x149e   :  { %v1332_v20 = vmin.f32 %v1330_v12, %v1331_v18  ;;  %v1393_v44 = vadd.f32 %v1391_v35, %v1389_v36 }
0x14a0   :  { %v1333_v24 = vrot.slane %v1332_v20, 1  ;;  %v1397_v48 = vsel %vm341_vm0, %v1393_v44, inf }
0x14a2   :  { %v1334_v26 = vmin.f32 %v1332_v20, %v1333_v24  ;;  %v1464_v20 = vadd.f32 -15.0, %v2865_v22 }
0x151c   :  { %v1281_v14 = vpop.xlane.xlu1 %1280 }
0x151d   :  { %v1282_v17 = vcvt.f32.s32 %v1281_v14 }
0x151f   :  { %v1285_v15 = vadd.s32 %v1284_v16, %v1282_v17 }
0x1520   :  { %v1384_v39 = vpop.xlane.xlu1 %1383 }
0x1521   :  { %v1286_v19 = vrot.slane %v1285_v15, 4 }
0x1523   :  { %vm1287_vm4 = vcmp.lt.s32.totalorder %v1285_v15, %v1286_v19 }
0x1524   :  { %v1288_v13 = vsel %vm1287_vm4, %v1285_v15, %v1286_v19 }
0x1525   :  { %v1289_v21 = vrot.slane %v1288_v13, 2 }
0x1527   :  { %vm1290_vm5 = vcmp.lt.s32.totalorder %v1288_v13, %v1289_v21 }
0x1528   :  { %v1291_v23 = vsel %vm1290_vm5, %v1288_v13, %v1289_v21  ;;  %v2704_v21 = vld [vmem:[#allocation3] sm:$0xff] }
0x1529   :  { %v1292_v25 = vrot.slane %v1291_v23, 1 }
0x152b   :  { %vm1293_vm6 = vcmp.lt.s32.totalorder %v1291_v23, %v1292_v25 }
0x152c   :  { %v1294_v27 = vsel %vm1293_vm6, %v1291_v23, %v1292_v25 }
0x152d   :  { %2617 = vpush %v1294_v27  ;;  %v1465_v27 = vadd.f32 -15.0, %v2954_v43 }
0x152e   :  { %2619 = vpush %v1334_v26 }
0x155e   :  { %s2618_s16 = spop %2617 }
0x155f   :  { %1298 = sst [smem:[#allocation4 + $0xd]] %s2618_s16  ;;  %s2620_s17 = spop %2619 }
0x1560   :  { %v1336_v28 = vstv %s2620_s17 }
0x1561   :  { %vm1337_vm7 = vcmp.eq.f32.partialorder %v1320_v58, %v1336_v28  ;;  %vm1338_vm9 = vcmp.eq.f32.partialorder %v1323_v60, %v1336_v28  ;;  %1369 = vst.msk [vmem:[#allocation3 + $0xe] sm:$0x1] %vm419_vm8, %v1336_v28 }
0x1562   :  { %v1339_v29 = vsel %vm1337_vm7, %v2834_v55, 16  ;;  %v1340_v30 = vsel %vm1338_vm9, %v2843_v6, 16 }
0x1563   :  { %v1341_v32 = vsel %vm341_vm0, %v1339_v29, 2147483647  ;;  %v1342_v33 = vsel %vm341_vm0, %v1340_v30, 2147483647 }
0x1564   :  { %vm1343_vm10 = vcmp.lt.s32.totalorder %v1341_v32, %v1342_v33 }
0x1565   :  { %v1344_v34 = vsel %vm1343_vm10, %v1341_v32, %v1342_v33 }
0x1566   :  { %v1346_v37 = vshra.s32 %v1344_v34, 16  ;;  %v1345_v53 = vand.u32 65535, %v1344_v34 }
0x1568   :  { %v1348_v40 = vcvt.s32.f32 %v1346_v37  ;;  %v1386_v41 = vld [vmem:[#allocation3 + $0x8] sm:$0xff]  ;;  %v1347_v57 = vcvt.s32.f32 %v1345_v53 }
0x1569   :  { %v1390_v42 = vadd.f32 %v1386_v41, %v1384_v39 }
0x156a   :  { %1349 = vmin.xlane.f32.xlu1 %v1348_v40 }
0x156b   :  { %v1394_v46 = vadd.f32 %v1392_v38, %v1390_v42 }
0x156d   :  { %v1396_v47 = vsel %vm1388_vm11, %v1394_v46, 1e+30 }
0x156e   :  { %v1398_v49 = vsel %vm341_vm0, %v1396_v47, inf }
0x156f   :  { %v1399_v50 = vmin.f32 %v1397_v48, %v1398_v49 }
0x1571   :  { %1400 = vmin.xlane.f32.xlu1 %v1399_v50 }
0x1575   :  { %1456 = vmin.xlane.f32.xlu1 %v1453_v52 }
0x15f3   :  { %v1350_v56 = vpop.xlane.xlu1 %1349 }
0x15f4   :  { %vm1351_vm12 = vcmp.eq.f32.partialorder %v1348_v40, %v1350_v56  ;;  %v1356_v63 = vcvt.f32.s32 %v1350_v56 }
0x15f5   :  { %v1352_v58 = vsel %vm1351_vm12, %v1347_v57, inf }
0x15f6   :  { %1353 = vmin.xlane.f32.xlu0 %v1352_v58  ;;  %v1357_v2 = vshll.u32 %v1356_v63, 16 }
0x15fa   :  { %1454 = vmin.xlane.f32.xlu0 %v1452_v59  ;;  %v1401_v60 = vpop.xlane.xlu1 %1400 }
0x15fb   :  { %v1402_v61 = vrot.slane %v1401_v60, 4 }
0x15fd   :  { %v1403_v0 = vmin.f32 %v1401_v60, %v1402_v61 }
0x15fe   :  { %v1457_v26 = vpop.xlane.xlu1 %1456 }
0x15ff   :  { %v1404_v5 = vrot.slane %v1403_v0, 2 }
0x1601   :  { %v1405_v8 = vmin.f32 %v1403_v0, %v1404_v5 }
0x1603   :  { %v1406_v11 = vrot.slane %v1405_v8, 1 }
0x1605   :  { %v1407_v14 = vmin.f32 %v1405_v8, %v1406_v11 }
0x167f   :  { %v1354_v1 = vpop.xlane.xlu0 %1353 }
0x1680   :  { %v1355_v3 = vcvt.f32.s32 %v1354_v1 }
0x1682   :  { %v1358_v4 = vadd.s32 %v1357_v2, %v1355_v3 }
0x1683   :  { %v1455_v17 = vpop.xlane.xlu0 %1454 }
0x1684   :  { %v1359_v51 = vrot.slane %v1358_v4, 4  ;;  %v1462_v23 = vadd.f32 %v2704_v21, %v1455_v17 }
0x1686   :  { %vm1360_vm13 = vcmp.lt.s32.totalorder %v1358_v4, %v1359_v51  ;;  %v1466_v30 = vadd.f32 %v1464_v20, %v1462_v23 }
0x1687   :  { %v1361_v7 = vsel %vm1360_vm13, %v1358_v4, %v1359_v51 }
0x1688   :  { %v1362_v9 = vrot.slane %v1361_v7, 2  ;;  %v1470_v33 = vsel %vm341_vm0, %v1466_v30, inf }
0x168a   :  { %vm1363_vm14 = vcmp.lt.s32.totalorder %v1361_v7, %v1362_v9 }
0x168b   :  { %v1364_v10 = vsel %vm1363_vm14, %v1361_v7, %v1362_v9 }
0x168c   :  { %v1365_v12 = vrot.slane %v1364_v10, 1 }
0x168e   :  { %vm1366_vm15 = vcmp.lt.s32.totalorder %v1364_v10, %v1365_v12 }
0x168f   :  { %v1367_v45 = vsel %vm1366_vm15, %v1364_v10, %v1365_v12  ;;  %vm3438_vm15 = vcmask 1040384  }
0x1690   :  { %2621 = vpush %v1367_v45 }
0x1691   :  { %2623 = vpush %v1407_v14 }
0x16c1   :  { %s2622_s18 = spop %2621 }
0x16c2   :  { %1371 = sst [smem:[#allocation4 + $0xe]] %s2622_s18  ;;  %s2624_s19 = spop %2623 }
0x16c3   :  { %v1409_v16 = vstv %s2624_s19 }
0x16c4   :  { %vm1410_vm1 = vcmp.eq.f32.partialorder %v1393_v44, %v1409_v16  ;;  %vm1411_vm3 = vcmp.eq.f32.partialorder %v1396_v47, %v1409_v16  ;;  %1442 = vst.msk [vmem:[#allocation3 + $0xf] sm:$0x1] %vm419_vm8, %v1409_v16 }
0x16c5   :  { %v1412_v15 = vsel %vm1410_vm1, %v2834_v55, 16  ;;  %v1413_v18 = vsel %vm1411_vm3, %v2843_v6, 16 }
0x16c6   :  { %v1414_v19 = vsel %vm341_vm0, %v1412_v15, 2147483647  ;;  %v1415_v13 = vsel %vm341_vm0, %v1413_v18, 2147483647  ;;  %v1519_v18 = vld [vmem:[#allocation2 + $0x10] sm:$0x1] }
0x16c7   :  { %vm1416_vm4 = vcmp.lt.s32.totalorder %v1414_v19, %v1415_v13 }
0x16c8   :  { %v1417_v24 = vsel %vm1416_vm4, %v1414_v19, %v1415_v13 }
0x16c9   :  { %v1419_v25 = vshra.s32 %v1417_v24, 16  ;;  %v1418_v22 = vand.u32 65535, %v1417_v24 }
0x16cb   :  { %v1421_v28 = vcvt.s32.f32 %v1419_v25  ;;  %v1459_v29 = vld [vmem:[#allocation3 + $0x8] sm:$0xff]  ;;  %v1420_v37 = vcvt.s32.f32 %v1418_v22 }
0x16cc   :  { %v1463_v31 = vadd.f32 %v1459_v29, %v1457_v26 }
0x16cd   :  { %1422 = vmin.xlane.f32.xlu0 %v1421_v28 }
0x16ce   :  { %v1467_v32 = vadd.f32 %v1465_v27, %v1463_v31 }
0x16d0   :  { %v1471_v34 = vsel %vm341_vm0, %v1467_v32, inf }
0x16d1   :  { %v1472_v35 = vmin.f32 %v1470_v33, %v1471_v34 }
0x16d3   :  { %1473 = vmin.xlane.f32.xlu0 %v1472_v35 }
0x1756   :  { %v1423_v36 = vpop.xlane.xlu0 %1422 }
0x1757   :  { %vm1424_vm8 = vcmp.eq.f32.partialorder %v1421_v28, %v1423_v36  ;;  %v1429_v40 = vcvt.f32.s32 %v1423_v36 }
0x1758   :  { %v1425_v38 = vsel %vm1424_vm8, %v1420_v37, inf }
0x1759   :  { %1426 = vmin.xlane.f32.xlu1 %v1425_v38  ;;  %v1430_v44 = vshll.u32 %v1429_v40, 16 }
0x175c   :  { %v1474_v43 = vpop.xlane.xlu0 %1473 }
0x175d   :  { %v1475_v39 = vrot.slane %v1474_v43, 4 }
0x175f   :  { %v1476_v41 = vmin.f32 %v1474_v43, %v1475_v39 }
0x1761   :  { %v1477_v48 = vrot.slane %v1476_v41, 2 }
0x1763   :  { %v1478_v62 = vmin.f32 %v1476_v41, %v1477_v48 }
0x1765   :  { %v1479_v56 = vrot.slane %v1478_v62, 1 }
0x1767   :  { %v1480_v59 = vmin.f32 %v1478_v62, %v1479_v56 }
0x17e2   :  { %v1427_v42 = vpop.xlane.xlu1 %1426 }
0x17e3   :  { %v1428_v46 = vcvt.f32.s32 %v1427_v42 }
0x17e5   :  { %v1431_v47 = vadd.s32 %v1430_v44, %v1428_v46 }
0x17e7   :  { %v1432_v49 = vrot.slane %v1431_v47, 4 }
0x17e9   :  { %vm1433_vm5 = vcmp.lt.s32.totalorder %v1431_v47, %v1432_v49 }
0x17ea   :  { %v1434_v50 = vsel %vm1433_vm5, %v1431_v47, %v1432_v49 }
0x17eb   :  { %v1435_v52 = vrot.slane %v1434_v50, 2 }
0x17ed   :  { %vm1436_vm6 = vcmp.lt.s32.totalorder %v1434_v50, %v1435_v52 }
0x17ee   :  { %v1437_v53 = vsel %vm1436_vm6, %v1434_v50, %v1435_v52 }
0x17ef   :  { %v1438_v57 = vrot.slane %v1437_v53, 1 }
0x17f1   :  { %vm1439_vm7 = vcmp.lt.s32.totalorder %v1437_v53, %v1438_v57 }
0x17f2   :  { %v1440_v58 = vsel %vm1439_vm7, %v1437_v53, %v1438_v57  ;;  %v3458_v53 = vmov 0 }
0x17f3   :  { %2625 = vpush %v1440_v58 }
0x17f4   :  { %2627 = vpush %v1480_v59  ;;  %v3460_v59 = vmov 0 }
0x1824   :  { %s2626_s20 = spop %2625 }
0x1825   :  { %1444 = sst [smem:[#allocation4 + $0xf]] %s2626_s20  ;;  %s2628_s0 = spop %2627 }
0x1826   :  { %v1482_v60 = vstv %s2628_s0 }
0x1827   :  { %vm1483_vm9 = vcmp.eq.f32.partialorder %v1466_v30, %v1482_v60  ;;  %vm1484_vm10 = vcmp.eq.f32.partialorder %v1467_v32, %v1482_v60 }
0x1828   :  { %v1485_v61 = vsel %vm1483_vm9, %v2834_v55, 16  ;;  %v1486_v63 = vsel %vm1484_vm10, %v2843_v6, 16 }
0x1829   :  { %v1487_v0 = vsel %vm341_vm0, %v1485_v61, 2147483647  ;;  %v1488_v1 = vsel %vm341_vm0, %v1486_v63, 2147483647 }
0x182a   :  { %vm1489_vm11 = vcmp.lt.s32.totalorder %v1487_v0, %v1488_v1 }
0x182b   :  { %v1490_v2 = vsel %vm1489_vm11, %v1487_v0, %v1488_v1  ;;  %v3462_v0 = vmov 0 }
0x182c   :  { %v1492_v3 = vshra.s32 %v1490_v2, 16  ;;  %v1491_v5 = vand.u32 65535, %v1490_v2 }
0x182e   :  { %v1494_v4 = vcvt.s32.f32 %v1492_v3  ;;  %v1493_v7 = vcvt.s32.f32 %v1491_v5 }
0x1830   :  { %1495 = vmin.xlane.f32.xlu1 %v1494_v4 }
0x18b9   :  { %v1496_v51 = vpop.xlane.xlu1 %1495 }
0x18ba   :  { %vm1497_vm12 = vcmp.eq.f32.partialorder %v1494_v4, %v1496_v51  ;;  %v1502_v55 = vcvt.f32.s32 %v1496_v51  ;;  %v3464_v4 = vmov 0 }
0x18bb   :  { %v1498_v8 = vsel %vm1497_vm12, %v1493_v7, inf }
0x18bc   :  { %1499 = vmin.xlane.f32.xlu0 %v1498_v8  ;;  %v1503_v6 = vshll.u32 %v1502_v55, 16  ;;  %v3466_v8 = vmov 0 }
0x1945   :  { %v1500_v9 = vpop.xlane.xlu0 %1499 }
0x1946   :  { %v1501_v10 = vcvt.f32.s32 %v1500_v9 }
0x1948   :  { %v1504_v11 = vadd.s32 %v1503_v6, %v1501_v10  ;;  %v3468_v10 = vmov 0 }
0x194a   :  { %v1505_v12 = vrot.slane %v1504_v11, 4 }
0x194c   :  { %vm1506_vm0 = vcmp.lt.s32.totalorder %v1504_v11, %v1505_v12 }
0x194d   :  { %v1507_v45 = vsel %vm1506_vm0, %v1504_v11, %v1505_v12 }
0x194e   :  { %v1508_v14 = vrot.slane %v1507_v45, 2 }
0x1950   :  { %vm1509_vm13 = vcmp.lt.s32.totalorder %v1507_v45, %v1508_v14 }
0x1951   :  { %v1510_v16 = vsel %vm1509_vm13, %v1507_v45, %v1508_v14  ;;  %v3472_v14 = vmov 0 }
0x1952   :  { %v1511_v17 = vrot.slane %v1510_v16, 1 }
0x1954   :  { %vm1512_vm14 = vcmp.lt.s32.totalorder %v1510_v16, %v1511_v17 }
0x1955   :  { %v1513_v15 = vsel %vm1512_vm14, %v1510_v16, %v1511_v17 }
0x1956   :  { %2629 = vpush %v1513_v15 }
0x1987   :  { %s3059_s21 = spop %2629 }
0x1988   :  { %1517 = sst [smem:[#allocation4 + $0x10]] %s3059_s21  ;;  %s1520_s22 = scalar_lea.vmem [#allocation2], %s3059_s21 }
0x1989   :  { %v3063_v19 = vld [vmem:[%s1520_s22] sm:$0x1]  ;;  %s3066_s23 = sld [smem:[#allocation4 + %s3059_s21]]  ;;  %p1609_p10 = scmp.gt.s32.totalorder %s3059_s21, 0 }
0x198a   :  { %v3070_v13 = vsub.f32 %v1519_v18, %v3063_v19  ;;  %v3474_v18 = vmov 0 }
0x198b   :  { %s1612_s24 = scalar_select %p1609_p10, 1, 0 }
0x198c   :  { %v1524_v20 = vsel %vm3438_vm15, %v3070_v13, inf }
0x198d   :  { %1525 = vmin.xlane.f32.xlu1 %v1524_v20  ;;  %v1613_v21 = vstv %s1612_s24 }
0x198e   :  { %vm3084_vm3 = vcmp.eq.s32.totalorder %v1613_v21, 1 }
0x198f   :  { %v1610_v23 = vstv %s3066_s23  ;;  %s3077_s25 = scalar_select %p1609_p10, %s3066_s23, %s3059_s21 }
0x1990   :  { %vm3080_vm1 = vcmp.ge.s32.totalorder %v2832_v54, %v1610_v23 }
0x1991   :  { %s3093_s26 = sld [smem:[#allocation4 + %s3077_s25]]  ;;  %p1665_p11 = scmp.gt.s32.totalorder %s3077_s25, 0  ;;  %v1672_v26 = vstv %s3077_s25 }
0x1992   :  { %vm1673_vm7 = vcmp.lt.s32.totalorder %v2832_v54, %v1672_v26 }
0x1993   :  { %s1668_s27 = scalar_select %p1665_p11, 1, 0 }
0x1995   :  { %v1669_v27 = vstv %s1668_s27 }
0x1996   :  { %vm1670_vm5 = vcmp.eq.s32.totalorder %v1669_v27, 1 }
0x1997   :  { %v1666_v28 = vstv %s3093_s26  ;;  %s3100_s28 = scalar_select %p1665_p11, %s3093_s26, %s3077_s25 }
0x1998   :  { %vm1667_vm8 = vcmp.ge.s32.totalorder %v2832_v54, %v1666_v28 }
0x1999   :  { %vm1671_vm6 = vmand %vm1670_vm5, %vm1667_vm8  ;;  %s3105_s29 = sld [smem:[#allocation4 + %s3100_s28]]  ;;  %p1722_p12 = scmp.gt.s32.totalorder %s3100_s28, 0  ;;  %v1729_v31 = vstv %s3100_s28 }
0x199a   :  { %vm3107_vm9 = vmand %vm1671_vm6, %vm1673_vm7  ;;  %vm1730_vm0 = vcmp.lt.s32.totalorder %v2832_v54, %v1729_v31 }
0x199b   :  { %s1725_s30 = scalar_select %p1722_p12, 1, 0 }
0x199d   :  { %v1726_v30 = vstv %s1725_s30 }
0x199e   :  { %vm1727_vm11 = vcmp.eq.s32.totalorder %v1726_v30, 1 }
0x199f   :  { %v1723_v32 = vstv %s3105_s29  ;;  %s3116_s3 = scalar_select %p1722_p12, %s3105_s29, %s3100_s28 }
0x19a0   :  { %vm1724_vm10 = vcmp.ge.s32.totalorder %v2832_v54, %v1723_v32 }
0x19a1   :  { %vm1728_vm12 = vmand %vm1727_vm11, %vm1724_vm10  ;;  %s3121_s4 = sld [smem:[#allocation4 + %s3116_s3]]  ;;  %p1779_p13 = scmp.gt.s32.totalorder %s3116_s3, 0  ;;  %v1786_v35 = vstv %s3116_s3 }
0x19a2   :  { %vm3123_vm13 = vmand %vm1728_vm12, %vm1730_vm0  ;;  %vm1787_vm6 = vcmp.lt.s32.totalorder %v2832_v54, %v1786_v35 }
0x19a3   :  { %s1782_s5 = scalar_select %p1779_p13, 1, 0 }
0x19a5   :  { %v1783_v34 = vstv %s1782_s5 }
0x19a6   :  { %vm1784_vm8 = vcmp.eq.s32.totalorder %v1783_v34, 1 }
0x19a7   :  { %v1780_v22 = vstv %s3121_s4  ;;  %s3132_s6 = scalar_select %p1779_p13, %s3121_s4, %s3116_s3 }
0x19a8   :  { %vm1781_vm14 = vcmp.ge.s32.totalorder %v2832_v54, %v1780_v22 }
0x19a9   :  { %vm1785_vm5 = vmand %vm1784_vm8, %vm1781_vm14  ;;  %s3137_s7 = sld [smem:[#allocation4 + %s3132_s6]]  ;;  %p1836_p0 = scmp.gt.s32.totalorder %s3132_s6, 0  ;;  %v1843_v38 = vstv %s3132_s6 }
0x19aa   :  { %vm3139_vm7 = vmand %vm1785_vm5, %vm1787_vm6  ;;  %vm1844_vm0 = vcmp.lt.s32.totalorder %v2832_v54, %v1843_v38 }
0x19ab   :  { %s1839_s8 = scalar_select %p1836_p0, 1, 0 }
0x19ad   :  { %v1840_v37 = vstv %s1839_s8 }
0x19ae   :  { %vm1841_vm11 = vcmp.eq.s32.totalorder %v1840_v37, 1 }
0x19af   :  { %v1837_v43 = vstv %s3137_s7  ;;  %s3148_s9 = scalar_select %p1836_p0, %s3137_s7, %s3132_s6 }
0x19b0   :  { %vm1838_vm10 = vcmp.ge.s32.totalorder %v2832_v54, %v1837_v43 }
0x19b1   :  { %vm1842_vm12 = vmand %vm1841_vm11, %vm1838_vm10  ;;  %s3153_s10 = sld [smem:[#allocation4 + %s3148_s9]]  ;;  %p1893_p1 = scmp.gt.s32.totalorder %s3148_s9, 0  ;;  %v1900_v41 = vstv %s3148_s9 }
0x19b2   :  { %vm3155_vm14 = vmand %vm1842_vm12, %vm1844_vm0  ;;  %vm1901_vm10 = vcmp.lt.s32.totalorder %v2832_v54, %v1900_v41 }
0x19b3   :  { %s1896_s11 = scalar_select %p1893_p1, 1, 0 }
0x19b5   :  { %v1897_v40 = vstv %s1896_s11 }
0x19b6   :  { %vm1898_vm5 = vcmp.eq.s32.totalorder %v1897_v40, 1 }
0x19b7   :  { %v1894_v42 = vstv %s3153_s10  ;;  %s3164_s12 = scalar_select %p1893_p1, %s3153_s10, %s3148_s9 }
0x19b8   :  { %vm1895_vm8 = vcmp.ge.s32.totalorder %v2832_v54, %v1894_v42 }
0x19b9   :  { %vm1899_vm6 = vmand %vm1898_vm5, %vm1895_vm8  ;;  %s3169_s13 = sld [smem:[#allocation4 + %s3164_s12]]  ;;  %p1950_p2 = scmp.gt.s32.totalorder %s3164_s12, 0  ;;  %v1957_v47 = vstv %s3164_s12 }
0x19ba   :  { %vm3171_vm11 = vmand %vm1899_vm6, %vm1901_vm10  ;;  %vm1958_vm5 = vcmp.lt.s32.totalorder %v2832_v54, %v1957_v47 }
0x19bb   :  { %s1953_s14 = scalar_select %p1950_p2, 1, 0 }
0x19bd   :  { %v1954_v46 = vstv %s1953_s14 }
0x19be   :  { %vm1955_vm0 = vcmp.eq.s32.totalorder %v1954_v46, 1 }
0x19bf   :  { %v1951_v48 = vstv %s3169_s13  ;;  %s3180_s15 = scalar_select %p1950_p2, %s3169_s13, %s3164_s12 }
0x19c0   :  { %vm1952_vm12 = vcmp.ge.s32.totalorder %v2832_v54, %v1951_v48 }
0x19c1   :  { %vm1956_vm8 = vmand %vm1955_vm0, %vm1952_vm12  ;;  %s3185_s16 = sld [smem:[#allocation4 + %s3180_s15]]  ;;  %p2007_p3 = scmp.gt.s32.totalorder %s3180_s15, 0  ;;  %v2014_v62 = vstv %s3180_s15 }
0x19c2   :  { %vm3187_vm6 = vmand %vm1956_vm8, %vm1958_vm5  ;;  %vm2015_vm8 = vcmp.lt.s32.totalorder %v2832_v54, %v2014_v62 }
0x19c3   :  { %s2010_s17 = scalar_select %p2007_p3, 1, 0 }
0x19c5   :  { %v2011_v50 = vstv %s2010_s17 }
0x19c6   :  { %vm2012_vm12 = vcmp.eq.s32.totalorder %v2011_v50, 1 }
0x19c7   :  { %v2008_v52 = vstv %s3185_s16  ;;  %s3196_s18 = scalar_select %p2007_p3, %s3185_s16, %s3180_s15 }
0x19c8   :  { %vm2009_vm10 = vcmp.ge.s32.totalorder %v2832_v54, %v2008_v52 }
0x19c9   :  { %vm2013_vm0 = vmand %vm2012_vm12, %vm2009_vm10  ;;  %s3201_s19 = sld [smem:[#allocation4 + %s3196_s18]]  ;;  %p2064_p4 = scmp.gt.s32.totalorder %s3196_s18, 0  ;;  %v2071_v57 = vstv %s3196_s18 }
0x19ca   :  { %vm3203_vm5 = vmand %vm2013_vm0, %vm2015_vm8  ;;  %vm2072_vm0 = vcmp.lt.s32.totalorder %v2832_v54, %v2071_v57 }
0x19cb   :  { %v3459_v53 = vsel %vm3203_vm5, 4294967295, %v3458_v53  ;;  %s2067_s20 = scalar_select %p2064_p4, 1, 0 }
0x19cd   :  { %v2068_v56 = vstv %s2067_s20 }
0x19ce   :  { %vm2069_vm12 = vcmp.eq.s32.totalorder %v2068_v56, 1 }
0x19cf   :  { %v2065_v58 = vstv %s3201_s19  ;;  %s3212_s0 = scalar_select %p2064_p4, %s3201_s19, %s3196_s18 }
0x19d0   :  { %vm2066_vm10 = vcmp.ge.s32.totalorder %v2832_v54, %v2065_v58 }
0x19d1   :  { %vm2070_vm4 = vmand %vm2069_vm12, %vm2066_vm10  ;;  %s3217_s1 = sld [smem:[#allocation4 + %s3212_s0]]  ;;  %p2121_p5 = scmp.gt.s32.totalorder %s3212_s0, 0  ;;  %v2128_v61 = vstv %s3212_s0 }
0x19d2   :  { %vm3219_vm8 = vmand %vm2070_vm4, %vm2072_vm0  ;;  %vm2129_vm4 = vcmp.lt.s32.totalorder %v2832_v54, %v2128_v61 }
0x19d3   :  { %v3461_v59 = vsel %vm3219_vm8, 4294967295, %v3460_v59  ;;  %s2124_s22 = scalar_select %p2121_p5, 1, 0 }
0x19d5   :  { %v2125_v60 = vstv %s2124_s22 }
0x19d6   :  { %vm2126_vm12 = vcmp.eq.s32.totalorder %v2125_v60, 1 }
0x19d7   :  { %v2122_v63 = vstv %s3217_s1  ;;  %s3228_s24 = scalar_select %p2121_p5, %s3217_s1, %s3212_s0 }
0x19d8   :  { %vm2123_vm10 = vcmp.ge.s32.totalorder %v2832_v54, %v2122_v63 }
0x19d9   :  { %vm2127_vm2 = vmand %vm2126_vm12, %vm2123_vm10  ;;  %s3233_s27 = sld [smem:[#allocation4 + %s3228_s24]]  ;;  %p2178_p6 = scmp.gt.s32.totalorder %s3228_s24, 0  ;;  %v2185_v2 = vstv %s3228_s24 }
0x19da   :  { %vm3235_vm0 = vmand %vm2127_vm2, %vm2129_vm4  ;;  %vm2186_vm2 = vcmp.lt.s32.totalorder %v2832_v54, %v2185_v2 }
0x19db   :  { %v3463_v0 = vsel %vm3235_vm0, 4294967295, %v3462_v0  ;;  %s2181_s30 = scalar_select %p2178_p6, 1, 0 }
0x19dd   :  { %v2182_v1 = vstv %s2181_s30 }
0x19de   :  { %vm2183_vm12 = vcmp.eq.s32.totalorder %v2182_v1, 1 }
0x19df   :  { %v2179_v3 = vstv %s3233_s27  ;;  %s3244_s5 = scalar_select %p2178_p6, %s3233_s27, %s3228_s24 }
0x19e0   :  { %vm2180_vm10 = vcmp.ge.s32.totalorder %v2832_v54, %v2179_v3 }
0x19e1   :  { %vm2184_vm15 = vmand %vm2183_vm12, %vm2180_vm10  ;;  %s3249_s8 = sld [smem:[#allocation4 + %s3244_s5]]  ;;  %p2235_p7 = scmp.gt.s32.totalorder %s3244_s5, 0  ;;  %v2242_v51 = vstv %s3244_s5 }
0x19e2   :  { %vm3251_vm4 = vmand %vm2184_vm15, %vm2186_vm2  ;;  %vm2243_vm15 = vcmp.lt.s32.totalorder %v2832_v54, %v2242_v51 }
0x19e3   :  { %v3465_v4 = vsel %vm3251_vm4, 4294967295, %v3464_v4  ;;  %s2238_s11 = scalar_select %p2235_p7, 1, 0 }
0x19e5   :  { %v2239_v5 = vstv %s2238_s11 }
0x19e6   :  { %vm2240_vm12 = vcmp.eq.s32.totalorder %v2239_v5, 1 }
0x19e7   :  { %v2236_v7 = vstv %s3249_s8  ;;  %s3260_s14 = scalar_select %p2235_p7, %s3249_s8, %s3244_s5 }
0x19e8   :  { %vm2237_vm10 = vcmp.ge.s32.totalorder %v2832_v54, %v2236_v7 }
0x19e9   :  { %vm2241_vm0 = vmand %vm2240_vm12, %vm2237_vm10  ;;  %s3265_s17 = sld [smem:[#allocation4 + %s3260_s14]]  ;;  %p2292_p8 = scmp.gt.s32.totalorder %s3260_s14, 0  ;;  %v2299_v9 = vstv %s3260_s14 }
0x19ea   :  { %vm3267_vm2 = vmand %vm2241_vm0, %vm2243_vm15  ;;  %vm2300_vm0 = vcmp.lt.s32.totalorder %v2832_v54, %v2299_v9 }
0x19eb   :  { %v3467_v8 = vsel %vm3267_vm2, 4294967295, %v3466_v8  ;;  %s2295_s20 = scalar_select %p2292_p8, 1, 0 }
0x19ed   :  { %v2296_v55 = vstv %s2295_s20 }
0x19ee   :  { %vm2297_vm12 = vcmp.eq.s32.totalorder %v2296_v55, 1 }
0x19ef   :  { %v2293_v6 = vstv %s3265_s17  ;;  %s3276_s22 = scalar_select %p2292_p8, %s3265_s17, %s3260_s14 }
0x19f0   :  { %vm2294_vm10 = vcmp.ge.s32.totalorder %v2832_v54, %v2293_v6 }
0x19f1   :  { %vm2298_vm4 = vmand %vm2297_vm12, %vm2294_vm10  ;;  %s3281_s30 = sld [smem:[#allocation4 + %s3276_s22]]  ;;  %p2349_p9 = scmp.gt.s32.totalorder %s3276_s22, 0  ;;  %v2356_v12 = vstv %s3276_s22 }
0x19f2   :  { %vm3283_vm15 = vmand %vm2298_vm4, %vm2300_vm0  ;;  %vm2357_vm8 = vcmp.lt.s32.totalorder %v2832_v54, %v2356_v12 }
0x19f3   :  { %v3469_v10 = vsel %vm3283_vm15, 4294967295, %v3468_v10  ;;  %s2352_s11 = scalar_select %p2349_p9, 1, 0 }
0x19f5   :  { %v2353_v11 = vstv %s2352_s11 }
0x19f6   :  { %vm2354_vm12 = vcmp.eq.s32.totalorder %v2353_v11, 1 }
0x19f7   :  { %v2350_v45 = vstv %s3281_s30  ;;  %s3292_s20 = scalar_select %p2349_p9, %s3281_s30, %s3276_s22 }
0x19f8   :  { %vm2351_vm10 = vcmp.ge.s32.totalorder %v2832_v54, %v2350_v45 }
0x19f9   :  { %3470 = sst [smem:[#allocation14_spill]] %s3292_s20  ;;  %vm2355_vm2 = vmand %vm2354_vm12, %vm2351_vm10  ;;  %p2406_p10 = scmp.gt.s32.totalorder %s3292_s20, 0  ;;  %v2413_v17 = vstv %s3292_s20 }
0x19fa   :  { %s3297_s2 = sld [smem:[#allocation4 + %s3292_s20]]  ;;  %vm3299_vm4 = vmand %vm2355_vm2, %vm2357_vm8  ;;  %vm2414_vm10 = vcmp.lt.s32.totalorder %v2832_v54, %v2413_v17  ;;  %vm3476_vm2 = vcmask 1040384   ;;  %s1568_s20 = scalar_lea.vmem [#allocation2], %s3066_s23 }
0x19fb   :  { %v3473_v14 = vsel %vm3299_vm4, 4294967295, %v3472_v14  ;;  %s2409_s11 = scalar_select %p2406_p10, 1, 0  ;;  %v1569_v22 = vld [vmem:[%s1568_s20] sm:$0x1]  ;;  %vm3481_vm4 = vcmask 1040384  }
0x19fc   :  { %v1570_v38 = vsub.f32 %v3063_v19, %v1569_v22 }
0x19fd   :  { %v2410_v16 = vstv %s2409_s11 }
0x19fe   :  { %vm2411_vm15 = vcmp.eq.s32.totalorder %v2410_v16, 1 }
0x1a00   :  { %3471 = sst [smem:[#allocation15_spill]] %s3297_s2  ;;  %v2407_v15 = vstv %s3297_s2  ;;  %s1622_s2 = scalar_lea.vmem [#allocation2], %s3077_s25 }
0x1a01   :  { %vm2408_vm0 = vcmp.ge.s32.totalorder %v2832_v54, %v2407_v15  ;;  %v1623_v45 = vld [vmem:[%s1622_s2] sm:$0x1]  ;;  %s1681_s25 = scalar_lea.vmem [#allocation2], %s3105_s29 }
0x1a02   :  { %vm2412_vm5 = vmand %vm2411_vm15, %vm2408_vm0 }
0x1a03   :  { %vm3308_vm12 = vmand %vm2412_vm5, %vm2414_vm10 }
0x1a04   :  { %v3475_v18 = vsel %vm3308_vm12, 4294967295, %v3474_v18  ;;  %vm3477_vm5 = vmmov %vm3476_vm2 }
0x1a05   :  { %v1571_v43 = vsel %vm3477_vm5, %v1570_v38, inf }
0x1a16   :  { %v1526_v20 = vpop.xlane.xlu1 %1525 }
0x1a17   :  { %v1527_v21 = vrot.slane %v1526_v20, 4 }
0x1a19   :  { %v1528_v23 = vmin.f32 %v1526_v20, %v1527_v21 }
0x1a1b   :  { %v1529_v27 = vrot.slane %v1528_v23, 2 }
0x1a1d   :  { %v1530_v26 = vmin.f32 %v1528_v23, %v1529_v27 }
0x1a1f   :  { %v1531_v28 = vrot.slane %v1530_v26, 1 }
0x1a21   :  { %v1532_v30 = vmin.f32 %v1530_v26, %v1531_v28 }
0x1a23   :  { %2631 = vpush %v1532_v30 }
0x1a54   :  { %s2632_s11 = spop %2631 }
0x1a55   :  { %v1534_v31 = vstv %s2632_s11  ;;  %s1624_s11 = scalar_lea.vmem [#allocation2], %s3093_s26  ;;  %s1679_s26 = scalar_lea.vmem [#allocation2], %s3100_s28 }
0x1a56   :  { %vm1535_vm8 = vcmp.eq.f32.partialorder %v3070_v13, %v1534_v31  ;;  %v1625_v11 = vld [vmem:[%s1624_s11] sm:$0x1]  ;;  %s1795_s11 = scalar_lea.vmem [#allocation2], %s3137_s7 }
0x1a57   :  { %v1536_v32 = vsel %vm1535_vm8, %v2832_v54, 16  ;;  %v1626_v16 = vsub.f32 %v1623_v45, %v1625_v11 }
0x1a58   :  { %v1537_v34 = vsel %vm3476_vm2, %v1536_v32, 2147483647 }
0x1a59   :  { %v1539_v35 = vshra.s32 %v1537_v34, 16  ;;  %v1538_v40 = vand.u32 65535, %v1537_v34 }
0x1a5b   :  { %v1541_v37 = vcvt.s32.f32 %v1539_v35  ;;  %v1540_v42 = vcvt.s32.f32 %v1538_v40 }
0x1a5d   :  { %1542 = vmin.xlane.f32.xlu0 %v1541_v37 }
0x1a61   :  { %1572 = vmin.xlane.f32.xlu0 %v1571_v43 }
0x1ae6   :  { %v1543_v41 = vpop.xlane.xlu0 %1542 }
0x1ae7   :  { %vm1544_vm15 = vcmp.eq.f32.partialorder %v1541_v37, %v1543_v41  ;;  %v1549_v48 = vcvt.f32.s32 %v1543_v41 }
0x1ae8   :  { %v1545_v46 = vsel %vm1544_vm15, %v1540_v42, inf  ;;  %vm3478_vm15 = vmmov %vm3477_vm5 }
0x1ae9   :  { %1546 = vmin.xlane.f32.xlu1 %v1545_v46  ;;  %v1550_v52 = vshll.u32 %v1549_v48, 16  ;;  %v1627_v17 = vsel %vm3478_vm15, %v1626_v16, inf  ;;  %v1562_v48 = vstv %s3059_s21  ;;  %vm3479_vm15 = vcmp.lt.s32.totalorder %v2832_v54, 16 }
0x1aea   :  { %v1573_v13 = vpop.xlane.xlu0 %1572 }
0x1aeb   :  { %v1574_v47 = vrot.slane %v1573_v13, 4 }
0x1aed   :  { %v1575_v50 = vmin.f32 %v1573_v13, %v1574_v47 }
0x1aef   :  { %v1576_v58 = vrot.slane %v1575_v50, 2 }
0x1af1   :  { %v1577_v61 = vmin.f32 %v1575_v50, %v1576_v58 }
0x1af3   :  { %v1578_v2 = vrot.slane %v1577_v61, 1 }
0x1af5   :  { %v1579_v51 = vmin.f32 %v1577_v61, %v1578_v2  ;;  %v1682_v61 = vld [vmem:[%s1681_s25] sm:$0x1]  ;;  %s1850_s25 = scalar_lea.vmem [#allocation2], %s3148_s9 }
0x1b72   :  { %v1547_v62 = vpop.xlane.xlu1 %1546 }
0x1b73   :  { %v1548_v56 = vcvt.f32.s32 %v1547_v62 }
0x1b75   :  { %v1551_v57 = vadd.s32 %v1550_v52, %v1548_v56 }
0x1b77   :  { %v1552_v19 = vrot.slane %v1551_v57, 4 }
0x1b79   :  { %vm1553_vm0 = vcmp.lt.s32.totalorder %v1551_v57, %v1552_v19 }
0x1b7a   :  { %v1554_v60 = vsel %vm1553_vm0, %v1551_v57, %v1552_v19 }
0x1b7b   :  { %v1555_v63 = vrot.slane %v1554_v60, 2 }
0x1b7d   :  { %vm1556_vm10 = vcmp.lt.s32.totalorder %v1554_v60, %v1555_v63 }
0x1b7e   :  { %v1557_v1 = vsel %vm1556_vm10, %v1554_v60, %v1555_v63 }
0x1b7f   :  { %v1558_v3 = vrot.slane %v1557_v1, 1 }
0x1b81   :  { %vm1559_vm8 = vcmp.lt.s32.totalorder %v1557_v1, %v1558_v3 }
0x1b82   :  { %v1560_v5 = vsel %vm1559_vm8, %v1557_v1, %v1558_v3  ;;  %v1680_v1 = vld [vmem:[%s1679_s26] sm:$0x1]  ;;  %s1909_s26 = scalar_lea.vmem [#allocation2], %s3169_s13 }
0x1b83   :  { %2633 = vpush %v1560_v5  ;;  %v1683_v25 = vsub.f32 %v1680_v1, %v1682_v61 }
0x1b84   :  { %2635 = vpush %v1579_v51 }
0x1bb4   :  { %s3318_s23 = spop %2633 }
0x1bb5   :  { %s2636_s20 = spop %2635  ;;  %v1565_v50 = vstv %s3318_s23  ;;  %s1738_s23 = scalar_lea.vmem [#allocation2], %s3121_s4 }
0x1bb6   :  { %v1581_v7 = vstv %s2636_s20  ;;  %s1736_s20 = scalar_lea.vmem [#allocation2], %s3116_s3 }
0x1bb7   :  { %vm1582_vm2 = vcmp.eq.f32.partialorder %v1570_v38, %v1581_v7 }
0x1bb8   :  { %v1583_v55 = vsel %vm1582_vm2, %v2832_v54, 16 }
0x1bb9   :  { %v1584_v9 = vsel %vm3477_vm5, %v1583_v55, 2147483647  ;;  %vm1563_vm5 = vcmp.ge.s32.totalorder %v2832_v54, %v1562_v48 }
0x1bba   :  { %v1586_v6 = vshra.s32 %v1584_v9, 16  ;;  %v1585_v15 = vand.u32 65535, %v1584_v9 }
0x1bbc   :  { %v1588_v12 = vcvt.s32.f32 %v1586_v6  ;;  %v1587_v21 = vcvt.s32.f32 %v1585_v15 }
0x1bbe   :  { %1589 = vmin.xlane.f32.xlu1 %v1588_v12 }
0x1bc2   :  { %1628 = vmin.xlane.f32.xlu1 %v1627_v17 }
0x1c47   :  { %v1590_v20 = vpop.xlane.xlu1 %1589 }
0x1c48   :  { %vm1591_vm0 = vcmp.eq.f32.partialorder %v1588_v12, %v1590_v20  ;;  %v1596_v28 = vcvt.f32.s32 %v1590_v20 }
0x1c49   :  { %v1592_v23 = vsel %vm1591_vm0, %v1587_v21, inf  ;;  %vm1564_vm0 = vmand %vm1563_vm5, %vm3479_vm15 }
0x1c4a   :  { %1593 = vmin.xlane.f32.xlu0 %v1592_v23  ;;  %v1597_v32 = vshll.u32 %v1596_v28, 16  ;;  %v1566_v62 = vsel %vm1564_vm0, %v1565_v50, 0  ;;  %vm3482_vm5 = vmmov %vm3481_vm4 }
0x1c4b   :  { %v1629_v27 = vpop.xlane.xlu1 %1628  ;;  %v1684_v24 = vsel %vm3482_vm5, %v1683_v25, inf  ;;  %vm3483_vm0 = vmmov %vm3482_vm5 }
0x1c4c   :  { %v1630_v26 = vrot.slane %v1629_v27, 4 }
0x1c4e   :  { %v1631_v30 = vmin.f32 %v1629_v27, %v1630_v26 }
0x1c50   :  { %v1632_v22 = vrot.slane %v1631_v30, 2 }
0x1c52   :  { %v1633_v43 = vmin.f32 %v1631_v30, %v1632_v22 }
0x1c54   :  { %v1634_v42 = vrot.slane %v1633_v43, 1 }
0x1c56   :  { %v1635_v47 = vmin.f32 %v1633_v43, %v1634_v42  ;;  %v1739_v43 = vld [vmem:[%s1738_s23] sm:$0x1]  ;;  %s1964_s23 = scalar_lea.vmem [#allocation2], %s3180_s15 }
0x1cd3   :  { %v1594_v31 = vpop.xlane.xlu0 %1593 }
0x1cd4   :  { %v1595_v34 = vcvt.f32.s32 %v1594_v31 }
0x1cd6   :  { %v1598_v35 = vadd.s32 %v1597_v32, %v1595_v34 }
0x1cd8   :  { %v1599_v37 = vrot.slane %v1598_v35, 4 }
0x1cda   :  { %vm1600_vm10 = vcmp.lt.s32.totalorder %v1598_v35, %v1599_v37 }
0x1cdb   :  { %v1601_v38 = vsel %vm1600_vm10, %v1598_v35, %v1599_v37  ;;  %vm1616_vm10 = vcmp.lt.s32.totalorder %v2832_v54, %v1562_v48 }
0x1cdc   :  { %v1602_v40 = vrot.slane %v1601_v38, 2 }
0x1cde   :  { %vm1603_vm8 = vcmp.lt.s32.totalorder %v1601_v38, %v1602_v40 }
0x1cdf   :  { %v1604_v41 = vsel %vm1603_vm8, %v1601_v38, %v1602_v40  ;;  %vm3480_vm8 = vmand %vm3084_vm3, %vm3080_vm1 }
0x1ce0   :  { %v1605_v46 = vrot.slane %v1604_v41, 1 }
0x1ce2   :  { %vm1606_vm2 = vcmp.lt.s32.totalorder %v1604_v41, %v1605_v46 }
0x1ce3   :  { %v1607_v13 = vsel %vm1606_vm2, %v1604_v41, %v1605_v46  ;;  %vm1617_vm2 = vmand %vm3480_vm8, %vm1616_vm10  ;;  %v1737_v41 = vld [vmem:[%s1736_s20] sm:$0x1]  ;;  %s2023_s20 = scalar_lea.vmem [#allocation2], %s3201_s19 }
0x1ce4   :  { %2637 = vpush %v1607_v13  ;;  %v1740_v42 = vsub.f32 %v1737_v41, %v1739_v43  ;;  %vm3484_vm10 = vmmov %vm3483_vm0 }
0x1ce5   :  { %2639 = vpush %v1635_v47 }
0x1ce6   :  { %v1741_v46 = vsel %vm3484_vm10, %v1740_v42, inf }
0x1d15   :  { %s2638_s2 = spop %2637 }
0x1d16   :  { %v1618_v52 = vstv %s2638_s2  ;;  %s2640_s21 = spop %2639  ;;  %s1793_s2 = scalar_lea.vmem [#allocation2], %s3132_s6 }
0x1d17   :  { %v1619_v56 = vsel %vm1617_vm2, %v1618_v52, %v1566_v62  ;;  %v1637_v57 = vstv %s2640_s21  ;;  %s1852_s21 = scalar_lea.vmem [#allocation2], %s3153_s10 }
0x1d18   :  { %vm1638_vm12 = vcmp.eq.f32.partialorder %v1626_v16, %v1637_v57 }
0x1d19   :  { %v1639_v58 = vsel %vm1638_vm12, %v2832_v54, 16 }
0x1d1a   :  { %v1640_v19 = vsel %vm3481_vm4, %v1639_v58, 2147483647 }
0x1d1b   :  { %v1642_v60 = vshra.s32 %v1640_v19, 16  ;;  %v1641_v2 = vand.u32 65535, %v1640_v19 }
0x1d1d   :  { %v1644_v63 = vcvt.s32.f32 %v1642_v60  ;;  %v1643_v5 = vcvt.s32.f32 %v1641_v2 }
0x1d1f   :  { %1645 = vmin.xlane.f32.xlu0 %v1644_v63 }
0x1d23   :  { %1685 = vmin.xlane.f32.xlu0 %v1684_v24 }
0x1da8   :  { %v1646_v3 = vpop.xlane.xlu0 %1645 }
0x1da9   :  { %vm1647_vm1 = vcmp.eq.f32.partialorder %v1644_v63, %v1646_v3  ;;  %v1652_v9 = vcvt.f32.s32 %v1646_v3 }
0x1daa   :  { %v1648_v51 = vsel %vm1647_vm1, %v1643_v5, inf }
0x1dab   :  { %1649 = vmin.xlane.f32.xlu1 %v1648_v51  ;;  %v1653_v12 = vshll.u32 %v1652_v9, 16 }
0x1dac   :  { %v1686_v7 = vpop.xlane.xlu0 %1685 }
0x1dad   :  { %v1687_v55 = vrot.slane %v1686_v7, 4 }
0x1daf   :  { %v1688_v6 = vmin.f32 %v1686_v7, %v1687_v55 }
0x1db1   :  { %v1689_v17 = vrot.slane %v1688_v6, 2 }
0x1db3   :  { %v1690_v21 = vmin.f32 %v1688_v6, %v1689_v17 }
0x1db5   :  { %v1691_v26 = vrot.slane %v1690_v21, 1 }
0x1db7   :  { %v1692_v31 = vmin.f32 %v1690_v21, %v1691_v26 }
0x1e34   :  { %v1650_v11 = vpop.xlane.xlu1 %1649 }
0x1e35   :  { %v1651_v45 = vcvt.f32.s32 %v1650_v11 }
0x1e37   :  { %v1654_v16 = vadd.s32 %v1653_v12, %v1651_v45 }
0x1e39   :  { %v1655_v15 = vrot.slane %v1654_v16, 4 }
0x1e3b   :  { %vm1656_vm3 = vcmp.lt.s32.totalorder %v1654_v16, %v1655_v15 }
0x1e3c   :  { %v1657_v20 = vsel %vm1656_vm3, %v1654_v16, %v1655_v15  ;;  %vm3485_vm3 = vmmov %vm3483_vm0  ;;  %v1796_v16 = vld [vmem:[%s1795_s11] sm:$0x1]  ;;  %s2078_s11 = scalar_lea.vmem [#allocation2], %s3212_s0 }
0x1e3d   :  { %v1658_v23 = vrot.slane %v1657_v20, 2  ;;  %v1794_v15 = vld [vmem:[%s1793_s2] sm:$0x1]  ;;  %s2137_s2 = scalar_lea.vmem [#allocation2], %s3233_s27 }
0x1e3f   :  { %vm1659_vm4 = vcmp.lt.s32.totalorder %v1657_v20, %v1658_v23 }
0x1e40   :  { %v1660_v27 = vsel %vm1659_vm4, %v1657_v20, %v1658_v23  ;;  %v1797_v20 = vsub.f32 %v1794_v15, %v1796_v16  ;;  %vm3486_vm4 = vmmov %vm3483_vm0 }
0x1e41   :  { %v1661_v28 = vrot.slane %v1660_v27, 1 }
0x1e42   :  { %v1798_v21 = vsel %vm3486_vm4, %v1797_v20, inf }
0x1e43   :  { %vm1662_vm12 = vcmp.lt.s32.totalorder %v1660_v27, %v1661_v28 }
0x1e44   :  { %v1663_v30 = vsel %vm1662_vm12, %v1660_v27, %v1661_v28 }
0x1e45   :  { %2641 = vpush %v1663_v30 }
0x1e46   :  { %2643 = vpush %v1692_v31 }
0x1e76   :  { %s2642_s28 = spop %2641 }
0x1e77   :  { %v1675_v32 = vstv %s2642_s28  ;;  %s2644_s29 = spop %2643  ;;  %s1907_s28 = scalar_lea.vmem [#allocation2], %s3164_s12 }
0x1e78   :  { %v1676_v34 = vsel %vm3107_vm9, %v1675_v32, %v1619_v56  ;;  %v1694_v35 = vstv %s2644_s29  ;;  %s1966_s29 = scalar_lea.vmem [#allocation2], %s3185_s16 }
0x1e79   :  { %vm1695_vm15 = vcmp.eq.f32.partialorder %v1683_v25, %v1694_v35 }
0x1e7a   :  { %v1696_v22 = vsel %vm1695_vm15, %v2832_v54, 16 }
0x1e7b   :  { %v1697_v37 = vsel %vm3483_vm0, %v1696_v22, 2147483647 }
0x1e7c   :  { %v1699_v38 = vshra.s32 %v1697_v37, 16  ;;  %v1698_v13 = vand.u32 65535, %v1697_v37 }
0x1e7e   :  { %v1701_v40 = vcvt.s32.f32 %v1699_v38  ;;  %v1700_v47 = vcvt.s32.f32 %v1698_v13 }
0x1e80   :  { %1702 = vmin.xlane.f32.xlu1 %v1701_v40 }
0x1e84   :  { %1742 = vmin.xlane.f32.xlu1 %v1741_v46 }
0x1f09   :  { %v1703_v29 = vpop.xlane.xlu1 %1702 }
0x1f0a   :  { %vm1704_vm9 = vcmp.eq.f32.partialorder %v1701_v40, %v1703_v29  ;;  %v1709_v52 = vcvt.f32.s32 %v1703_v29 }
0x1f0b   :  { %v1705_v48 = vsel %vm1704_vm9, %v1700_v47, inf  ;;  %vm3487_vm9 = vmmov %vm3485_vm3 }
0x1f0c   :  { %1706 = vmin.xlane.f32.xlu0 %v1705_v48  ;;  %v1710_v58 = vshll.u32 %v1709_v52, 16 }
0x1f0d   :  { %v1743_v50 = vpop.xlane.xlu1 %1742 }
0x1f0e   :  { %v1744_v62 = vrot.slane %v1743_v50, 4 }
0x1f10   :  { %v1745_v56 = vmin.f32 %v1743_v50, %v1744_v62 }
0x1f12   :  { %v1746_v61 = vrot.slane %v1745_v56, 2 }
0x1f14   :  { %v1747_v25 = vmin.f32 %v1745_v56, %v1746_v61  ;;  %v1851_v61 = vld [vmem:[%s1850_s25] sm:$0x1]  ;;  %s2251_s25 = scalar_lea.vmem [#allocation2], %s3265_s17 }
0x1f16   :  { %v1748_v3 = vrot.slane %v1747_v25, 1 }
0x1f18   :  { %v1749_v7 = vmin.f32 %v1747_v25, %v1748_v3 }
0x1f95   :  { %v1707_v57 = vpop.xlane.xlu0 %1706 }
0x1f96   :  { %v1708_v19 = vcvt.f32.s32 %v1707_v57 }
0x1f98   :  { %v1711_v60 = vadd.s32 %v1710_v58, %v1708_v19  ;;  %v1853_v19 = vld [vmem:[%s1852_s21] sm:$0x1]  ;;  %s2192_s21 = scalar_lea.vmem [#allocation2], %s3244_s5 }
0x1f9a   :  { %v1712_v63 = vrot.slane %v1711_v60, 4 }
0x1f9c   :  { %vm1713_vm8 = vcmp.lt.s32.totalorder %v1711_v60, %v1712_v63 }
0x1f9d   :  { %v1714_v1 = vsel %vm1713_vm8, %v1711_v60, %v1712_v63  ;;  %v1854_v63 = vsub.f32 %v1851_v61, %v1853_v19  ;;  %vm3488_vm8 = vmmov %vm3485_vm3 }
0x1f9e   :  { %v1715_v24 = vrot.slane %v1714_v1, 2 }
0x1fa0   :  { %vm1716_vm2 = vcmp.lt.s32.totalorder %v1714_v1, %v1715_v24 }
0x1fa1   :  { %v1717_v2 = vsel %vm1716_vm2, %v1714_v1, %v1715_v24  ;;  %v1855_v1 = vsel %vm3488_vm8, %v1854_v63, inf  ;;  %vm3491_vm8 = vmmov %vm3486_vm4 }
0x1fa2   :  { %v1718_v5 = vrot.slane %v1717_v2, 1 }
0x1fa4   :  { %vm1719_vm5 = vcmp.lt.s32.totalorder %v1717_v2, %v1718_v5 }
0x1fa5   :  { %v1720_v51 = vsel %vm1719_vm5, %v1717_v2, %v1718_v5 }
0x1fa6   :  { %2645 = vpush %v1720_v51 }
0x1fa7   :  { %2647 = vpush %v1749_v7 }
0x1fd7   :  { %s2646_s3 = spop %2645 }
0x1fd8   :  { %v1732_v55 = vstv %s2646_s3  ;;  %s2648_s4 = spop %2647  ;;  %s2021_s3 = scalar_lea.vmem [#allocation2], %s3196_s18 }
0x1fd9   :  { %v1733_v9 = vsel %vm3123_vm13, %v1732_v55, %v1676_v34  ;;  %v1751_v6 = vstv %s2648_s4  ;;  %s2080_s4 = scalar_lea.vmem [#allocation2], %s3217_s1 }
0x1fda   :  { %vm1752_vm1 = vcmp.eq.f32.partialorder %v1740_v42, %v1751_v6 }
0x1fdb   :  { %v1753_v11 = vsel %vm1752_vm1, %v2832_v54, 16 }
0x1fdc   :  { %v1754_v12 = vsel %vm3485_vm3, %v1753_v11, 2147483647 }
0x1fdd   :  { %v1756_v45 = vshra.s32 %v1754_v12, 16  ;;  %v1755_v23 = vand.u32 65535, %v1754_v12 }
0x1fdf   :  { %v1758_v17 = vcvt.s32.f32 %v1756_v45  ;;  %v1757_v27 = vcvt.s32.f32 %v1755_v23 }
0x1fe1   :  { %1759 = vmin.xlane.f32.xlu0 %v1758_v17 }
0x1fe5   :  { %1799 = vmin.xlane.f32.xlu0 %v1798_v21 }
0x206a   :  { %v1760_v33 = vpop.xlane.xlu0 %1759 }
0x206b   :  { %vm1761_vm13 = vcmp.eq.f32.partialorder %v1758_v17, %v1760_v33  ;;  %v1766_v31 = vcvt.f32.s32 %v1760_v33 }
0x206c   :  { %v1762_v26 = vsel %vm1761_vm13, %v1757_v27, inf  ;;  %vm3489_vm13 = vmmov %vm3486_vm4 }
0x206d   :  { %1763 = vmin.xlane.f32.xlu1 %v1762_v26  ;;  %v1767_v35 = vshll.u32 %v1766_v31, 16 }
0x206e   :  { %v1800_v28 = vpop.xlane.xlu0 %1799 }
0x206f   :  { %v1801_v30 = vrot.slane %v1800_v28, 4 }
0x2071   :  { %v1802_v32 = vmin.f32 %v1800_v28, %v1801_v30 }
0x2073   :  { %v1803_v38 = vrot.slane %v1802_v32, 2 }
0x2075   :  { %v1804_v41 = vmin.f32 %v1802_v32, %v1803_v38 }
0x2077   :  { %v1805_v13 = vrot.slane %v1804_v41, 1 }
0x2079   :  { %v1806_v48 = vmin.f32 %v1804_v41, %v1805_v13 }
0x20f6   :  { %v1764_v34 = vpop.xlane.xlu1 %1763 }
0x20f7   :  { %v1765_v22 = vcvt.f32.s32 %v1764_v34 }
0x20f9   :  { %v1768_v37 = vadd.s32 %v1767_v35, %v1765_v22  ;;  %v1910_v35 = vld [vmem:[%s1909_s26] sm:$0x1]  ;;  %s2306_s26 = scalar_lea.vmem [#allocation2], %s3276_s22  ;;  %s3507_s22 = sld [smem:[#allocation15_spill]] }
0x20fb   :  { %v1769_v43 = vrot.slane %v1768_v37, 4 }
0x20fd   :  { %vm1770_vm12 = vcmp.lt.s32.totalorder %v1768_v37, %v1769_v43 }
0x20fe   :  { %v1771_v40 = vsel %vm1770_vm12, %v1768_v37, %v1769_v43  ;;  %v1908_v37 = vld [vmem:[%s1907_s28] sm:$0x1] }
0x20ff   :  { %v1772_v42 = vrot.slane %v1771_v40, 2  ;;  %v1911_v38 = vsub.f32 %v1908_v37, %v1910_v35 }
0x2101   :  { %vm1773_vm15 = vcmp.lt.s32.totalorder %v1771_v40, %v1772_v42  ;;  %v1912_v43 = vsel %vm3489_vm13, %v1911_v38, inf }
0x2102   :  { %v1774_v46 = vsel %vm1773_vm15, %v1771_v40, %v1772_v42 }
0x2103   :  { %v1775_v29 = vrot.slane %v1774_v46, 1 }
0x2105   :  { %vm1776_vm0 = vcmp.lt.s32.totalorder %v1774_v46, %v1775_v29 }
0x2106   :  { %v1777_v47 = vsel %vm1776_vm0, %v1774_v46, %v1775_v29 }
0x2107   :  { %2649 = vpush %v1777_v47 }
0x2108   :  { %2651 = vpush %v1806_v48 }
0x2138   :  { %s2650_s6 = spop %2649 }
0x2139   :  { %v1789_v50 = vstv %s2650_s6  ;;  %s2652_s7 = spop %2651  ;;  %s2135_s6 = scalar_lea.vmem [#allocation2], %s3228_s24 }
0x213a   :  { %v1790_v62 = vsel %vm3139_vm7, %v1789_v50, %v1733_v9  ;;  %v1808_v52 = vstv %s2652_s7  ;;  %s2194_s7 = scalar_lea.vmem [#allocation2], %s3249_s8 }
0x213b   :  { %vm1809_vm10 = vcmp.eq.f32.partialorder %v1797_v20, %v1808_v52 }
0x213c   :  { %v1810_v56 = vsel %vm1809_vm10, %v2832_v54, 16 }
0x213d   :  { %v1811_v57 = vsel %vm3487_vm9, %v1810_v56, 2147483647  ;;  %vm3490_vm9 = vmmov %vm3486_vm4 }
0x213e   :  { %v1813_v58 = vshra.s32 %v1811_v57, 16  ;;  %v1812_v25 = vand.u32 65535, %v1811_v57 }
0x2140   :  { %v1815_v60 = vcvt.s32.f32 %v1813_v58  ;;  %v1814_v24 = vcvt.s32.f32 %v1812_v25 }
0x2142   :  { %1816 = vmin.xlane.f32.xlu1 %v1815_v60 }
0x2146   :  { %1856 = vmin.xlane.f32.xlu1 %v1855_v1 }
0x21cb   :  { %v1817_v36 = vpop.xlane.xlu1 %1816 }
0x21cc   :  { %vm1818_vm7 = vcmp.eq.f32.partialorder %v1815_v60, %v1817_v36  ;;  %v1823_v51 = vcvt.f32.s32 %v1817_v36 }
0x21cd   :  { %v1819_v2 = vsel %vm1818_vm7, %v1814_v24, inf }
0x21ce   :  { %1820 = vmin.xlane.f32.xlu0 %v1819_v2  ;;  %v1824_v9 = vshll.u32 %v1823_v51, 16 }
0x21cf   :  { %v1857_v3 = vpop.xlane.xlu1 %1856 }
0x21d0   :  { %v1858_v5 = vrot.slane %v1857_v3, 4 }
0x21d2   :  { %v1859_v7 = vmin.f32 %v1857_v3, %v1858_v5 }
0x21d4   :  { %v1860_v12 = vrot.slane %v1859_v7, 2 }
0x21d6   :  { %v1861_v17 = vmin.f32 %v1859_v7, %v1860_v12 }
0x21d8   :  { %v1862_v21 = vrot.slane %v1861_v17, 1 }
0x21da   :  { %v1863_v27 = vmin.f32 %v1861_v17, %v1862_v21 }
0x2257   :  { %v1821_v55 = vpop.xlane.xlu0 %1820 }
0x2258   :  { %v1822_v6 = vcvt.f32.s32 %v1821_v55  ;;  %v1967_v55 = vld [vmem:[%s1966_s29] sm:$0x1] }
0x225a   :  { %v1825_v11 = vadd.s32 %v1824_v9, %v1822_v6  ;;  %v1965_v6 = vld [vmem:[%s1964_s23] sm:$0x1] }
0x225c   :  { %v1826_v45 = vrot.slane %v1825_v11, 4 }
0x225e   :  { %vm1827_vm2 = vcmp.lt.s32.totalorder %v1825_v11, %v1826_v45 }
0x225f   :  { %v1828_v16 = vsel %vm1827_vm2, %v1825_v11, %v1826_v45  ;;  %v1968_v11 = vsub.f32 %v1965_v6, %v1967_v55 }
0x2260   :  { %v1829_v15 = vrot.slane %v1828_v16, 2 }
0x2261   :  { %v1969_v12 = vsel %vm3491_vm8, %v1968_v11, inf }
0x2262   :  { %vm1830_vm5 = vcmp.lt.s32.totalorder %v1828_v16, %v1829_v15 }
0x2263   :  { %v1831_v20 = vsel %vm1830_vm5, %v1828_v16, %v1829_v15 }
0x2264   :  { %v1832_v23 = vrot.slane %v1831_v20, 1 }
0x2266   :  { %vm1833_vm1 = vcmp.lt.s32.totalorder %v1831_v20, %v1832_v23 }
0x2267   :  { %v1834_v33 = vsel %vm1833_vm1, %v1831_v20, %v1832_v23 }
0x2268   :  { %2653 = vpush %v1834_v33 }
0x2269   :  { %2655 = vpush %v1863_v27 }
0x2299   :  { %s2654_s9 = spop %2653 }
0x229a   :  { %v1846_v26 = vstv %s2654_s9  ;;  %s2656_s10 = spop %2655  ;;  %s2249_s9 = scalar_lea.vmem [#allocation2], %s3260_s14 }
0x229b   :  { %v1847_v28 = vsel %vm3155_vm14, %v1846_v26, %v1790_v62  ;;  %v1865_v30 = vstv %s2656_s10  ;;  %s2308_s10 = scalar_lea.vmem [#allocation2], %s3281_s30  ;;  %s3508_s30 = sld [smem:[#allocation14_spill]] }
0x229c   :  { %vm1866_vm3 = vcmp.eq.f32.partialorder %v1854_v63, %v1865_v30 }
0x229d   :  { %v1867_v31 = vsel %vm1866_vm3, %v2832_v54, 16  ;;  %vm3492_vm3 = vmmov %vm3486_vm4 }
0x229e   :  { %v1868_v32 = vsel %vm3486_vm4, %v1867_v31, 2147483647  ;;  %vm3493_vm4 = vmmov %vm3492_vm3 }
0x229f   :  { %v1870_v34 = vshra.s32 %v1868_v32, 16  ;;  %v1869_v40 = vand.u32 65535, %v1868_v32 }
0x22a1   :  { %v1872_v22 = vcvt.s32.f32 %v1870_v34  ;;  %v1871_v41 = vcvt.s32.f32 %v1869_v40  ;;  %s2363_s29 = scalar_lea.vmem [#allocation2], %s3508_s30 }
0x22a3   :  { %1873 = vmin.xlane.f32.xlu0 %v1872_v22 }
0x22a7   :  { %1913 = vmin.xlane.f32.xlu0 %v1912_v43 }
0x232c   :  { %v1874_v39 = vpop.xlane.xlu0 %1873 }
0x232d   :  { %vm1875_vm14 = vcmp.eq.f32.partialorder %v1872_v22, %v1874_v39  ;;  %v1880_v29 = vcvt.f32.s32 %v1874_v39 }
0x232e   :  { %v1876_v42 = vsel %vm1875_vm14, %v1871_v41, inf }
0x232f   :  { %1877 = vmin.xlane.f32.xlu1 %v1876_v42  ;;  %v1881_v50 = vshll.u32 %v1880_v29, 16 }
0x2330   :  { %v1914_v46 = vpop.xlane.xlu0 %1913 }
0x2331   :  { %v1915_v13 = vrot.slane %v1914_v46, 4 }
0x2333   :  { %v1916_v47 = vmin.f32 %v1914_v46, %v1915_v13 }
0x2335   :  { %v1917_v56 = vrot.slane %v1916_v47, 2 }
0x2337   :  { %v1918_v19 = vmin.f32 %v1916_v47, %v1917_v56  ;;  %v2024_v47 = vld [vmem:[%s2023_s20] sm:$0x1] }
0x2339   :  { %v1919_v63 = vrot.slane %v1918_v19, 1 }
0x233b   :  { %v1920_v36 = vmin.f32 %v1918_v19, %v1919_v63 }
0x23b8   :  { %v1878_v48 = vpop.xlane.xlu1 %1877 }
0x23b9   :  { %v1879_v62 = vcvt.f32.s32 %v1878_v48 }
0x23bb   :  { %v1882_v52 = vadd.s32 %v1881_v50, %v1879_v62  ;;  %v2022_v50 = vld [vmem:[%s2021_s3] sm:$0x1] }
0x23bc   :  { %v2025_v62 = vsub.f32 %v2022_v50, %v2024_v47 }
0x23bd   :  { %v1883_v57 = vrot.slane %v1882_v52, 4 }
0x23bf   :  { %vm1884_vm12 = vcmp.lt.s32.totalorder %v1882_v52, %v1883_v57 }
0x23c0   :  { %v1885_v58 = vsel %vm1884_vm12, %v1882_v52, %v1883_v57  ;;  %v2026_v52 = vsel %vm3493_vm4, %v2025_v62, inf  ;;  %vm3498_vm4 = vmmov %vm3492_vm3 }
0x23c1   :  { %v1886_v60 = vrot.slane %v1885_v58, 2 }
0x23c3   :  { %vm1887_vm15 = vcmp.lt.s32.totalorder %v1885_v58, %v1886_v60 }
0x23c4   :  { %v1888_v61 = vsel %vm1887_vm15, %v1885_v58, %v1886_v60  ;;  %vm3494_vm15 = vnez %v3459_v53 }
0x23c5   :  { %v1889_v1 = vrot.slane %v1888_v61, 1 }
0x23c7   :  { %vm1890_vm0 = vcmp.lt.s32.totalorder %v1888_v61, %v1889_v1 }
0x23c8   :  { %v1891_v25 = vsel %vm1890_vm0, %v1888_v61, %v1889_v1 }
0x23c9   :  { %2657 = vpush %v1891_v25 }
0x23ca   :  { %2659 = vpush %v1920_v36 }
0x23fa   :  { %s2658_s12 = spop %2657 }
0x23fb   :  { %v1903_v24 = vstv %s2658_s12  ;;  %s2660_s13 = spop %2659 }
0x23fc   :  { %v1904_v2 = vsel %vm3171_vm11, %v1903_v24, %v1847_v28  ;;  %v1922_v3 = vstv %s2660_s13  ;;  %s2365_s13 = scalar_lea.vmem [#allocation2], %s3507_s22 }
0x23fd   :  { %vm1923_vm10 = vcmp.eq.f32.partialorder %v1911_v38, %v1922_v3 }
0x23fe   :  { %v1924_v5 = vsel %vm1923_vm10, %v2832_v54, 16  ;;  %vm3495_vm10 = vmmov %vm3492_vm3 }
0x23ff   :  { %v1925_v51 = vsel %vm3490_vm9, %v1924_v5, 2147483647  ;;  %vm3496_vm9 = vmmov %vm3492_vm3 }
0x2400   :  { %v1927_v7 = vshra.s32 %v1925_v51, 16  ;;  %v1926_v45 = vand.u32 65535, %v1925_v51 }
0x2402   :  { %v1929_v9 = vcvt.s32.f32 %v1927_v7  ;;  %v1928_v16 = vcvt.s32.f32 %v1926_v45 }
0x2404   :  { %1930 = vmin.xlane.f32.xlu1 %v1929_v9 }
0x2408   :  { %1970 = vmin.xlane.f32.xlu1 %v1969_v12 }
0x248d   :  { %v1931_v44 = vpop.xlane.xlu1 %1930 }
0x248e   :  { %vm1932_vm11 = vcmp.eq.f32.partialorder %v1929_v9, %v1931_v44  ;;  %v1937_v21 = vcvt.f32.s32 %v1931_v44 }
0x248f   :  { %v1933_v17 = vsel %vm1932_vm11, %v1928_v16, inf }
0x2490   :  { %1934 = vmin.xlane.f32.xlu0 %v1933_v17  ;;  %v1938_v27 = vshll.u32 %v1937_v21, 16  ;;  %v2081_v21 = vld [vmem:[%s2080_s4] sm:$0x1] }
0x2491   :  { %v1971_v15 = vpop.xlane.xlu1 %1970 }
0x2492   :  { %v1972_v20 = vrot.slane %v1971_v15, 4 }
0x2494   :  { %v1973_v23 = vmin.f32 %v1971_v15, %v1972_v20 }
0x2496   :  { %v1974_v30 = vrot.slane %v1973_v23, 2 }
0x2498   :  { %v1975_v34 = vmin.f32 %v1973_v23, %v1974_v30 }
0x249a   :  { %v1976_v37 = vrot.slane %v1975_v34, 1 }
0x249c   :  { %v1977_v40 = vmin.f32 %v1975_v34, %v1976_v37 }
0x2519   :  { %v1935_v33 = vpop.xlane.xlu0 %1934 }
0x251a   :  { %v1936_v26 = vcvt.f32.s32 %v1935_v33  ;;  %v2079_v33 = vld [vmem:[%s2078_s11] sm:$0x1] }
0x251c   :  { %v1939_v28 = vadd.s32 %v1938_v27, %v1936_v26  ;;  %v2082_v27 = vsub.f32 %v2079_v33, %v2081_v21 }
0x251e   :  { %v1940_v31 = vrot.slane %v1939_v28, 4  ;;  %v2083_v26 = vsel %vm3496_vm9, %v2082_v27, inf  ;;  %vm3501_vm9 = vmmov %vm3492_vm3 }
0x2520   :  { %vm1941_vm7 = vcmp.lt.s32.totalorder %v1939_v28, %v1940_v31 }
0x2521   :  { %v1942_v32 = vsel %vm1941_vm7, %v1939_v28, %v1940_v31 }
0x2522   :  { %v1943_v35 = vrot.slane %v1942_v32, 2 }
0x2524   :  { %vm1944_vm2 = vcmp.lt.s32.totalorder %v1942_v32, %v1943_v35 }
0x2525   :  { %v1945_v22 = vsel %vm1944_vm2, %v1942_v32, %v1943_v35 }
0x2526   :  { %v1946_v38 = vrot.slane %v1945_v22, 1 }
0x2528   :  { %vm1947_vm5 = vcmp.lt.s32.totalorder %v1945_v22, %v1946_v38 }
0x2529   :  { %v1948_v43 = vsel %vm1947_vm5, %v1945_v22, %v1946_v38  ;;  %vm3497_vm5 = vnez %v3461_v59 }
0x252a   :  { %2661 = vpush %v1948_v43 }
0x252b   :  { %2663 = vpush %v1977_v40 }
0x255b   :  { %s2662_s15 = spop %2661 }
0x255c   :  { %v1960_v39 = vstv %s2662_s15  ;;  %s2664_s16 = spop %2663 }
0x255d   :  { %v1961_v41 = vsel %vm3187_vm6, %v1960_v39, %v1904_v2  ;;  %v1979_v42 = vstv %s2664_s16  ;;  %s2779_s16 = smov [#allocation10]  }
0x255e   :  { %vm1980_vm1 = vcmp.eq.f32.partialorder %v1968_v11, %v1979_v42  ;;  %s2425_s20 = sshll.u32 %s2779_s16, 4  ;;  %s2426_s20 = int_to_ptr.vmem [resolvable:$true] %s2425_s20 }
0x255f   :  { %v1981_v46 = vsel %vm1980_vm1, %v2832_v54, 16  ;;  %p2750_p12 = scmp.lt.s32.totalorder %s2426_s20, %s2426_s20 }
0x2560   :  { %v1982_v13 = vsel %vm3492_vm3, %v1981_v46, 2147483647 }
0x2561   :  { %v1984_v29 = vshra.s32 %v1982_v13, 16  ;;  %v1983_v56 = vand.u32 65535, %v1982_v13 }
0x2563   :  { %v1986_v48 = vcvt.s32.f32 %v1984_v29  ;;  %v1985_v57 = vcvt.s32.f32 %v1983_v56 }
0x2565   :  { %1987 = vmin.xlane.f32.xlu0 %v1986_v48 }
0x2569   :  { %2027 = vmin.xlane.f32.xlu0 %v2026_v52 }
0x25ee   :  { %v1988_v49 = vpop.xlane.xlu0 %1987 }
0x25ef   :  { %vm1989_vm6 = vcmp.eq.f32.partialorder %v1986_v48, %v1988_v49  ;;  %v1994_v61 = vcvt.f32.s32 %v1988_v49 }
0x25f0   :  { %v1990_v58 = vsel %vm1989_vm6, %v1985_v57, inf }
0x25f1   :  { %1991 = vmin.xlane.f32.xlu1 %v1990_v58  ;;  %v1995_v25 = vshll.u32 %v1994_v61, 16 }
0x25f2   :  { %v2028_v19 = vpop.xlane.xlu0 %2027 }
0x25f3   :  { %v2029_v60 = vrot.slane %v2028_v19, 4 }
0x25f5   :  { %v2030_v63 = vmin.f32 %v2028_v19, %v2029_v60  ;;  %v2138_v60 = vld [vmem:[%s2137_s2] sm:$0x1] }
0x25f7   :  { %v2031_v2 = vrot.slane %v2030_v63, 2 }
0x25f9   :  { %v2032_v51 = vmin.f32 %v2030_v63, %v2031_v2  ;;  %v2136_v63 = vld [vmem:[%s2135_s6] sm:$0x1] }
0x25fb   :  { %v2033_v9 = vrot.slane %v2032_v51, 1 }
0x25fd   :  { %v2034_v12 = vmin.f32 %v2032_v51, %v2033_v9 }
0x267a   :  { %v1992_v1 = vpop.xlane.xlu1 %1991 }
0x267b   :  { %v1993_v36 = vcvt.f32.s32 %v1992_v1  ;;  %v2139_v1 = vsub.f32 %v2136_v63, %v2138_v60 }
0x267d   :  { %v1996_v24 = vadd.s32 %v1995_v25, %v1993_v36  ;;  %v2140_v25 = vsel %vm3498_vm4, %v2139_v1, inf  ;;  %vm3503_vm4 = vmmov %vm3492_vm3 }
0x267f   :  { %v1997_v3 = vrot.slane %v1996_v24, 4 }
0x2681   :  { %vm1998_vm13 = vcmp.lt.s32.totalorder %v1996_v24, %v1997_v3 }
0x2682   :  { %v1999_v5 = vsel %vm1998_vm13, %v1996_v24, %v1997_v3 }
0x2683   :  { %v2000_v7 = vrot.slane %v1999_v5, 2 }
0x2685   :  { %vm2001_vm14 = vcmp.lt.s32.totalorder %v1999_v5, %v2000_v7 }
0x2686   :  { %v2002_v55 = vsel %vm2001_vm14, %v1999_v5, %v2000_v7 }
0x2687   :  { %v2003_v6 = vrot.slane %v2002_v55, 1 }
0x2689   :  { %vm2004_vm12 = vcmp.lt.s32.totalorder %v2002_v55, %v2003_v6 }
0x268a   :  { %v2005_v11 = vsel %vm2004_vm12, %v2002_v55, %v2003_v6 }
0x268b   :  { %2665 = vpush %v2005_v11 }
0x268c   :  { %2667 = vpush %v2034_v12 }
0x26bc   :  { %s2666_s18 = spop %2665 }
0x26bd   :  { %v2017_v45 = vstv %s2666_s18  ;;  %s2668_s19 = spop %2667  ;;  %s2745_s18 = scalar_lea.vmem %s2426_s20, 16 }
0x26be   :  { %v2018_v44 = vsel %vm3494_vm15, %v2017_v45, %v1961_v41  ;;  %v2036_v16 = vstv %s2668_s19  ;;  %vm3499_vm15 = vnez %v3463_v0  ;;  %p2746_p11 = scmp.ne.s32.totalorder %s2426_s20, %s2745_s18  ;;  %s2749_s19 = scalar_lea.vmem %s2426_s20, 32 }
0x26bf   :  { %vm2037_vm0 = vcmp.eq.f32.partialorder %v2025_v62, %v2036_v16  ;;  %p2751_p13 = scmp.lt.s32.totalorder %s2749_s19, %s2745_s18 }
0x26c0   :  { %v2038_v17 = vsel %vm2037_vm0, %v2832_v54, 16 }
0x26c1   :  { %v2039_v15 = vsel %vm3495_vm10, %v2038_v17, 2147483647  ;;  %vm3500_vm10 = vmmov %vm3492_vm3  ;;  %p2752_p0 = por %p2751_p13, %p2750_p12 }
0x26c2   :  { %v2041_v20 = vshra.s32 %v2039_v15, 16  ;;  %v2040_v28 = vand.u32 65535, %v2039_v15 }
0x26c3   :  { %p2753_p1 = pnand %p2752_p0, %p2746_p11 }
0x26c4   :  { %v2043_v23 = vcvt.s32.f32 %v2041_v20  ;;  %v2042_v30 = vcvt.s32.f32 %v2040_v28 }
0x26c6   :  { %2044 = vmin.xlane.f32.xlu1 %v2043_v23 }
0x26ca   :  { %2084 = vmin.xlane.f32.xlu1 %v2083_v26 }
0x274f   :  { %v2045_v53 = vpop.xlane.xlu1 %2044 }
0x2750   :  { %vm2046_vm8 = vcmp.eq.f32.partialorder %v2043_v23, %v2045_v53  ;;  %v2051_v35 = vcvt.f32.s32 %v2045_v53 }
0x2751   :  { %v2047_v31 = vsel %vm2046_vm8, %v2042_v30, inf }
0x2752   :  { %2048 = vmin.xlane.f32.xlu0 %v2047_v31  ;;  %v2052_v38 = vshll.u32 %v2051_v35, 16  ;;  %v2193_v35 = vld [vmem:[%s2192_s21] sm:$0x1] }
0x2753   :  { %v2085_v32 = vpop.xlane.xlu1 %2084 }
0x2754   :  { %v2086_v34 = vrot.slane %v2085_v32, 4 }
0x2756   :  { %v2087_v22 = vmin.f32 %v2085_v32, %v2086_v34  ;;  %v2195_v32 = vld [vmem:[%s2194_s7] sm:$0x1] }
0x2758   :  { %v2088_v39 = vrot.slane %v2087_v22, 2 }
0x275a   :  { %v2089_v46 = vmin.f32 %v2087_v22, %v2088_v39  ;;  %v2196_v22 = vsub.f32 %v2193_v35, %v2195_v32 }
0x275c   :  { %v2090_v47 = vrot.slane %v2089_v46, 1 }
0x275e   :  { %v2091_v62 = vmin.f32 %v2089_v46, %v2090_v47 }
0x27db   :  { %v2049_v37 = vpop.xlane.xlu0 %2048 }
0x27dc   :  { %v2050_v43 = vcvt.f32.s32 %v2049_v37  ;;  %v2197_v37 = vsel %vm3501_vm9, %v2196_v22, inf  ;;  %vm3506_vm9 = vmmov %vm3492_vm3 }
0x27de   :  { %v2053_v40 = vadd.s32 %v2052_v38, %v2050_v43 }
0x27e0   :  { %v2054_v41 = vrot.slane %v2053_v40, 4 }
0x27e2   :  { %vm2055_vm11 = vcmp.lt.s32.totalorder %v2053_v40, %v2054_v41 }
0x27e3   :  { %v2056_v42 = vsel %vm2055_vm11, %v2053_v40, %v2054_v41 }
0x27e4   :  { %v2057_v13 = vrot.slane %v2056_v42, 2 }
0x27e6   :  { %vm2058_vm7 = vcmp.lt.s32.totalorder %v2056_v42, %v2057_v13 }
0x27e7   :  { %v2059_v29 = vsel %vm2058_vm7, %v2056_v42, %v2057_v13 }
0x27e8   :  { %v2060_v48 = vrot.slane %v2059_v29, 1 }
0x27ea   :  { %vm2061_vm2 = vcmp.lt.s32.totalorder %v2059_v29, %v2060_v48 }
0x27eb   :  { %v2062_v50 = vsel %vm2061_vm2, %v2059_v29, %v2060_v48 }
0x27ec   :  { %2669 = vpush %v2062_v50 }
0x27ed   :  { %2671 = vpush %v2091_v62 }
0x281d   :  { %s2670_s0 = spop %2669 }
0x281e   :  { %v2074_v52 = vstv %s2670_s0  ;;  %s2672_s1 = spop %2671 }
0x281f   :  { %v2075_v56 = vsel %vm3497_vm5, %v2074_v52, %v2018_v44  ;;  %v2093_v49 = vstv %s2672_s1  ;;  %vm3502_vm5 = vnez %v3465_v4 }
0x2820   :  { %vm2094_vm1 = vcmp.eq.f32.partialorder %v2082_v27, %v2093_v49 }
0x2821   :  { %v2095_v57 = vsel %vm2094_vm1, %v2832_v54, 16 }
0x2822   :  { %v2096_v58 = vsel %vm3492_vm3, %v2095_v57, 2147483647 }
0x2823   :  { %v2098_v19 = vshra.s32 %v2096_v58, 16  ;;  %v2097_v36 = vand.u32 65535, %v2096_v58 }
0x2825   :  { %v2100_v61 = vcvt.s32.f32 %v2098_v19  ;;  %v2099_v24 = vcvt.s32.f32 %v2097_v36 }
0x2827   :  { %2101 = vmin.xlane.f32.xlu0 %v2100_v61 }
0x282b   :  { %2141 = vmin.xlane.f32.xlu0 %v2140_v25 }
0x28b0   :  { %v2102_v59 = vpop.xlane.xlu0 %2101 }
0x28b1   :  { %vm2103_vm6 = vcmp.eq.f32.partialorder %v2100_v61, %v2102_v59  ;;  %v2108_v51 = vcvt.f32.s32 %v2102_v59 }
0x28b2   :  { %v2104_v2 = vsel %vm2103_vm6, %v2099_v24, inf }
0x28b3   :  { %2105 = vmin.xlane.f32.xlu1 %v2104_v2  ;;  %v2109_v9 = vshll.u32 %v2108_v51, 16  ;;  %v2252_v2 = vld [vmem:[%s2251_s25] sm:$0x1] }
0x28b4   :  { %v2142_v3 = vpop.xlane.xlu0 %2141 }
0x28b5   :  { %v2143_v5 = vrot.slane %v2142_v3, 4 }
0x28b7   :  { %v2144_v7 = vmin.f32 %v2142_v3, %v2143_v5  ;;  %v2250_v5 = vld [vmem:[%s2249_s9] sm:$0x1] }
0x28b8   :  { %v2253_v51 = vsub.f32 %v2250_v5, %v2252_v2 }
0x28b9   :  { %v2145_v12 = vrot.slane %v2144_v7, 2 }
0x28bb   :  { %v2146_v16 = vmin.f32 %v2144_v7, %v2145_v12  ;;  %v2254_v7 = vsel %vm3503_vm4, %v2253_v51, inf  ;;  %vm3510_vm4 = vmmov %vm3492_vm3 }
0x28bd   :  { %v2147_v20 = vrot.slane %v2146_v16, 1 }
0x28bf   :  { %v2148_v33 = vmin.f32 %v2146_v16, %v2147_v20 }
0x293c   :  { %v2106_v55 = vpop.xlane.xlu1 %2105 }
0x293d   :  { %v2107_v6 = vcvt.f32.s32 %v2106_v55 }
0x293f   :  { %v2110_v11 = vadd.s32 %v2109_v9, %v2107_v6 }
0x2941   :  { %v2111_v45 = vrot.slane %v2110_v11, 4 }
0x2943   :  { %vm2112_vm13 = vcmp.lt.s32.totalorder %v2110_v11, %v2111_v45 }
0x2944   :  { %v2113_v44 = vsel %vm2112_vm13, %v2110_v11, %v2111_v45 }
0x2945   :  { %v2114_v17 = vrot.slane %v2113_v44, 2 }
0x2947   :  { %vm2115_vm14 = vcmp.lt.s32.totalorder %v2113_v44, %v2114_v17 }
0x2948   :  { %v2116_v15 = vsel %vm2115_vm14, %v2113_v44, %v2114_v17 }
0x2949   :  { %v2117_v21 = vrot.slane %v2116_v15, 1 }
0x294b   :  { %vm2118_vm12 = vcmp.lt.s32.totalorder %v2116_v15, %v2117_v21 }
0x294c   :  { %v2119_v23 = vsel %vm2118_vm12, %v2116_v15, %v2117_v21 }
0x294d   :  { %2673 = vpush %v2119_v23 }
0x294e   :  { %2675 = vpush %v2148_v33 }
0x297e   :  { %s2674_s24 = spop %2673 }
0x297f   :  { %v2131_v27 = vstv %s2674_s24  ;;  %s2676_s27 = spop %2675 }
0x2980   :  { %v2132_v26 = vsel %vm3499_vm15, %v2131_v27, %v2075_v56  ;;  %v2150_v28 = vstv %s2676_s27  ;;  %vm3504_vm15 = vnez %v3467_v8 }
0x2981   :  { %vm2151_vm0 = vcmp.eq.f32.partialorder %v2139_v1, %v2150_v28 }
0x2982   :  { %v2152_v53 = vsel %vm2151_vm0, %v2832_v54, 16 }
0x2983   :  { %v2153_v30 = vsel %vm3500_vm10, %v2152_v53, 2147483647  ;;  %vm3505_vm10 = vmmov %vm3492_vm3 }
0x2984   :  { %v2155_v31 = vshra.s32 %v2153_v30, 16  ;;  %v2154_v38 = vand.u32 65535, %v2153_v30 }
0x2986   :  { %v2157_v34 = vcvt.s32.f32 %v2155_v31  ;;  %v2156_v43 = vcvt.s32.f32 %v2154_v38 }
0x2988   :  { %2158 = vmin.xlane.f32.xlu1 %v2157_v34 }
0x298c   :  { %2198 = vmin.xlane.f32.xlu1 %v2197_v37 }
0x2a11   :  { %v2159_v0 = vpop.xlane.xlu1 %2158 }
0x2a12   :  { %vm2160_vm8 = vcmp.eq.f32.partialorder %v2157_v34, %v2159_v0  ;;  %v2165_v42 = vcvt.f32.s32 %v2159_v0 }
0x2a13   :  { %v2161_v40 = vsel %vm2160_vm8, %v2156_v43, inf  ;;  %v2309_v43 = vld [vmem:[%s2308_s10] sm:$0x1] }
0x2a14   :  { %2162 = vmin.xlane.f32.xlu0 %v2161_v40  ;;  %v2166_v29 = vshll.u32 %v2165_v42, 16 }
0x2a15   :  { %v2199_v39 = vpop.xlane.xlu1 %2198 }
0x2a16   :  { %v2200_v41 = vrot.slane %v2199_v39, 4 }
0x2a18   :  { %v2201_v46 = vmin.f32 %v2199_v39, %v2200_v41  ;;  %v2307_v39 = vld [vmem:[%s2306_s26] sm:$0x1] }
0x2a19   :  { %v2310_v41 = vsub.f32 %v2307_v39, %v2309_v43 }
0x2a1a   :  { %v2202_v50 = vrot.slane %v2201_v46, 2 }
0x2a1b   :  { %v2311_v42 = vsel %vm3506_vm9, %v2310_v41, inf }
0x2a1c   :  { %v2203_v56 = vmin.f32 %v2201_v46, %v2202_v50 }
0x2a1e   :  { %v2204_v58 = vrot.slane %v2203_v56, 1 }
0x2a20   :  { %v2205_v61 = vmin.f32 %v2203_v56, %v2204_v58 }
0x2a9d   :  { %v2163_v13 = vpop.xlane.xlu0 %2162 }
0x2a9e   :  { %v2164_v47 = vcvt.f32.s32 %v2163_v13 }
0x2aa0   :  { %v2167_v48 = vadd.s32 %v2166_v29, %v2164_v47 }
0x2aa2   :  { %v2168_v62 = vrot.slane %v2167_v48, 4 }
0x2aa4   :  { %vm2169_vm11 = vcmp.lt.s32.totalorder %v2167_v48, %v2168_v62 }
0x2aa5   :  { %v2170_v52 = vsel %vm2169_vm11, %v2167_v48, %v2168_v62 }
0x2aa6   :  { %v2171_v49 = vrot.slane %v2170_v52, 2 }
0x2aa8   :  { %vm2172_vm7 = vcmp.lt.s32.totalorder %v2170_v52, %v2171_v49 }
0x2aa9   :  { %v2173_v57 = vsel %vm2172_vm7, %v2170_v52, %v2171_v49 }
0x2aaa   :  { %v2174_v19 = vrot.slane %v2173_v57, 1 }
0x2aac   :  { %vm2175_vm2 = vcmp.lt.s32.totalorder %v2173_v57, %v2174_v19 }
0x2aad   :  { %v2176_v60 = vsel %vm2175_vm2, %v2173_v57, %v2174_v19 }
0x2aae   :  { %2677 = vpush %v2176_v60 }
0x2aaf   :  { %2679 = vpush %v2205_v61 }
0x2adf   :  { %s2678_s5 = spop %2677 }
0x2ae0   :  { %v2188_v63 = vstv %s2678_s5  ;;  %s2680_s8 = spop %2679 }
0x2ae1   :  { %v2189_v1 = vsel %vm3502_vm5, %v2188_v63, %v2132_v26  ;;  %v2207_v25 = vstv %s2680_s8  ;;  %vm3509_vm5 = vnez %v3469_v10 }
0x2ae2   :  { %vm2208_vm1 = vcmp.eq.f32.partialorder %v2196_v22, %v2207_v25 }
0x2ae3   :  { %v2209_v36 = vsel %vm2208_vm1, %v2832_v54, 16 }
0x2ae4   :  { %v2210_v59 = vsel %vm3492_vm3, %v2209_v36, 2147483647 }
0x2ae5   :  { %v2212_v24 = vshra.s32 %v2210_v59, 16  ;;  %v2211_v55 = vand.u32 65535, %v2210_v59 }
0x2ae7   :  { %v2214_v3 = vcvt.s32.f32 %v2212_v24  ;;  %v2213_v9 = vcvt.s32.f32 %v2211_v55 }
0x2ae9   :  { %2215 = vmin.xlane.f32.xlu0 %v2214_v3 }
0x2aed   :  { %2255 = vmin.xlane.f32.xlu0 %v2254_v7 }
0x2b72   :  { %v2216_v4 = vpop.xlane.xlu0 %2215 }
0x2b73   :  { %vm2217_vm6 = vcmp.eq.f32.partialorder %v2214_v3, %v2216_v4  ;;  %v2222_v45 = vcvt.f32.s32 %v2216_v4  ;;  %v2366_v4 = vld [vmem:[%s2365_s13] sm:$0x1] }
0x2b74   :  { %v2218_v6 = vsel %vm2217_vm6, %v2213_v9, inf }
0x2b75   :  { %2219 = vmin.xlane.f32.xlu1 %v2218_v6  ;;  %v2223_v17 = vshll.u32 %v2222_v45, 16  ;;  %v2364_v6 = vld [vmem:[%s2363_s29] sm:$0x1] }
0x2b76   :  { %v2256_v11 = vpop.xlane.xlu0 %2255 }
0x2b77   :  { %v2257_v12 = vrot.slane %v2256_v11, 4 }
0x2b79   :  { %v2258_v44 = vmin.f32 %v2256_v11, %v2257_v12  ;;  %v2367_v11 = vsub.f32 %v2364_v6, %v2366_v4 }
0x2b7b   :  { %v2259_v21 = vrot.slane %v2258_v44, 2  ;;  %v2368_v12 = vsel %vm3510_vm4, %v2367_v11, inf }
0x2b7d   :  { %v2260_v27 = vmin.f32 %v2258_v44, %v2259_v21 }
0x2b7f   :  { %v2261_v53 = vrot.slane %v2260_v27, 1 }
0x2b81   :  { %v2262_v32 = vmin.f32 %v2260_v27, %v2261_v53 }
0x2bfe   :  { %v2220_v16 = vpop.xlane.xlu1 %2219 }
0x2bff   :  { %v2221_v15 = vcvt.f32.s32 %v2220_v16 }
0x2c01   :  { %v2224_v20 = vadd.s32 %v2223_v17, %v2221_v15 }
0x2c03   :  { %v2225_v23 = vrot.slane %v2224_v20, 4 }
0x2c05   :  { %vm2226_vm13 = vcmp.lt.s32.totalorder %v2224_v20, %v2225_v23 }
0x2c06   :  { %v2227_v33 = vsel %vm2226_vm13, %v2224_v20, %v2225_v23 }
0x2c07   :  { %v2228_v26 = vrot.slane %v2227_v33, 2 }
0x2c09   :  { %vm2229_vm14 = vcmp.lt.s32.totalorder %v2227_v33, %v2228_v26 }
0x2c0a   :  { %v2230_v28 = vsel %vm2229_vm14, %v2227_v33, %v2228_v26 }
0x2c0b   :  { %v2231_v30 = vrot.slane %v2230_v28, 1 }
0x2c0d   :  { %vm2232_vm12 = vcmp.lt.s32.totalorder %v2230_v28, %v2231_v30 }
0x2c0e   :  { %v2233_v31 = vsel %vm2232_vm12, %v2230_v28, %v2231_v30 }
0x2c0f   :  { %2681 = vpush %v2233_v31 }
0x2c10   :  { %2683 = vpush %v2262_v32 }
0x2c40   :  { %s2682_s14 = spop %2681 }
0x2c41   :  { %v2245_v34 = vstv %s2682_s14  ;;  %s2684_s17 = spop %2683 }
0x2c42   :  { %v2246_v35 = vsel %vm3504_vm15, %v2245_v34, %v2189_v1  ;;  %v2264_v22 = vstv %s2684_s17  ;;  %vm3511_vm15 = vnez %v3473_v14 }
0x2c43   :  { %vm2265_vm0 = vcmp.eq.f32.partialorder %v2253_v51, %v2264_v22 }
0x2c44   :  { %v2266_v37 = vsel %vm2265_vm0, %v2832_v54, 16 }
0x2c45   :  { %v2267_v38 = vsel %vm3505_vm10, %v2266_v37, 2147483647  ;;  %vm3512_vm10 = vmmov %vm3492_vm3 }
0x2c46   :  { %v2269_v0 = vshra.s32 %v2267_v38, 16  ;;  %v2268_v46 = vand.u32 65535, %v2267_v38 }
0x2c48   :  { %v2271_v40 = vcvt.s32.f32 %v2269_v0  ;;  %v2270_v13 = vcvt.s32.f32 %v2268_v46 }
0x2c4a   :  { %2272 = vmin.xlane.f32.xlu1 %v2271_v40 }
0x2c4e   :  { %2312 = vmin.xlane.f32.xlu1 %v2311_v42 }
0x2cd3   :  { %v2273_v8 = vpop.xlane.xlu1 %2272 }
0x2cd4   :  { %vm2274_vm8 = vcmp.eq.f32.partialorder %v2271_v40, %v2273_v8  ;;  %v2279_v50 = vcvt.f32.s32 %v2273_v8 }
0x2cd5   :  { %v2275_v29 = vsel %vm2274_vm8, %v2270_v13, inf }
0x2cd6   :  { %2276 = vmin.xlane.f32.xlu0 %v2275_v29  ;;  %v2280_v56 = vshll.u32 %v2279_v50, 16 }
0x2cd7   :  { %v2313_v47 = vpop.xlane.xlu1 %2312 }
0x2cd8   :  { %v2314_v48 = vrot.slane %v2313_v47, 4 }
0x2cda   :  { %v2315_v62 = vmin.f32 %v2313_v47, %v2314_v48 }
0x2cdc   :  { %v2316_v58 = vrot.slane %v2315_v62, 2 }
0x2cde   :  { %v2317_v61 = vmin.f32 %v2315_v62, %v2316_v58 }
0x2ce0   :  { %v2318_v25 = vrot.slane %v2317_v61, 1 }
0x2ce2   :  { %v2319_v24 = vmin.f32 %v2317_v61, %v2318_v25 }
0x2d5f   :  { %v2277_v52 = vpop.xlane.xlu0 %2276 }
0x2d60   :  { %v2278_v49 = vcvt.f32.s32 %v2277_v52 }
0x2d62   :  { %v2281_v57 = vadd.s32 %v2280_v56, %v2278_v49 }
0x2d64   :  { %v2282_v19 = vrot.slane %v2281_v57, 4 }
0x2d66   :  { %vm2283_vm11 = vcmp.lt.s32.totalorder %v2281_v57, %v2282_v19 }
0x2d67   :  { %v2284_v60 = vsel %vm2283_vm11, %v2281_v57, %v2282_v19 }
0x2d68   :  { %v2285_v63 = vrot.slane %v2284_v60, 2 }
0x2d6a   :  { %vm2286_vm7 = vcmp.lt.s32.totalorder %v2284_v60, %v2285_v63 }
0x2d6b   :  { %v2287_v1 = vsel %vm2286_vm7, %v2284_v60, %v2285_v63 }
0x2d6c   :  { %v2288_v36 = vrot.slane %v2287_v1, 1 }
0x2d6e   :  { %vm2289_vm2 = vcmp.lt.s32.totalorder %v2287_v1, %v2288_v36 }
0x2d6f   :  { %v2290_v59 = vsel %vm2289_vm2, %v2287_v1, %v2288_v36  ;;  %vm3513_vm2 = vnez %v3475_v18 }
0x2d70   :  { %2685 = vpush %v2290_v59 }
0x2d71   :  { %2687 = vpush %v2319_v24 }
0x2da1   :  { %s2686_s28 = spop %2685 }
0x2da2   :  { %v2302_v2 = vstv %s2686_s28  ;;  %s2688_s12 = spop %2687 }
0x2da3   :  { %v2303_v3 = vsel %vm3509_vm5, %v2302_v2, %v2246_v35  ;;  %v2321_v5 = vstv %s2688_s12 }
0x2da4   :  { %vm2322_vm1 = vcmp.eq.f32.partialorder %v2310_v41, %v2321_v5 }
0x2da5   :  { %v2323_v51 = vsel %vm2322_vm1, %v2832_v54, 16 }
0x2da6   :  { %v2324_v7 = vsel %vm3492_vm3, %v2323_v51, 2147483647 }
0x2da7   :  { %v2326_v55 = vshra.s32 %v2324_v7, 16  ;;  %v2325_v45 = vand.u32 65535, %v2324_v7 }
0x2da9   :  { %v2328_v9 = vcvt.s32.f32 %v2326_v55  ;;  %v2327_v44 = vcvt.s32.f32 %v2325_v45 }
0x2dab   :  { %2329 = vmin.xlane.f32.xlu0 %v2328_v9 }
0x2daf   :  { %2369 = vmin.xlane.f32.xlu0 %v2368_v12 }
0x2e34   :  { %v2330_v10 = vpop.xlane.xlu0 %2329 }
0x2e35   :  { %vm2331_vm6 = vcmp.eq.f32.partialorder %v2328_v9, %v2330_v10  ;;  %v2336_v20 = vcvt.f32.s32 %v2330_v10 }
0x2e36   :  { %v2332_v16 = vsel %vm2331_vm6, %v2327_v44, inf }
0x2e37   :  { %2333 = vmin.xlane.f32.xlu1 %v2332_v16  ;;  %v2337_v33 = vshll.u32 %v2336_v20, 16 }
0x2e38   :  { %v2370_v17 = vpop.xlane.xlu0 %2369 }
0x2e39   :  { %v2371_v15 = vrot.slane %v2370_v17, 4 }
0x2e3b   :  { %v2372_v21 = vmin.f32 %v2370_v17, %v2371_v15 }
0x2e3d   :  { %v2373_v28 = vrot.slane %v2372_v21, 2 }
0x2e3f   :  { %v2374_v31 = vmin.f32 %v2372_v21, %v2373_v28 }
0x2e41   :  { %v2375_v35 = vrot.slane %v2374_v31, 1 }
0x2e43   :  { %v2376_v38 = vmin.f32 %v2374_v31, %v2375_v35 }
0x2ec0   :  { %v2334_v23 = vpop.xlane.xlu1 %2333 }
0x2ec1   :  { %v2335_v27 = vcvt.f32.s32 %v2334_v23 }
0x2ec3   :  { %v2338_v26 = vadd.s32 %v2337_v33, %v2335_v27 }
0x2ec5   :  { %v2339_v53 = vrot.slane %v2338_v26, 4 }
0x2ec7   :  { %vm2340_vm13 = vcmp.lt.s32.totalorder %v2338_v26, %v2339_v53 }
0x2ec8   :  { %v2341_v30 = vsel %vm2340_vm13, %v2338_v26, %v2339_v53 }
0x2ec9   :  { %v2342_v32 = vrot.slane %v2341_v30, 2 }
0x2ecb   :  { %vm2343_vm14 = vcmp.lt.s32.totalorder %v2341_v30, %v2342_v32 }
0x2ecc   :  { %v2344_v34 = vsel %vm2343_vm14, %v2341_v30, %v2342_v32 }
0x2ecd   :  { %v2345_v22 = vrot.slane %v2344_v34, 1 }
0x2ecf   :  { %vm2346_vm12 = vcmp.lt.s32.totalorder %v2344_v34, %v2345_v22 }
0x2ed0   :  { %v2347_v37 = vsel %vm2346_vm12, %v2344_v34, %v2345_v22 }
0x2ed1   :  { %2689 = vpush %v2347_v37 }
0x2ed2   :  { %2691 = vpush %v2376_v38 }
0x2f02   :  { %s2690_s23 = spop %2689 }
0x2f03   :  { %v2359_v0 = vstv %s2690_s23  ;;  %s2692_s15 = spop %2691 }
0x2f04   :  { %v2360_v43 = vsel %vm3511_vm15, %v2359_v0, %v2303_v3  ;;  %v2378_v40 = vstv %s2692_s15 }
0x2f05   :  { %vm2379_vm0 = vcmp.eq.f32.partialorder %v2367_v11, %v2378_v40 }
0x2f06   :  { %v2380_v39 = vsel %vm2379_vm0, %v2832_v54, 16 }
0x2f07   :  { %v2381_v41 = vsel %vm3512_vm10, %v2380_v39, 2147483647 }
0x2f08   :  { %v2383_v42 = vshra.s32 %v2381_v41, 16  ;;  %v2382_v8 = vand.u32 65535, %v2381_v41 }
0x2f0a   :  { %v2385_v46 = vcvt.s32.f32 %v2383_v42  ;;  %v2384_v29 = vcvt.s32.f32 %v2382_v8 }
0x2f0c   :  { %2386 = vmin.xlane.f32.xlu1 %v2385_v46 }
0x2f95   :  { %v2387_v13 = vpop.xlane.xlu1 %2386 }
0x2f96   :  { %vm2388_vm9 = vcmp.eq.f32.partialorder %v2385_v46, %v2387_v13  ;;  %v2393_v48 = vcvt.f32.s32 %v2387_v13 }
0x2f97   :  { %v2389_v47 = vsel %vm2388_vm9, %v2384_v29, inf }
0x2f98   :  { %2390 = vmin.xlane.f32.xlu0 %v2389_v47  ;;  %v2394_v62 = vshll.u32 %v2393_v48, 16 }
0x3021   :  { %v2391_v50 = vpop.xlane.xlu0 %2390 }
0x3022   :  { %v2392_v14 = vcvt.f32.s32 %v2391_v50 }
0x3024   :  { %v2395_v52 = vadd.s32 %v2394_v62, %v2392_v14 }
0x3026   :  { %v2396_v56 = vrot.slane %v2395_v52, 4 }
0x3028   :  { %vm2397_vm8 = vcmp.lt.s32.totalorder %v2395_v52, %v2396_v56 }
0x3029   :  { %v2398_v49 = vsel %vm2397_vm8, %v2395_v52, %v2396_v56 }
0x302a   :  { %v2399_v54 = vrot.slane %v2398_v49, 2 }
0x302c   :  { %vm2400_vm11 = vcmp.lt.s32.totalorder %v2398_v49, %v2399_v54 }
0x302d   :  { %v2401_v57 = vsel %vm2400_vm11, %v2398_v49, %v2399_v54 }
0x302e   :  { %v2402_v58 = vrot.slane %v2401_v57, 1 }
0x3030   :  { %vm2403_vm7 = vcmp.lt.s32.totalorder %v2401_v57, %v2402_v58 }
0x3031   :  { %v2404_v19 = vsel %vm2403_vm7, %v2401_v57, %v2402_v58 }
0x3032   :  { %2693 = vpush %v2404_v19 }
0x3063   :  { %s2694_s3 = spop %2693 }
0x3064   :  { %v2416_v60 = vstv %s2694_s3 }
0x3065   :  { %v2417_v61 = vsel %vm3513_vm2, %v2416_v60, %v2360_v43 }
0x3066   :  { %2418 = vst [vmem:[#allocation10] sm:$0x1] %v2417_v61 }
0x3067   :  { %2756 = shalt.err (!%p2753_p1)
}
0x3068   :  { %s3514_s0 = sld [smem:[#allocation16_spill]] }
0x306e   :  { %2428 = dma.vmem_to_hbm [thread:$0]  %s2426_s20, 16, %s3514_s0, [#allocation7]  }
0x306f   :  { %2769 = dma.done.wait [#allocation7], 16  }
0x3070   :  { %2770 = vsyncadd [#allocation7], 4294967280 }
0x3071   :  { %2432 = vsyncpa [#allocation6], 1 }
0x3072   :  { %2433 = vsyncpa [#allocation9], 1 }
0x3073   :  { %2434 = vsyncpa [#allocation7], 1 }

</bundles_post_ra>
